<compile_context>
chip_gen: v6e
topology: v6e:2x2x1
jax: 0.10.0
libtpu: 0.0.40
codegen_flags: <defaults>
</compile_context>

<pallas_src>
import functools
import math

import jax
import jax.numpy as jnp
from jax import lax
from jax.experimental import pallas as pl
from jax.experimental.pallas import tpu as pltpu

_LN_EPS = 1e-5


# ----------------------------- small helpers --------------------------------

def _ln(x, g, b, eps=_LN_EPS):
    """LayerNorm over last dim, f32 math."""
    mean = jnp.mean(x, axis=-1, keepdims=True)
    cen = x - mean
    var = jnp.mean(cen * cen, axis=-1, keepdims=True)
    return cen * lax.rsqrt(var + eps) * g + b


def _frame_chunks(n):
    """>=2-way leading parallel axis when possible (keeps both v7x TCs busy)."""
    for c in (2, 3, 5, 7):
        if n % c == 0:
            return c
    return 1


def _nbytes(shape, dtype):
    n = 1
    for d in shape:
        n *= int(d)
    return n * jnp.dtype(dtype).itemsize


def _vmem_budget(block_bytes, scratch_bytes=0):
    """Double-buffered blocks + scratch + headroom, capped for v7x's 64 MiB."""
    need = 2 * block_bytes + scratch_bytes + (8 << 20)
    return int(min(need, 64 << 20))


# --------------------- kernel 1: patch embed + pos + cls --------------------

def _patch_embed_kernel(xp_ref, w_ref, b_ref, pos_ref, cls_ref, o_ref):
    Nc, P, PD = xp_ref.shape
    E = w_ref.shape[1]
    xp = xp_ref[...].reshape(Nc * P, PD).astype(jnp.bfloat16)
    tok = jnp.dot(xp, w_ref[...], preferred_element_type=jnp.float32)
    tok = tok + b_ref[...]                                  # [Nc*P, E]
    tok = tok.reshape(Nc, P, E) + pos_ref[...][None]        # fused pos-embed add
    # Two slice stores instead of a sublane concat (no full-tile relayout).
    o_ref[:, 1:, :] = tok.astype(o_ref.dtype)
    o_ref[:, 0:1, :] = jnp.broadcast_to(cls_ref[...], (Nc, 1, E)).astype(o_ref.dtype)


def patch_embed(xp, w, b, pos, cls):
    """xp:[N,P,patch_dim] -> bf16 tokens [N, P+1, E] with cls prepended."""
    N, P, PD = xp.shape
    E = w.shape[1]
    S = P + 1
    nchunks = _frame_chunks(N)
    Nc = N // nchunks
    blk = (_nbytes((Nc, P, PD), xp.dtype) + _nbytes((PD, E), w.dtype)
           + 2 * _nbytes((1, E), jnp.float32) + _nbytes((P, E), jnp.float32)
           + _nbytes((Nc, S, E), jnp.bfloat16))
    return pl.pallas_call(
        _patch_embed_kernel,
        out_shape=jax.ShapeDtypeStruct((N, S, E), jnp.bfloat16),
        grid_spec=pl.GridSpec(
            grid=(nchunks,),
            in_specs=[
                pl.BlockSpec((Nc, P, PD), lambda c: (c, 0, 0)),
                pl.BlockSpec((PD, E), lambda c: (0, 0)),
                pl.BlockSpec((1, E), lambda c: (0, 0)),
                pl.BlockSpec((P, E), lambda c: (0, 0)),
                pl.BlockSpec((1, E), lambda c: (0, 0)),
            ],
            out_specs=pl.BlockSpec((Nc, S, E), lambda c: (c, 0, 0)),
        ),
        compiler_params=pltpu.CompilerParams(
            dimension_semantics=("parallel",),
            vmem_limit_bytes=_vmem_budget(blk)),
    )(xp, w, b.reshape(1, E), pos, cls.reshape(1, E))


# ---------- kernel 2: fused encoder stack + final projection + LN -----------

def _encoder_stack_kernel(x_ref, wqkv_ref, bqkv_ref, wout_ref, bout_ref,
                          ln1g_ref, ln1b_ref, w1_ref, b1_ref, w2_ref, b2_ref,
                          ln2g_ref, ln2b_ref, projw_ref, projb_ref,
                          lng_ref, lnb_ref, o_ref, tok_ref, *, num_heads):
    l = pl.program_id(1)
    Nc, S, E = tok_ref.shape
    Dh = E // num_heads
    M = Nc * S

    # Layer 0: pull the bf16 tokens into the resident f32 VMEM scratch.
    @pl.when(l == 0)
    def _():
        tok_ref[...] = x_ref[...].astype(jnp.float32)

    tok = tok_ref[...]                                      # [Nc, S, E] f32
    xf = tok.reshape(M, E)

    # --- fused QKV projection, all frames of the chunk batched in M ---
    qkv = jnp.dot(xf.astype(jnp.bfloat16), wqkv_ref[0],
                  preferred_element_type=jnp.float32) + bqkv_ref[0]
    scale = 1.0 / math.sqrt(Dh)
    q = (qkv[:, :E] * scale).astype(jnp.bfloat16)           # fold 1/sqrt(Dh) into q
    k = qkv[:, E:2 * E].astype(jnp.bfloat16)
    v = qkv[:, 2 * E:].astype(jnp.bfloat16)
    wout = wout_ref[0]                                      # [E, E] bf16

    # --- attention: frame-batched dot_generals, per-head output folded
    #     directly into the out-projection (no lane concat) ---
    attn = jnp.zeros((M, E), jnp.float32)
    for h in range(num_heads):
        sl = slice(h * Dh, (h + 1) * Dh)
        qh = q[:, sl].reshape(Nc, S, Dh)
        kh = k[:, sl].reshape(Nc, S, Dh)
        vh = v[:, sl].reshape(Nc, S, Dh)
        s = jnp.einsum('bqd,bkd->bqk', qh, kh,
                       preferred_element_type=jnp.float32)  # [Nc, S, S]
        s = s - jnp.max(s, axis=-1, keepdims=True)
        p = jnp.exp(s)
        p = p * pl.reciprocal(jnp.sum(p, axis=-1, keepdims=True), approx=True)
        oh = jnp.einsum('bqk,bkd->bqd', p.astype(jnp.bfloat16), vh,
                        preferred_element_type=jnp.float32)  # [Nc, S, Dh]
        attn = attn + jnp.dot(oh.reshape(M, Dh).astype(jnp.bfloat16),
                              wout[sl, :],
                              preferred_element_type=jnp.float32)
    attn = attn + bout_ref[0]

    # --- add & norm 1 (post-norm, f32) ---
    x1 = _ln(xf + attn, ln1g_ref[0], ln1b_ref[0])

    # --- FFN (ReLU), hidden [M, F] stays in VMEM/vregs ---
    h1 = jnp.dot(x1.astype(jnp.bfloat16), w1_ref[0],
                 preferred_element_type=jnp.float32) + b1_ref[0]
    h1 = jnp.maximum(h1, 0.0)
    h2 = jnp.dot(h1.astype(jnp.bfloat16), w2_ref[0],
                 preferred_element_type=jnp.float32) + b2_ref[0]

    # --- add & norm 2, keep tokens resident for the next layer ---
    x2 = _ln(x1 + h2, ln2g_ref[0], ln2b_ref[0])
    tok_ref[...] = x2.reshape(Nc, S, E)

    # --- last layer: fused fusion(identity) + projection + LayerNorm on cls ---
    @pl.when(l == pl.num_programs(1) - 1)
    def _():
        cls = x2.reshape(Nc, S, E)[:, 0, :]                  # [Nc, E]
        y = jnp.dot(cls.astype(jnp.bfloat16), projw_ref[...],
                    preferred_element_type=jnp.float32) + projb_ref[...]
        o_ref[0] = _ln(y, lng_ref[...], lnb_ref[...]).astype(o_ref.dtype)


def encoder_stack(tokens, layers, proj_w, proj_b, ln_g, ln_b, *, num_heads):
    """Run the whole TransformerEncoder stack + final proj/LN in one call.

    tokens: [N, S, E] bf16.  Returns [N, E] f32 (projected+normalized cls).
    """
    N, S, E = tokens.shape
    L = len(layers)
    F = layers[0]["ff1_w"].shape[1]
    E3 = 3 * E
    nchunks = _frame_chunks(N)
    Nc = N // nchunks

    stack = lambda name: jnp.stack([lp[name] for lp in layers], axis=0)
    wqkv = stack("in_proj_w")                       # [L, E, 3E] bf16
    bqkv = stack("in_proj_b")[:, None, :]           # [L, 1, 3E] f32
    wout = stack("out_proj_w")
    bout = stack("out_proj_b")[:, None, :]
    ln1g = stack("ln1_g")[:, None, :]
    ln1b = stack("ln1_b")[:, None, :]
    w1 = stack("ff1_w")
    b1 = stack("ff1_b")[:, None, :]
    w2 = stack("ff2_w")
    b2 = stack("ff2_b")[:, None, :]
    ln2g = stack("ln2_g")[:, None, :]
    ln2b = stack("ln2_b")[:, None, :]

    chunk_idx = lambda c, l: (c, 0, 0)
    layer_idx = lambda c, l: (l, 0, 0)
    fixed2 = lambda c, l: (0, 0)

    blk = sum([
        _nbytes((Nc, S, E), tokens.dtype),
        _nbytes((1, E, E3), wqkv.dtype), _nbytes((1, 1, E3), bqkv.dtype),
        _nbytes((1, E, E), wout.dtype), _nbytes((1, 1, E), bout.dtype),
        2 * _nbytes((1, 1, E), ln1g.dtype),
        _nbytes((1, E, F), w1.dtype), _nbytes((1, 1, F), b1.dtype),
        _nbytes((1, F, E), w2.dtype), _nbytes((1, 1, E), b2.dtype),
        2 * _nbytes((1, 1, E), ln2g.dtype),
        _nbytes((E, E), proj_w.dtype), 3 * _nbytes((1, E), jnp.float32),
        _nbytes((1, Nc, E), jnp.float32),
    ])
    scratch_bytes = _nbytes((Nc, S, E), jnp.float32)

    out = pl.pallas_call(
        functools.partial(_encoder_stack_kernel, num_heads=num_heads),
        out_shape=jax.ShapeDtypeStruct((nchunks, Nc, E), jnp.float32),
        grid_spec=pltpu.PrefetchScalarGridSpec(
            num_scalar_prefetch=0,
            grid=(nchunks, L),
            in_specs=[
                pl.BlockSpec((Nc, S, E), chunk_idx),
                pl.BlockSpec((1, E, E3), layer_idx),
                pl.BlockSpec((1, 1, E3), layer_idx),
                pl.BlockSpec((1, E, E), layer_idx),
                pl.BlockSpec((1, 1, E), layer_idx),
                pl.BlockSpec((1, 1, E), layer_idx),
                pl.BlockSpec((1, 1, E), layer_idx),
                pl.BlockSpec((1, E, F), layer_idx),
                pl.BlockSpec((1, 1, F), layer_idx),
                pl.BlockSpec((1, F, E), layer_idx),
                pl.BlockSpec((1, 1, E), layer_idx),
                pl.BlockSpec((1, 1, E), layer_idx),
                pl.BlockSpec((1, 1, E), layer_idx),
                pl.BlockSpec((E, E), fixed2),
                pl.BlockSpec((1, E), fixed2),
                pl.BlockSpec((1, E), fixed2),
                pl.BlockSpec((1, E), fixed2),
            ],
            out_specs=pl.BlockSpec((1, Nc, E), lambda c, l: (c, 0, 0)),
            scratch_shapes=[pltpu.VMEM((Nc, S, E), jnp.float32)],
        ),
        compiler_params=pltpu.CompilerParams(
            dimension_semantics=("parallel", "arbitrary"),
            vmem_limit_bytes=_vmem_budget(blk, scratch_bytes)),
    )(tokens, wqkv, bqkv, wout, bout, ln1g, ln1b, w1, b1, w2, b2, ln2g, ln2b,
      proj_w, proj_b.reshape(1, E), ln_g.reshape(1, E), ln_b.reshape(1, E))
    return out.reshape(N, E)


# ------------------------------- model forward ------------------------------

def combined_forward(params, x, *, patch_size, num_heads):
    """CombinedFace3DViT.forward (eval).  x: [B, T, C, H, W] float32."""
    B, T, C, H, W = x.shape
    p = patch_size
    Hp, Wp = H // p, W // p
    N = B * T
    patch_dim = C * p * p

    # torch: unfold(2,p,p).unfold(3,p,p) -> (N,C,Hp,Wp,ph,pw);
    #        permute(0,2,4,1,3,5)        -> (N,Hp,ph,C,Wp,pw);  reshape.
    # TODO(synk): fold this host-side relayout into the patch-embed BlockSpec
    # index_map (or allow_input_fusion) to save an HBM pass on v5e.
    xp = x.reshape(N, C, Hp, p, Wp, p)            # (N,C,Hp,ph,Wp,pw)
    xp = xp.transpose(0, 2, 3, 1, 4, 5)           # (N,Hp,ph,C,Wp,pw)
    xp = xp.reshape(N, -1, patch_dim)             # (N, num_patches, patch_dim)

    vit = params["vit"]
    tok = patch_embed(xp, vit["patch_w"], vit["patch_b"],
                      vit["pos_embed"], vit["cls_token"])       # [N, P+1, E] bf16

    # TODO(synk): ColorVariation3DViT / CrossModalAttentionFusion definitions
    # are not provided; single modality, fusion == identity, dropout == id.
    cls = encoder_stack(tok, vit["layers"], params["proj_w"], params["proj_b"],
                        params["ln_g"], params["ln_b"], num_heads=num_heads)

    return cls.reshape(B, T, -1)


# ----------------------------- parameter init ------------------------------

def _linear_init(key, fan_in, fan_out):
    kw, kb = jax.random.split(key)
    # weights stored bf16 (MXU operands, halves HBM/VMEM traffic); biases f32.
    w = (jax.random.normal(kw, (fan_in, fan_out), jnp.float32) * 0.02
         ).astype(jnp.bfloat16)
    b = jax.random.normal(kb, (fan_out,), jnp.float32) * 0.02
    return w, b


def init_params(key, *, in_channels, img_size, patch_size, embed_dim,
                num_heads, vit_depth, dim_feedforward):
    num_patches = (img_size // patch_size) ** 2
    patch_dim = in_channels * patch_size * patch_size
    keys = iter(jax.random.split(key, 4 + 4 * vit_depth + 2))

    patch_w, patch_b = _linear_init(next(keys), patch_dim, embed_dim)
    cls_token = jax.random.normal(next(keys), (1, embed_dim), jnp.float32)
    pos_embed = jax.random.normal(next(keys), (num_patches, embed_dim),
                                  jnp.float32) * 0.02

    layers = []
    for _ in range(vit_depth):
        in_w, in_b = _linear_init(next(keys), embed_dim, 3 * embed_dim)
        out_w, out_b = _linear_init(next(keys), embed_dim, embed_dim)
        f1_w, f1_b = _linear_init(next(keys), embed_dim, dim_feedforward)
        f2_w, f2_b = _linear_init(next(keys), dim_feedforward, embed_dim)
        layers.append(dict(
            in_proj_w=in_w, in_proj_b=in_b,
            out_proj_w=out_w, out_proj_b=out_b,
            ff1_w=f1_w, ff1_b=f1_b, ff2_w=f2_w, ff2_b=f2_b,
            ln1_g=jnp.ones((embed_dim,), jnp.float32),
            ln1_b=jnp.zeros((embed_dim,), jnp.float32),
            ln2_g=jnp.ones((embed_dim,), jnp.float32),
            ln2_b=jnp.zeros((embed_dim,), jnp.float32),
        ))

    vit = dict(patch_w=patch_w, patch_b=patch_b,
               cls_token=cls_token, pos_embed=pos_embed, layers=layers)

    num_modalities = 1
    proj_w, proj_b = _linear_init(next(keys),
                                  embed_dim * num_modalities, embed_dim)
    return dict(
        vit=vit,
        proj_w=proj_w, proj_b=proj_b,
        ln_g=jnp.ones((embed_dim,), jnp.float32),
        ln_b=jnp.zeros((embed_dim,), jnp.float32),
    )


# --------------------------------- main -------------------------------------

if __name__ == "__main__":
    # Small shapes consistent with the forward: video [B, T, C, H, W].
    B, T, C = 2, 4, 3
    img_size, patch_size = 32, 16       # -> 4 spatial patches/frame, patch_dim=768
    embed_dim, num_heads = 128, 4       # lane-dense E=128 (VideoViT default)
    vit_depth = 2                       # module default is 6; small for demo
    dim_feedforward = 256               # nn.TransformerEncoderLayer default is 2048

    key = jax.random.PRNGKey(0)
    kp, kx = jax.random.split(key)
    params = init_params(kp, in_channels=C, img_size=img_size,
                         patch_size=patch_size, embed_dim=embed_dim,
                         num_heads=num_heads, vit_depth=vit_depth,
                         dim_feedforward=dim_feedforward)
    x = jax.random.normal(kx, (B, T, C, img_size, img_size), jnp.float32)

    fwd = jax.jit(functools.partial(combined_forward, patch_size=patch_size,
                                    num_heads=num_heads))
    out = fwd(params, x)
    out = jax.block_until_ready(out)
    assert out.shape == (B, T, embed_dim), out.shape
    assert jnp.all(jnp.isfinite(out))
    print("KERNEL_OK")
</pallas_src>

<mosaic_0001>
module attributes {stable_mosaic.version = 11 : i64} {
  func.func @_patch_embed_kernel(%arg0: i32, %arg1: memref<4x4x768xf32, #tpu.memory_space<vmem>>, %arg2: memref<768x128xbf16, #tpu.memory_space<vmem>>, %arg3: memref<1x128xf32, #tpu.memory_space<vmem>>, %arg4: memref<4x128xf32, #tpu.memory_space<vmem>>, %arg5: memref<1x128xf32, #tpu.memory_space<vmem>>, %arg6: memref<4x5x128xbf16, #tpu.memory_space<vmem>>) attributes {dimension_semantics = [#tpu.dimension_semantics<parallel>], iteration_bounds = array<i64: 2>, scalar_prefetch = 0 : i64, scratch_operands = 0 : i64, tpu.core_type = #tpu.core_type<tc>, window_params = [{transform_indices = @transform_0, window_bounds = array<i64: 4, 4, 768>}, {pipeline_mode = #tpu.pipeline_mode<synchronous>, transform_indices = @transform_1, window_bounds = array<i64: 768, 128>}, {pipeline_mode = #tpu.pipeline_mode<synchronous>, transform_indices = @transform_2, window_bounds = array<i64: 1, 128>}, {pipeline_mode = #tpu.pipeline_mode<synchronous>, transform_indices = @transform_3, window_bounds = array<i64: 4, 128>}, {pipeline_mode = #tpu.pipeline_mode<synchronous>, transform_indices = @transform_4, window_bounds = array<i64: 1, 128>}, {transform_indices = @transform_5, window_bounds = array<i64: 4, 5, 128>}]} {
    %c0 = arith.constant 0 : index
    %c0_0 = arith.constant 0 : index
    %c0_1 = arith.constant 0 : index
    %0 = vector.load %arg1[%c0, %c0_0, %c0_1] : memref<4x4x768xf32, #tpu.memory_space<vmem>>, vector<4x4x768xf32>
    %1 = vector.shape_cast %0 : vector<4x4x768xf32> to vector<16x768xf32>
    %2 = arith.truncf %1 : vector<16x768xf32> to vector<16x768xbf16>
    %c0_2 = arith.constant 0 : index
    %c0_3 = arith.constant 0 : index
    %3 = vector.load %arg2[%c0_2, %c0_3] : memref<768x128xbf16, #tpu.memory_space<vmem>>, vector<768x128xbf16>
    %cst = arith.constant dense<0.000000e+00> : vector<16x128xf32>
    %4 = tpu.matmul %2, %3, %cst {dimension_numbers = #tpu.dot_dimension_numbers<[1], [0], [0], [1], [0, 0, 1, 1], [], []>} : vector<16x768xbf16>, vector<768x128xbf16>, vector<16x128xf32> -> vector<16x128xf32>
    %c0_4 = arith.constant 0 : index
    %c0_5 = arith.constant 0 : index
    %5 = vector.load %arg3[%c0_4, %c0_5] : memref<1x128xf32, #tpu.memory_space<vmem>>, vector<1x128xf32>
    %6 = vector.broadcast %5 : vector<1x128xf32> to vector<16x128xf32>
    %7 = arith.addf %4, %6 : vector<16x128xf32>
    %8 = vector.shape_cast %7 : vector<16x128xf32> to vector<4x4x128xf32>
    %c0_6 = arith.constant 0 : index
    %c0_7 = arith.constant 0 : index
    %9 = vector.load %arg4[%c0_6, %c0_7] : memref<4x128xf32, #tpu.memory_space<vmem>>, vector<4x128xf32>
    %10 = vector.shape_cast %9 : vector<4x128xf32> to vector<1x4x128xf32>
    %11 = vector.broadcast %10 : vector<1x4x128xf32> to vector<4x4x128xf32>
    %12 = arith.addf %8, %11 : vector<4x4x128xf32>
    %13 = arith.truncf %12 : vector<4x4x128xf32> to vector<4x4x128xbf16>
    %c0_8 = arith.constant 0 : index
    %c1 = arith.constant 1 : index
    %c0_9 = arith.constant 0 : index
    %14 = vector.load %arg6[%c0_8, %c1, %c0_9] : memref<4x5x128xbf16, #tpu.memory_space<vmem>>, vector<4x4x128xbf16>
    tpu.vector_store %arg6[%c0_8, %c1, %c0_9], %13 {strides = array<i32>} : memref<4x5x128xbf16, #tpu.memory_space<vmem>>, vector<4x4x128xbf16>,
    %c0_10 = arith.constant 0 : index
    %c0_11 = arith.constant 0 : index
    %15 = vector.load %arg5[%c0_10, %c0_11] : memref<1x128xf32, #tpu.memory_space<vmem>>, vector<1x128xf32>
    %16 = vector.shape_cast %15 : vector<1x128xf32> to vector<1x1x128xf32>
    %17 = vector.broadcast %16 : vector<1x1x128xf32> to vector<4x1x128xf32>
    %18 = arith.truncf %17 : vector<4x1x128xf32> to vector<4x1x128xbf16>
    %c0_12 = arith.constant 0 : index
    %c0_13 = arith.constant 0 : index
    %c0_14 = arith.constant 0 : index
    %19 = vector.load %arg6[%c0_12, %c0_13, %c0_14] : memref<4x5x128xbf16, #tpu.memory_space<vmem>>, vector<4x1x128xbf16>
    tpu.vector_store %arg6[%c0_12, %c0_13, %c0_14], %18 {strides = array<i32>} : memref<4x5x128xbf16, #tpu.memory_space<vmem>>, vector<4x1x128xbf16>,
    return
  }
  func.func @transform_0(%arg0: i32) -> (i32, i32, i32) {
    %c0_i32 = arith.constant 0 : i32
    %c0_i32_0 = arith.constant 0 : i32
    %c0_i32_1 = arith.constant 0 : i32
    return %arg0, %c0_i32, %c0_i32_0 : i32, i32, i32
  }
  func.func @transform_1(%arg0: i32) -> (i32, i32) {
    %c0_i32 = arith.constant 0 : i32
    %c0_i32_0 = arith.constant 0 : i32
    %c0_i32_1 = arith.constant 0 : i32
    return %c0_i32, %c0_i32_0 : i32, i32
  }
  func.func @transform_2(%arg0: i32) -> (i32, i32) {
    %c0_i32 = arith.constant 0 : i32
    %c0_i32_0 = arith.constant 0 : i32
    %c0_i32_1 = arith.constant 0 : i32
    return %c0_i32, %c0_i32_0 : i32, i32
  }
  func.func @transform_3(%arg0: i32) -> (i32, i32) {
    %c0_i32 = arith.constant 0 : i32
    %c0_i32_0 = arith.constant 0 : i32
    %c0_i32_1 = arith.constant 0 : i32
    return %c0_i32, %c0_i32_0 : i32, i32
  }
  func.func @transform_4(%arg0: i32) -> (i32, i32) {
    %c0_i32 = arith.constant 0 : i32
    %c0_i32_0 = arith.constant 0 : i32
    %c0_i32_1 = arith.constant 0 : i32
    return %c0_i32, %c0_i32_0 : i32, i32
  }
  func.func @transform_5(%arg0: i32) -> (i32, i32, i32) {
    %c0_i32 = arith.constant 0 : i32
    %c0_i32_0 = arith.constant 0 : i32
    %c0_i32_1 = arith.constant 0 : i32
    return %arg0, %c0_i32, %c0_i32_0 : i32, i32, i32
  }
}

module attributes {stable_mosaic.version = 11 : i64} {
  func.func @_encoder_stack_kernel(%arg0: i32, %arg1: i32, %arg2: memref<4x5x128xbf16, #tpu.memory_space<vmem>>, %arg3: memref<1x128x384xbf16, #tpu.memory_space<vmem>>, %arg4: memref<1x1x384xf32, #tpu.memory_space<vmem>>, %arg5: memref<1x128x128xbf16, #tpu.memory_space<vmem>>, %arg6: memref<1x1x128xf32, #tpu.memory_space<vmem>>, %arg7: memref<1x1x128xf32, #tpu.memory_space<vmem>>, %arg8: memref<1x1x128xf32, #tpu.memory_space<vmem>>, %arg9: memref<1x128x256xbf16, #tpu.memory_space<vmem>>, %arg10: memref<1x1x256xf32, #tpu.memory_space<vmem>>, %arg11: memref<1x256x128xbf16, #tpu.memory_space<vmem>>, %arg12: memref<1x1x128xf32, #tpu.memory_space<vmem>>, %arg13: memref<1x1x128xf32, #tpu.memory_space<vmem>>, %arg14: memref<1x1x128xf32, #tpu.memory_space<vmem>>, %arg15: memref<128x128xbf16, #tpu.memory_space<vmem>>, %arg16: memref<1x128xf32, #tpu.memory_space<vmem>>, %arg17: memref<1x128xf32, #tpu.memory_space<vmem>>, %arg18: memref<1x128xf32, #tpu.memory_space<vmem>>, %arg19: memref<1x4x128xf32, #tpu.memory_space<vmem>>, %arg20: memref<4x5x128xf32, #tpu.memory_space<vmem>>) attributes {dimension_semantics = [#tpu.dimension_semantics<parallel>, #tpu.dimension_semantics<arbitrary>], iteration_bounds = array<i64: 2, 2>, scalar_prefetch = 0 : i64, scratch_operands = 1 : i64, tpu.core_type = #tpu.core_type<tc>, window_params = [{transform_indices = @transform_0, window_bounds = array<i64: 4, 5, 128>}, {transform_indices = @transform_1, window_bounds = array<i64: 1, 128, 384>}, {transform_indices = @transform_2, window_bounds = array<i64: 1, 1, 384>}, {transform_indices = @transform_3, window_bounds = array<i64: 1, 128, 128>}, {transform_indices = @transform_4, window_bounds = array<i64: 1, 1, 128>}, {transform_indices = @transform_5, window_bounds = array<i64: 1, 1, 128>}, {transform_indices = @transform_6, window_bounds = array<i64: 1, 1, 128>}, {transform_indices = @transform_7, window_bounds = array<i64: 1, 128, 256>}, {transform_indices = @transform_8, window_bounds = array<i64: 1, 1, 256>}, {transform_indices = @transform_9, window_bounds = array<i64: 1, 256, 128>}, {transform_indices = @transform_10, window_bounds = array<i64: 1, 1, 128>}, {transform_indices = @transform_11, window_bounds = array<i64: 1, 1, 128>}, {transform_indices = @transform_12, window_bounds = array<i64: 1, 1, 128>}, {pipeline_mode = #tpu.pipeline_mode<synchronous>, transform_indices = @transform_13, window_bounds = array<i64: 128, 128>}, {pipeline_mode = #tpu.pipeline_mode<synchronous>, transform_indices = @transform_14, window_bounds = array<i64: 1, 128>}, {pipeline_mode = #tpu.pipeline_mode<synchronous>, transform_indices = @transform_15, window_bounds = array<i64: 1, 128>}, {pipeline_mode = #tpu.pipeline_mode<synchronous>, transform_indices = @transform_16, window_bounds = array<i64: 1, 128>}, {transform_indices = @transform_17, window_bounds = array<i64: 1, 4, 128>}]} {
    %c0_i32 = arith.constant 0 : i32
    %0 = arith.cmpi eq, %arg1, %c0_i32 : i32
    %1 = arith.extui %0 : i1 to i32
    %c0_i32_0 = arith.constant 0 : i32
    %2 = arith.cmpi ne, %1, %c0_i32_0 : i32
    scf.if %2 {
      %c0_78 = arith.constant 0 : index
      %c0_79 = arith.constant 0 : index
      %c0_80 = arith.constant 0 : index
      %197 = vector.load %arg2[%c0_78, %c0_79, %c0_80] : memref<4x5x128xbf16, #tpu.memory_space<vmem>>, vector<4x5x128xbf16>
      %198 = arith.extf %197 : vector<4x5x128xbf16> to vector<4x5x128xf32>
      %c0_81 = arith.constant 0 : index
      %c0_82 = arith.constant 0 : index
      %c0_83 = arith.constant 0 : index
      %199 = vector.load %arg20[%c0_81, %c0_82, %c0_83] : memref<4x5x128xf32, #tpu.memory_space<vmem>>, vector<4x5x128xf32>
      tpu.vector_store %arg20[%c0_81, %c0_82, %c0_83], %198 {strides = array<i32>} : memref<4x5x128xf32, #tpu.memory_space<vmem>>, vector<4x5x128xf32>,
    } else {
    }
    %c0 = arith.constant 0 : index
    %c0_1 = arith.constant 0 : index
    %c0_2 = arith.constant 0 : index
    %3 = vector.load %arg20[%c0, %c0_1, %c0_2] : memref<4x5x128xf32, #tpu.memory_space<vmem>>, vector<4x5x128xf32>
    %4 = vector.shape_cast %3 : vector<4x5x128xf32> to vector<20x128xf32>
    %5 = arith.truncf %4 : vector<20x128xf32> to vector<20x128xbf16>
    %c0_3 = arith.constant 0 : index
    %c0_4 = arith.constant 0 : index
    %c0_5 = arith.constant 0 : index
    %6 = vector.load %arg3[%c0_3, %c0_4, %c0_5] : memref<1x128x384xbf16, #tpu.memory_space<vmem>>, vector<1x128x384xbf16>
    %7 = vector.shape_cast %6 : vector<1x128x384xbf16> to vector<128x384xbf16>
    %cst = arith.constant dense<0.000000e+00> : vector<20x384xf32>
    %8 = tpu.matmul %5, %7, %cst {dimension_numbers = #tpu.dot_dimension_numbers<[1], [0], [0], [1], [0, 0, 1, 1], [], []>} : vector<20x128xbf16>, vector<128x384xbf16>, vector<20x384xf32> -> vector<20x384xf32>
    %c0_6 = arith.constant 0 : index
    %c0_7 = arith.constant 0 : index
    %c0_8 = arith.constant 0 : index
    %9 = vector.load %arg4[%c0_6, %c0_7, %c0_8] : memref<1x1x384xf32, #tpu.memory_space<vmem>>, vector<1x1x384xf32>
    %10 = vector.shape_cast %9 : vector<1x1x384xf32> to vector<1x384xf32>
    %11 = vector.broadcast %10 : vector<1x384xf32> to vector<20x384xf32>
    %12 = arith.addf %8, %11 : vector<20x384xf32>
    %13 = vector.extract_strided_slice %12 {offsets = [0, 0], sizes = [20, 128], strides = [1, 1]} : vector<20x384xf32> to vector<20x128xf32>
    %cst_9 = arith.constant 0.176776692 : f32
    %14 = vector.broadcast %cst_9 : f32 to vector<20x128xf32>
    %15 = arith.mulf %13, %14 : vector<20x128xf32>
    %16 = arith.truncf %15 : vector<20x128xf32> to vector<20x128xbf16>
    %17 = vector.extract_strided_slice %12 {offsets = [0, 128], sizes = [20, 128], strides = [1, 1]} : vector<20x384xf32> to vector<20x128xf32>
    %18 = arith.truncf %17 : vector<20x128xf32> to vector<20x128xbf16>
    %19 = vector.extract_strided_slice %12 {offsets = [0, 256], sizes = [20, 128], strides = [1, 1]} : vector<20x384xf32> to vector<20x128xf32>
    %20 = arith.truncf %19 : vector<20x128xf32> to vector<20x128xbf16>
    %c0_10 = arith.constant 0 : index
    %c0_11 = arith.constant 0 : index
    %c0_12 = arith.constant 0 : index
    %21 = vector.load %arg5[%c0_10, %c0_11, %c0_12] : memref<1x128x128xbf16, #tpu.memory_space<vmem>>, vector<1x128x128xbf16>
    %22 = vector.shape_cast %21 : vector<1x128x128xbf16> to vector<128x128xbf16>
    %cst_13 = arith.constant 0.000000e+00 : f32
    %23 = vector.broadcast %cst_13 : f32 to vector<20x128xf32>
    %24 = vector.extract_strided_slice %16 {offsets = [0, 0], sizes = [20, 32], strides = [1, 1]} : vector<20x128xbf16> to vector<20x32xbf16>
    %25 = vector.shape_cast %24 : vector<20x32xbf16> to vector<4x5x32xbf16>
    %26 = vector.extract_strided_slice %18 {offsets = [0, 0], sizes = [20, 32], strides = [1, 1]} : vector<20x128xbf16> to vector<20x32xbf16>
    %27 = vector.shape_cast %26 : vector<20x32xbf16> to vector<4x5x32xbf16>
    %28 = vector.extract_strided_slice %20 {offsets = [0, 0], sizes = [20, 32], strides = [1, 1]} : vector<20x128xbf16> to vector<20x32xbf16>
    %29 = vector.shape_cast %28 : vector<20x32xbf16> to vector<4x5x32xbf16>
    "tpu.trace_start"() <{level = 10 : i32, message = "bqd,bkd->bqk"}> : () -> ()
    %cst_14 = arith.constant dense<0.000000e+00> : vector<4x5x5xf32>
    %30 = tpu.matmul %25, %27, %cst_14 {dimension_numbers = #tpu.dot_dimension_numbers<[2], [2], [1], [1], [0, 0, 0, 1, 1, 1], [0], [0]>} : vector<4x5x32xbf16>, vector<4x5x32xbf16>, vector<4x5x5xf32> -> vector<4x5x5xf32>
    "tpu.trace_stop"() : () -> ()
    %cst_15 = arith.constant dense<0xFF800000> : vector<4x5xf32>
    %31 = vector.multi_reduction <maximumf>, %30, %cst_15 [2] : vector<4x5x5xf32> to vector<4x5xf32>
    %32 = vector.shape_cast %31 : vector<4x5xf32> to vector<4x5x1xf32>
    %33 = vector.broadcast %32 : vector<4x5x1xf32> to vector<4x5x5xf32>
    %34 = arith.subf %30, %33 : vector<4x5x5xf32>
    %35 = math.exp %34 : vector<4x5x5xf32>
    %cst_16 = arith.constant dense<0.000000e+00> : vector<4x5xf32>
    %36 = vector.multi_reduction <add>, %35, %cst_16 [2] : vector<4x5x5xf32> to vector<4x5xf32>
    %37 = vector.shape_cast %36 : vector<4x5xf32> to vector<4x5x1xf32>
    %38 = tpu.reciprocal %37 {approx = true} : vector<4x5x1xf32> -> vector<4x5x1xf32>
    %39 = vector.broadcast %38 : vector<4x5x1xf32> to vector<4x5x5xf32>
    %40 = arith.mulf %35, %39 : vector<4x5x5xf32>
    %41 = arith.truncf %40 : vector<4x5x5xf32> to vector<4x5x5xbf16>
    "tpu.trace_start"() <{level = 10 : i32, message = "bqk,bkd->bqd"}> : () -> ()
    %cst_17 = arith.constant dense<0.000000e+00> : vector<4x5x32xf32>
    %42 = tpu.matmul %41, %29, %cst_17 {dimension_numbers = #tpu.dot_dimension_numbers<[2], [1], [1], [2], [0, 0, 0, 1, 1, 2], [0], [0]>} : vector<4x5x5xbf16>, vector<4x5x32xbf16>, vector<4x5x32xf32> -> vector<4x5x32xf32>
    "tpu.trace_stop"() : () -> ()
    %43 = vector.shape_cast %42 : vector<4x5x32xf32> to vector<20x32xf32>
    %44 = arith.truncf %43 : vector<20x32xf32> to vector<20x32xbf16>
    %45 = vector.extract_strided_slice %22 {offsets = [0, 0], sizes = [32, 128], strides = [1, 1]} : vector<128x128xbf16> to vector<32x128xbf16>
    %cst_18 = arith.constant dense<0.000000e+00> : vector<20x128xf32>
    %46 = tpu.matmul %44, %45, %cst_18 {dimension_numbers = #tpu.dot_dimension_numbers<[1], [0], [0], [1], [0, 0, 1, 1], [], []>} : vector<20x32xbf16>, vector<32x128xbf16>, vector<20x128xf32> -> vector<20x128xf32>
    %47 = arith.addf %23, %46 : vector<20x128xf32>
    %48 = vector.extract_strided_slice %16 {offsets = [0, 32], sizes = [20, 32], strides = [1, 1]} : vector<20x128xbf16> to vector<20x32xbf16>
    %49 = vector.shape_cast %48 : vector<20x32xbf16> to vector<4x5x32xbf16>
    %50 = vector.extract_strided_slice %18 {offsets = [0, 32], sizes = [20, 32], strides = [1, 1]} : vector<20x128xbf16> to vector<20x32xbf16>
    %51 = vector.shape_cast %50 : vector<20x32xbf16> to vector<4x5x32xbf16>
    %52 = vector.extract_strided_slice %20 {offsets = [0, 32], sizes = [20, 32], strides = [1, 1]} : vector<20x128xbf16> to vector<20x32xbf16>
    %53 = vector.shape_cast %52 : vector<20x32xbf16> to vector<4x5x32xbf16>
    "tpu.trace_start"() <{level = 10 : i32, message = "bqd,bkd->bqk"}> : () -> ()
    %cst_19 = arith.constant dense<0.000000e+00> : vector<4x5x5xf32>
    %54 = tpu.matmul %49, %51, %cst_19 {dimension_numbers = #tpu.dot_dimension_numbers<[2], [2], [1], [1], [0, 0, 0, 1, 1, 1], [0], [0]>} : vector<4x5x32xbf16>, vector<4x5x32xbf16>, vector<4x5x5xf32> -> vector<4x5x5xf32>
    "tpu.trace_stop"() : () -> ()
    %cst_20 = arith.constant dense<0xFF800000> : vector<4x5xf32>
    %55 = vector.multi_reduction <maximumf>, %54, %cst_20 [2] : vector<4x5x5xf32> to vector<4x5xf32>
    %56 = vector.shape_cast %55 : vector<4x5xf32> to vector<4x5x1xf32>
    %57 = vector.broadcast %56 : vector<4x5x1xf32> to vector<4x5x5xf32>
    %58 = arith.subf %54, %57 : vector<4x5x5xf32>
    %59 = math.exp %58 : vector<4x5x5xf32>
    %cst_21 = arith.constant dense<0.000000e+00> : vector<4x5xf32>
    %60 = vector.multi_reduction <add>, %59, %cst_21 [2] : vector<4x5x5xf32> to vector<4x5xf32>
    %61 = vector.shape_cast %60 : vector<4x5xf32> to vector<4x5x1xf32>
    %62 = tpu.reciprocal %61 {approx = true} : vector<4x5x1xf32> -> vector<4x5x1xf32>
    %63 = vector.broadcast %62 : vector<4x5x1xf32> to vector<4x5x5xf32>
    %64 = arith.mulf %59, %63 : vector<4x5x5xf32>
    %65 = arith.truncf %64 : vector<4x5x5xf32> to vector<4x5x5xbf16>
    "tpu.trace_start"() <{level = 10 : i32, message = "bqk,bkd->bqd"}> : () -> ()
    %cst_22 = arith.constant dense<0.000000e+00> : vector<4x5x32xf32>
    %66 = tpu.matmul %65, %53, %cst_22 {dimension_numbers = #tpu.dot_dimension_numbers<[2], [1], [1], [2], [0, 0, 0, 1, 1, 2], [0], [0]>} : vector<4x5x5xbf16>, vector<4x5x32xbf16>, vector<4x5x32xf32> -> vector<4x5x32xf32>
    "tpu.trace_stop"() : () -> ()
    %67 = vector.shape_cast %66 : vector<4x5x32xf32> to vector<20x32xf32>
    %68 = arith.truncf %67 : vector<20x32xf32> to vector<20x32xbf16>
    %69 = vector.extract_strided_slice %22 {offsets = [32, 0], sizes = [32, 128], strides = [1, 1]} : vector<128x128xbf16> to vector<32x128xbf16>
    %cst_23 = arith.constant dense<0.000000e+00> : vector<20x128xf32>
    %70 = tpu.matmul %68, %69, %cst_23 {dimension_numbers = #tpu.dot_dimension_numbers<[1], [0], [0], [1], [0, 0, 1, 1], [], []>} : vector<20x32xbf16>, vector<32x128xbf16>, vector<20x128xf32> -> vector<20x128xf32>
    %71 = arith.addf %47, %70 : vector<20x128xf32>
    %72 = vector.extract_strided_slice %16 {offsets = [0, 64], sizes = [20, 32], strides = [1, 1]} : vector<20x128xbf16> to vector<20x32xbf16>
    %73 = vector.shape_cast %72 : vector<20x32xbf16> to vector<4x5x32xbf16>
    %74 = vector.extract_strided_slice %18 {offsets = [0, 64], sizes = [20, 32], strides = [1, 1]} : vector<20x128xbf16> to vector<20x32xbf16>
    %75 = vector.shape_cast %74 : vector<20x32xbf16> to vector<4x5x32xbf16>
    %76 = vector.extract_strided_slice %20 {offsets = [0, 64], sizes = [20, 32], strides = [1, 1]} : vector<20x128xbf16> to vector<20x32xbf16>
    %77 = vector.shape_cast %76 : vector<20x32xbf16> to vector<4x5x32xbf16>
    "tpu.trace_start"() <{level = 10 : i32, message = "bqd,bkd->bqk"}> : () -> ()
    %cst_24 = arith.constant dense<0.000000e+00> : vector<4x5x5xf32>
    %78 = tpu.matmul %73, %75, %cst_24 {dimension_numbers = #tpu.dot_dimension_numbers<[2], [2], [1], [1], [0, 0, 0, 1, 1, 1], [0], [0]>} : vector<4x5x32xbf16>, vector<4x5x32xbf16>, vector<4x5x5xf32> -> vector<4x5x5xf32>
    "tpu.trace_stop"() : () -> ()
    %cst_25 = arith.constant dense<0xFF800000> : vector<4x5xf32>
    %79 = vector.multi_reduction <maximumf>, %78, %cst_25 [2] : vector<4x5x5xf32> to vector<4x5xf32>
    %80 = vector.shape_cast %79 : vector<4x5xf32> to vector<4x5x1xf32>
    %81 = vector.broadcast %80 : vector<4x5x1xf32> to vector<4x5x5xf32>
    %82 = arith.subf %78, %81 : vector<4x5x5xf32>
    %83 = math.exp %82 : vector<4x5x5xf32>
    %cst_26 = arith.constant dense<0.000000e+00> : vector<4x5xf32>
    %84 = vector.multi_reduction <add>, %83, %cst_26 [2] : vector<4x5x5xf32> to vector<4x5xf32>
    %85 = vector.shape_cast %84 : vector<4x5xf32> to vector<4x5x1xf32>
    %86 = tpu.reciprocal %85 {approx = true} : vector<4x5x1xf32> -> vector<4x5x1xf32>
    %87 = vector.broadcast %86 : vector<4x5x1xf32> to vector<4x5x5xf32>
    %88 = arith.mulf %83, %87 : vector<4x5x5xf32>
    %89 = arith.truncf %88 : vector<4x5x5xf32> to vector<4x5x5xbf16>
    "tpu.trace_start"() <{level = 10 : i32, message = "bqk,bkd->bqd"}> : () -> ()
    %cst_27 = arith.constant dense<0.000000e+00> : vector<4x5x32xf32>
    %90 = tpu.matmul %89, %77, %cst_27 {dimension_numbers = #tpu.dot_dimension_numbers<[2], [1], [1], [2], [0, 0, 0, 1, 1, 2], [0], [0]>} : vector<4x5x5xbf16>, vector<4x5x32xbf16>, vector<4x5x32xf32> -> vector<4x5x32xf32>
    "tpu.trace_stop"() : () -> ()
    %91 = vector.shape_cast %90 : vector<4x5x32xf32> to vector<20x32xf32>
    %92 = arith.truncf %91 : vector<20x32xf32> to vector<20x32xbf16>
    %93 = vector.extract_strided_slice %22 {offsets = [64, 0], sizes = [32, 128], strides = [1, 1]} : vector<128x128xbf16> to vector<32x128xbf16>
    %cst_28 = arith.constant dense<0.000000e+00> : vector<20x128xf32>
    %94 = tpu.matmul %92, %93, %cst_28 {dimension_numbers = #tpu.dot_dimension_numbers<[1], [0], [0], [1], [0, 0, 1, 1], [], []>} : vector<20x32xbf16>, vector<32x128xbf16>, vector<20x128xf32> -> vector<20x128xf32>
    %95 = arith.addf %71, %94 : vector<20x128xf32>
    %96 = vector.extract_strided_slice %16 {offsets = [0, 96], sizes = [20, 32], strides = [1, 1]} : vector<20x128xbf16> to vector<20x32xbf16>
    %97 = vector.shape_cast %96 : vector<20x32xbf16> to vector<4x5x32xbf16>
    %98 = vector.extract_strided_slice %18 {offsets = [0, 96], sizes = [20, 32], strides = [1, 1]} : vector<20x128xbf16> to vector<20x32xbf16>
    %99 = vector.shape_cast %98 : vector<20x32xbf16> to vector<4x5x32xbf16>
    %100 = vector.extract_strided_slice %20 {offsets = [0, 96], sizes = [20, 32], strides = [1, 1]} : vector<20x128xbf16> to vector<20x32xbf16>
    %101 = vector.shape_cast %100 : vector<20x32xbf16> to vector<4x5x32xbf16>
    "tpu.trace_start"() <{level = 10 : i32, message = "bqd,bkd->bqk"}> : () -> ()
    %cst_29 = arith.constant dense<0.000000e+00> : vector<4x5x5xf32>
    %102 = tpu.matmul %97, %99, %cst_29 {dimension_numbers = #tpu.dot_dimension_numbers<[2], [2], [1], [1], [0, 0, 0, 1, 1, 1], [0], [0]>} : vector<4x5x32xbf16>, vector<4x5x32xbf16>, vector<4x5x5xf32> -> vector<4x5x5xf32>
    "tpu.trace_stop"() : () -> ()
    %cst_30 = arith.constant dense<0xFF800000> : vector<4x5xf32>
    %103 = vector.multi_reduction <maximumf>, %102, %cst_30 [2] : vector<4x5x5xf32> to vector<4x5xf32>
    %104 = vector.shape_cast %103 : vector<4x5xf32> to vector<4x5x1xf32>
    %105 = vector.broadcast %104 : vector<4x5x1xf32> to vector<4x5x5xf32>
    %106 = arith.subf %102, %105 : vector<4x5x5xf32>
    %107 = math.exp %106 : vector<4x5x5xf32>
    %cst_31 = arith.constant dense<0.000000e+00> : vector<4x5xf32>
    %108 = vector.multi_reduction <add>, %107, %cst_31 [2] : vector<4x5x5xf32> to vector<4x5xf32>
    %109 = vector.shape_cast %108 : vector<4x5xf32> to vector<4x5x1xf32>
    %110 = tpu.reciprocal %109 {approx = true} : vector<4x5x1xf32> -> vector<4x5x1xf32>
    %111 = vector.broadcast %110 : vector<4x5x1xf32> to vector<4x5x5xf32>
    %112 = arith.mulf %107, %111 : vector<4x5x5xf32>
    %113 = arith.truncf %112 : vector<4x5x5xf32> to vector<4x5x5xbf16>
    "tpu.trace_start"() <{level = 10 : i32, message = "bqk,bkd->bqd"}> : () -> ()
    %cst_32 = arith.constant dense<0.000000e+00> : vector<4x5x32xf32>
    %114 = tpu.matmul %113, %101, %cst_32 {dimension_numbers = #tpu.dot_dimension_numbers<[2], [1], [1], [2], [0, 0, 0, 1, 1, 2], [0], [0]>} : vector<4x5x5xbf16>, vector<4x5x32xbf16>, vector<4x5x32xf32> -> vector<4x5x32xf32>
    "tpu.trace_stop"() : () -> ()
    %115 = vector.shape_cast %114 : vector<4x5x32xf32> to vector<20x32xf32>
    %116 = arith.truncf %115 : vector<20x32xf32> to vector<20x32xbf16>
    %117 = vector.extract_strided_slice %22 {offsets = [96, 0], sizes = [32, 128], strides = [1, 1]} : vector<128x128xbf16> to vector<32x128xbf16>
    %cst_33 = arith.constant dense<0.000000e+00> : vector<20x128xf32>
    %118 = tpu.matmul %116, %117, %cst_33 {dimension_numbers = #tpu.dot_dimension_numbers<[1], [0], [0], [1], [0, 0, 1, 1], [], []>} : vector<20x32xbf16>, vector<32x128xbf16>, vector<20x128xf32> -> vector<20x128xf32>
    %119 = arith.addf %95, %118 : vector<20x128xf32>
    %c0_34 = arith.constant 0 : index
    %c0_35 = arith.constant 0 : index
    %c0_36 = arith.constant 0 : index
    %120 = vector.load %arg6[%c0_34, %c0_35, %c0_36] : memref<1x1x128xf32, #tpu.memory_space<vmem>>, vector<1x1x128xf32>
    %121 = vector.shape_cast %120 : vector<1x1x128xf32> to vector<1x128xf32>
    %122 = vector.broadcast %121 : vector<1x128xf32> to vector<20x128xf32>
    %123 = arith.addf %119, %122 : vector<20x128xf32>
    %124 = arith.addf %4, %123 : vector<20x128xf32>
    %c0_37 = arith.constant 0 : index
    %c0_38 = arith.constant 0 : index
    %c0_39 = arith.constant 0 : index
    %125 = vector.load %arg7[%c0_37, %c0_38, %c0_39] : memref<1x1x128xf32, #tpu.memory_space<vmem>>, vector<1x1x128xf32>
    %126 = vector.shape_cast %125 : vector<1x1x128xf32> to vector<1x128xf32>
    %c0_40 = arith.constant 0 : index
    %c0_41 = arith.constant 0 : index
    %c0_42 = arith.constant 0 : index
    %127 = vector.load %arg8[%c0_40, %c0_41, %c0_42] : memref<1x1x128xf32, #tpu.memory_space<vmem>>, vector<1x1x128xf32>
    %128 = vector.shape_cast %127 : vector<1x1x128xf32> to vector<1x128xf32>
    %cst_43 = arith.constant dense<0.000000e+00> : vector<20xf32>
    %129 = vector.multi_reduction <add>, %124, %cst_43 [1] : vector<20x128xf32> to vector<20xf32>
    %130 = vector.shape_cast %129 : vector<20xf32> to vector<20x1xf32>
    %cst_44 = arith.constant 1.280000e+02 : f32
    %131 = vector.broadcast %cst_44 : f32 to vector<20x1xf32>
    %132 = arith.divf %130, %131 : vector<20x1xf32>
    %133 = vector.broadcast %132 : vector<20x1xf32> to vector<20x128xf32>
    %134 = arith.subf %124, %133 : vector<20x128xf32>
    %135 = arith.mulf %134, %134 : vector<20x128xf32>
    %cst_45 = arith.constant dense<0.000000e+00> : vector<20xf32>
    %136 = vector.multi_reduction <add>, %135, %cst_45 [1] : vector<20x128xf32> to vector<20xf32>
    %137 = vector.shape_cast %136 : vector<20xf32> to vector<20x1xf32>
    %cst_46 = arith.constant 1.280000e+02 : f32
    %138 = vector.broadcast %cst_46 : f32 to vector<20x1xf32>
    %139 = arith.divf %137, %138 : vector<20x1xf32>
    %cst_47 = arith.constant 9.99999974E-6 : f32
    %140 = vector.broadcast %cst_47 : f32 to vector<20x1xf32>
    %141 = arith.addf %139, %140 : vector<20x1xf32>
    %142 = math.rsqrt %141 : vector<20x1xf32>
    %143 = vector.broadcast %142 : vector<20x1xf32> to vector<20x128xf32>
    %144 = arith.mulf %134, %143 : vector<20x128xf32>
    %145 = vector.broadcast %126 : vector<1x128xf32> to vector<20x128xf32>
    %146 = arith.mulf %144, %145 : vector<20x128xf32>
    %147 = vector.broadcast %128 : vector<1x128xf32> to vector<20x128xf32>
    %148 = arith.addf %146, %147 : vector<20x128xf32>
    %149 = arith.truncf %148 : vector<20x128xf32> to vector<20x128xbf16>
    %c0_48 = arith.constant 0 : index
    %c0_49 = arith.constant 0 : index
    %c0_50 = arith.constant 0 : index
    %150 = vector.load %arg9[%c0_48, %c0_49, %c0_50] : memref<1x128x256xbf16, #tpu.memory_space<vmem>>, vector<1x128x256xbf16>
    %151 = vector.shape_cast %150 : vector<1x128x256xbf16> to vector<128x256xbf16>
    %cst_51 = arith.constant dense<0.000000e+00> : vector<20x256xf32>
    %152 = tpu.matmul %149, %151, %cst_51 {dimension_numbers = #tpu.dot_dimension_numbers<[1], [0], [0], [1], [0, 0, 1, 1], [], []>} : vector<20x128xbf16>, vector<128x256xbf16>, vector<20x256xf32> -> vector<20x256xf32>
    %c0_52 = arith.constant 0 : index
    %c0_53 = arith.constant 0 : index
    %c0_54 = arith.constant 0 : index
    %153 = vector.load %arg10[%c0_52, %c0_53, %c0_54] : memref<1x1x256xf32, #tpu.memory_space<vmem>>, vector<1x1x256xf32>
    %154 = vector.shape_cast %153 : vector<1x1x256xf32> to vector<1x256xf32>
    %155 = vector.broadcast %154 : vector<1x256xf32> to vector<20x256xf32>
    %156 = arith.addf %152, %155 : vector<20x256xf32>
    %cst_55 = arith.constant 0.000000e+00 : f32
    %157 = vector.broadcast %cst_55 : f32 to vector<20x256xf32>
    %158 = arith.maximumf %156, %157 : vector<20x256xf32>
    %159 = arith.truncf %158 : vector<20x256xf32> to vector<20x256xbf16>
    %c0_56 = arith.constant 0 : index
    %c0_57 = arith.constant 0 : index
    %c0_58 = arith.constant 0 : index
    %160 = vector.load %arg11[%c0_56, %c0_57, %c0_58] : memref<1x256x128xbf16, #tpu.memory_space<vmem>>, vector<1x256x128xbf16>
    %161 = vector.shape_cast %160 : vector<1x256x128xbf16> to vector<256x128xbf16>
    %cst_59 = arith.constant dense<0.000000e+00> : vector<20x128xf32>
    %162 = tpu.matmul %159, %161, %cst_59 {dimension_numbers = #tpu.dot_dimension_numbers<[1], [0], [0], [1], [0, 0, 1, 1], [], []>} : vector<20x256xbf16>, vector<256x128xbf16>, vector<20x128xf32> -> vector<20x128xf32>
    %c0_60 = arith.constant 0 : index
    %c0_61 = arith.constant 0 : index
    %c0_62 = arith.constant 0 : index
    %163 = vector.load %arg12[%c0_60, %c0_61, %c0_62] : memref<1x1x128xf32, #tpu.memory_space<vmem>>, vector<1x1x128xf32>
    %164 = vector.shape_cast %163 : vector<1x1x128xf32> to vector<1x128xf32>
    %165 = vector.broadcast %164 : vector<1x128xf32> to vector<20x128xf32>
    %166 = arith.addf %162, %165 : vector<20x128xf32>
    %167 = arith.addf %148, %166 : vector<20x128xf32>
    %c0_63 = arith.constant 0 : index
    %c0_64 = arith.constant 0 : index
    %c0_65 = arith.constant 0 : index
    %168 = vector.load %arg13[%c0_63, %c0_64, %c0_65] : memref<1x1x128xf32, #tpu.memory_space<vmem>>, vector<1x1x128xf32>
    %169 = vector.shape_cast %168 : vector<1x1x128xf32> to vector<1x128xf32>
    %c0_66 = arith.constant 0 : index
    %c0_67 = arith.constant 0 : index
    %c0_68 = arith.constant 0 : index
    %170 = vector.load %arg14[%c0_66, %c0_67, %c0_68] : memref<1x1x128xf32, #tpu.memory_space<vmem>>, vector<1x1x128xf32>
    %171 = vector.shape_cast %170 : vector<1x1x128xf32> to vector<1x128xf32>
    %cst_69 = arith.constant dense<0.000000e+00> : vector<20xf32>
    %172 = vector.multi_reduction <add>, %167, %cst_69 [1] : vector<20x128xf32> to vector<20xf32>
    %173 = vector.shape_cast %172 : vector<20xf32> to vector<20x1xf32>
    %cst_70 = arith.constant 1.280000e+02 : f32
    %174 = vector.broadcast %cst_70 : f32 to vector<20x1xf32>
    %175 = arith.divf %173, %174 : vector<20x1xf32>
    %176 = vector.broadcast %175 : vector<20x1xf32> to vector<20x128xf32>
    %177 = arith.subf %167, %176 : vector<20x128xf32>
    %178 = arith.mulf %177, %177 : vector<20x128xf32>
    %cst_71 = arith.constant dense<0.000000e+00> : vector<20xf32>
    %179 = vector.multi_reduction <add>, %178, %cst_71 [1] : vector<20x128xf32> to vector<20xf32>
    %180 = vector.shape_cast %179 : vector<20xf32> to vector<20x1xf32>
    %cst_72 = arith.constant 1.280000e+02 : f32
    %181 = vector.broadcast %cst_72 : f32 to vector<20x1xf32>
    %182 = arith.divf %180, %181 : vector<20x1xf32>
    %cst_73 = arith.constant 9.99999974E-6 : f32
    %183 = vector.broadcast %cst_73 : f32 to vector<20x1xf32>
    %184 = arith.addf %182, %183 : vector<20x1xf32>
    %185 = math.rsqrt %184 : vector<20x1xf32>
    %186 = vector.broadcast %185 : vector<20x1xf32> to vector<20x128xf32>
    %187 = arith.mulf %177, %186 : vector<20x128xf32>
    %188 = vector.broadcast %169 : vector<1x128xf32> to vector<20x128xf32>
    %189 = arith.mulf %187, %188 : vector<20x128xf32>
    %190 = vector.broadcast %171 : vector<1x128xf32> to vector<20x128xf32>
    %191 = arith.addf %189, %190 : vector<20x128xf32>
    %192 = vector.shape_cast %191 : vector<20x128xf32> to vector<4x5x128xf32>
    %c0_74 = arith.constant 0 : index
    %c0_75 = arith.constant 0 : index
    %c0_76 = arith.constant 0 : index
    %193 = vector.load %arg20[%c0_74, %c0_75, %c0_76] : memref<4x5x128xf32, #tpu.memory_space<vmem>>, vector<4x5x128xf32>
    tpu.vector_store %arg20[%c0_74, %c0_75, %c0_76], %192 {strides = array<i32>} : memref<4x5x128xf32, #tpu.memory_space<vmem>>, vector<4x5x128xf32>,
    %c1_i32 = arith.constant 1 : i32
    %194 = arith.cmpi eq, %arg1, %c1_i32 : i32
    %195 = arith.extui %194 : i1 to i32
    %c0_i32_77 = arith.constant 0 : i32
    %196 = arith.cmpi ne, %195, %c0_i32_77 : i32
    scf.if %196 {
      %197 = vector.shape_cast %191 : vector<20x128xf32> to vector<4x5x128xf32>
      %198 = vector.extract_strided_slice %197 {offsets = [0, 0, 0], sizes = [4, 1, 128], strides = [1, 1, 1]} : vector<4x5x128xf32> to vector<4x1x128xf32>
      %199 = vector.shape_cast %198 : vector<4x1x128xf32> to vector<4x128xf32>
      %200 = arith.truncf %199 : vector<4x128xf32> to vector<4x128xbf16>
      %c0_78 = arith.constant 0 : index
      %c0_79 = arith.constant 0 : index
      %201 = vector.load %arg15[%c0_78, %c0_79] : memref<128x128xbf16, #tpu.memory_space<vmem>>, vector<128x128xbf16>
      %cst_80 = arith.constant dense<0.000000e+00> : vector<4x128xf32>
      %202 = tpu.matmul %200, %201, %cst_80 {dimension_numbers = #tpu.dot_dimension_numbers<[1], [0], [0], [1], [0, 0, 1, 1], [], []>} : vector<4x128xbf16>, vector<128x128xbf16>, vector<4x128xf32> -> vector<4x128xf32>
      %c0_81 = arith.constant 0 : index
      %c0_82 = arith.constant 0 : index
      %203 = vector.load %arg16[%c0_81, %c0_82] : memref<1x128xf32, #tpu.memory_space<vmem>>, vector<1x128xf32>
      %204 = vector.broadcast %203 : vector<1x128xf32> to vector<4x128xf32>
      %205 = arith.addf %202, %204 : vector<4x128xf32>
      %c0_83 = arith.constant 0 : index
      %c0_84 = arith.constant 0 : index
      %206 = vector.load %arg17[%c0_83, %c0_84] : memref<1x128xf32, #tpu.memory_space<vmem>>, vector<1x128xf32>
      %c0_85 = arith.constant 0 : index
      %c0_86 = arith.constant 0 : index
      %207 = vector.load %arg18[%c0_85, %c0_86] : memref<1x128xf32, #tpu.memory_space<vmem>>, vector<1x128xf32>
      %cst_87 = arith.constant dense<0.000000e+00> : vector<4xf32>
      %208 = vector.multi_reduction <add>, %205, %cst_87 [1] : vector<4x128xf32> to vector<4xf32>
      %209 = vector.shape_cast %208 : vector<4xf32> to vector<4x1xf32>
      %cst_88 = arith.constant 1.280000e+02 : f32
      %210 = vector.broadcast %cst_88 : f32 to vector<4x1xf32>
      %211 = arith.divf %209, %210 : vector<4x1xf32>
      %212 = vector.broadcast %211 : vector<4x1xf32> to vector<4x128xf32>
      %213 = arith.subf %205, %212 : vector<4x128xf32>
      %214 = arith.mulf %213, %213 : vector<4x128xf32>
      %cst_89 = arith.constant dense<0.000000e+00> : vector<4xf32>
      %215 = vector.multi_reduction <add>, %214, %cst_89 [1] : vector<4x128xf32> to vector<4xf32>
      %216 = vector.shape_cast %215 : vector<4xf32> to vector<4x1xf32>
      %cst_90 = arith.constant 1.280000e+02 : f32
      %217 = vector.broadcast %cst_90 : f32 to vector<4x1xf32>
      %218 = arith.divf %216, %217 : vector<4x1xf32>
      %cst_91 = arith.constant 9.99999974E-6 : f32
      %219 = vector.broadcast %cst_91 : f32 to vector<4x1xf32>
      %220 = arith.addf %218, %219 : vector<4x1xf32>
      %221 = math.rsqrt %220 : vector<4x1xf32>
      %222 = vector.broadcast %221 : vector<4x1xf32> to vector<4x128xf32>
      %223 = arith.mulf %213, %222 : vector<4x128xf32>
      %224 = vector.broadcast %206 : vector<1x128xf32> to vector<4x128xf32>
      %225 = arith.mulf %223, %224 : vector<4x128xf32>
      %226 = vector.broadcast %207 : vector<1x128xf32> to vector<4x128xf32>
      %227 = arith.addf %225, %226 : vector<4x128xf32>
      %c0_92 = arith.constant 0 : index
      %c0_93 = arith.constant 0 : index
      %c0_94 = arith.constant 0 : index
      %228 = vector.load %arg19[%c0_92, %c0_93, %c0_94] : memref<1x4x128xf32, #tpu.memory_space<vmem>>, vector<1x4x128xf32>
      %229 = vector.shape_cast %228 : vector<1x4x128xf32> to vector<4x128xf32>
      %230 = vector.shape_cast %227 : vector<4x128xf32> to vector<1x4x128xf32>
      tpu.vector_store %arg19[%c0_92, %c0_93, %c0_94], %230 {strides = array<i32>} : memref<1x4x128xf32, #tpu.memory_space<vmem>>, vector<1x4x128xf32>,
    } else {
    }
    return
  }
  func.func @transform_0(%arg0: i32, %arg1: i32) -> (i32, i32, i32) {
    %c0_i32 = arith.constant 0 : i32
    %c0_i32_0 = arith.constant 0 : i32
    %c0_i32_1 = arith.constant 0 : i32
    return %arg0, %c0_i32, %c0_i32_0 : i32, i32, i32
  }
  func.func @transform_1(%arg0: i32, %arg1: i32) -> (i32, i32, i32) {
    %c0_i32 = arith.constant 0 : i32
    %c0_i32_0 = arith.constant 0 : i32
    %c0_i32_1 = arith.constant 0 : i32
    return %arg1, %c0_i32, %c0_i32_0 : i32, i32, i32
  }
  func.func @transform_2(%arg0: i32, %arg1: i32) -> (i32, i32, i32) {
    %c0_i32 = arith.constant 0 : i32
    %c0_i32_0 = arith.constant 0 : i32
    %c0_i32_1 = arith.constant 0 : i32
    return %arg1, %c0_i32, %c0_i32_0 : i32, i32, i32
  }
  func.func @transform_3(%arg0: i32, %arg1: i32) -> (i32, i32, i32) {
    %c0_i32 = arith.constant 0 : i32
    %c0_i32_0 = arith.constant 0 : i32
    %c0_i32_1 = arith.constant 0 : i32
    return %arg1, %c0_i32, %c0_i32_0 : i32, i32, i32
  }
  func.func @transform_4(%arg0: i32, %arg1: i32) -> (i32, i32, i32) {
    %c0_i32 = arith.constant 0 : i32
    %c0_i32_0 = arith.constant 0 : i32
    %c0_i32_1 = arith.constant 0 : i32
    return %arg1, %c0_i32, %c0_i32_0 : i32, i32, i32
  }
  func.func @transform_5(%arg0: i32, %arg1: i32) -> (i32, i32, i32) {
    %c0_i32 = arith.constant 0 : i32
    %c0_i32_0 = arith.constant 0 : i32
    %c0_i32_1 = arith.constant 0 : i32
    return %arg1, %c0_i32, %c0_i32_0 : i32, i32, i32
  }
  func.func @transform_6(%arg0: i32, %arg1: i32) -> (i32, i32, i32) {
    %c0_i32 = arith.constant 0 : i32
    %c0_i32_0 = arith.constant 0 : i32
    %c0_i32_1 = arith.constant 0 : i32
    return %arg1, %c0_i32, %c0_i32_0 : i32, i32, i32
  }
  func.func @transform_7(%arg0: i32, %arg1: i32) -> (i32, i32, i32) {
    %c0_i32 = arith.constant 0 : i32
    %c0_i32_0 = arith.constant 0 : i32
    %c0_i32_1 = arith.constant 0 : i32
    return %arg1, %c0_i32, %c0_i32_0 : i32, i32, i32
  }
  func.func @transform_8(%arg0: i32, %arg1: i32) -> (i32, i32, i32) {
    %c0_i32 = arith.constant 0 : i32
    %c0_i32_0 = arith.constant 0 : i32
    %c0_i32_1 = arith.constant 0 : i32
    return %arg1, %c0_i32, %c0_i32_0 : i32, i32, i32
  }
  func.func @transform_9(%arg0: i32, %arg1: i32) -> (i32, i32, i32) {
    %c0_i32 = arith.constant 0 : i32
    %c0_i32_0 = arith.constant 0 : i32
    %c0_i32_1 = arith.constant 0 : i32
    return %arg1, %c0_i32, %c0_i32_0 : i32, i32, i32
  }
  func.func @transform_10(%arg0: i32, %arg1: i32) -> (i32, i32, i32) {
    %c0_i32 = arith.constant 0 : i32
    %c0_i32_0 = arith.constant 0 : i32
    %c0_i32_1 = arith.constant 0 : i32
    return %arg1, %c0_i32, %c0_i32_0 : i32, i32, i32
  }
  func.func @transform_11(%arg0: i32, %arg1: i32) -> (i32, i32, i32) {
    %c0_i32 = arith.constant 0 : i32
    %c0_i32_0 = arith.constant 0 : i32
    %c0_i32_1 = arith.constant 0 : i32
    return %arg1, %c0_i32, %c0_i32_0 : i32, i32, i32
  }
  func.func @transform_12(%arg0: i32, %arg1: i32) -> (i32, i32, i32) {
    %c0_i32 = arith.constant 0 : i32
    %c0_i32_0 = arith.constant 0 : i32
    %c0_i32_1 = arith.constant 0 : i32
    return %arg1, %c0_i32, %c0_i32_0 : i32, i32, i32
  }
  func.func @transform_13(%arg0: i32, %arg1: i32) -> (i32, i32) {
    %c0_i32 = arith.constant 0 : i32
    %c0_i32_0 = arith.constant 0 : i32
    %c0_i32_1 = arith.constant 0 : i32
    return %c0_i32, %c0_i32_0 : i32, i32
  }
  func.func @transform_14(%arg0: i32, %arg1: i32) -> (i32, i32) {
    %c0_i32 = arith.constant 0 : i32
    %c0_i32_0 = arith.constant 0 : i32
    %c0_i32_1 = arith.constant 0 : i32
    return %c0_i32, %c0_i32_0 : i32, i32
  }
  func.func @transform_15(%arg0: i32, %arg1: i32) -> (i32, i32) {
    %c0_i32 = arith.constant 0 : i32
    %c0_i32_0 = arith.constant 0 : i32
    %c0_i32_1 = arith.constant 0 : i32
    return %c0_i32, %c0_i32_0 : i32, i32
  }
  func.func @transform_16(%arg0: i32, %arg1: i32) -> (i32, i32) {
    %c0_i32 = arith.constant 0 : i32
    %c0_i32_0 = arith.constant 0 : i32
    %c0_i32_1 = arith.constant 0 : i32
    return %c0_i32, %c0_i32_0 : i32, i32
  }
  func.func @transform_17(%arg0: i32, %arg1: i32) -> (i32, i32, i32) {
    %c0_i32 = arith.constant 0 : i32
    %c0_i32_0 = arith.constant 0 : i32
    %c0_i32_1 = arith.constant 0 : i32
    return %arg0, %c0_i32, %c0_i32_0 : i32, i32, i32
  }
}

</mosaic_0001>

<bundles_post_ra>
// kernel: combined_forward.2
= control target key start
LH: loop header
LB: loop body
LE: loop exit
PB: predicated region body
PF: predicated region fallthrough
CT: control target
= control target key end

     0   :  { %s1194_s18 = smov 0   ;;  %s1414_s0 = inlined_call_operand.vmem [shape: f32[8,4,768], index: 0, kind: input, shape index: {}]   ;;  %s1415_s1 = inlined_call_operand.vmem [shape: bf16[768,128], index: 1, kind: input, shape index: {}]   ;;  %s1416_s2 = inlined_call_operand.vmem [shape: f32[1,128], index: 2, kind: input, shape index: {}]   ;;  %s1417_s3 = inlined_call_operand.vmem [shape: f32[4,128], index: 3, kind: input, shape index: {}]   ;;  %s1418_s4 = inlined_call_operand.vmem [shape: f32[1,128], index: 4, kind: input, shape index: {}]   ;;  %s1419_s5 = inlined_call_operand.vmem [shape: bf16[8,5,128], index: 5, kind: output, shape index: {}]  }
   0x1 LB: > { %s947_s19 = sadd.s32 4294967295, %s1162_s18   ;;  %p951_p0 = scmp.ge.s32.totalorder %s1162_s18, 1  ;;  %s1162_s18 = sphi %s1194_s18, %s15_s18  }
   0x2   : > { %p189_p1 = scmp.lt.s32.totalorder %s1162_s18, 3 }
   0x4   : > { %p190_p2 = pnand %p951_p0, %p189_p1 }
   0x5   : > { %s952_s27 = sshll.u32 (!%p190_p2), %s947_s19, 2 }
   0x6   : > { %193 = sbr.rel (%p190_p2) target bundleno = 303 (0x12f), region = 40  ;;  %p219_p3 = scmp.lt.s32.totalorder (!%p190_p2), %s952_s27, 7 }
   0xb   : > { %v1090_v0 = vld [vmem:[%s1415_s1 + $0x78] sm:$0xff]   ;;  %v1094_v4 = vld [vmem:[%s1415_s1 + $0x70] sm:$0xff]   ;;  %v1098_v8 = vld [vmem:[%s1415_s1 + $0x68] sm:$0xff]   ;;  %s1423_s27 = smov (!%p219_p3, %s952_s27), 7  ;;  %vm859_vm0 = vcmask 1042432   ;;  %vm876_vm3 = vcmask 1040384  }
   0xc   : > { %v1091_v1 = vld [vmem:[%s1415_s1 + $0x38] sm:$0xff]   ;;  %1015 = vmatprep.subr.bf16.mxu0 %v1090_v0  ;;  %v1095_v5 = vld [vmem:[%s1415_s1 + $0x30] sm:$0xff]   ;;  %v1099_v9 = vld [vmem:[%s1415_s1 + $0x28] sm:$0xff]   ;;  %s1081_s26 = smul.u32 24, %s1423_s27  ;;  %s955_s8 = sshll.u32 %s1423_s27, 2 }
   0xd   : > { %v1092_v2 = vld [vmem:[%s1415_s1 + $0xf8] sm:$0xff]   ;;  %1016 = vmatpush3.bf16.msra.mxu0 %v1091_v1  ;;  %v1096_v6 = vld [vmem:[%s1415_s1 + $0xf0] sm:$0xff]   ;;  %v1100_v10 = vld [vmem:[%s1415_s1 + $0xe8] sm:$0xff]   ;;  %s1378_s19 = scalar_lea.vmem %s1419_s5, %s955_s8  ;;  %vm860_vm1 = vsmask.f32 2306 }
   0xe   : > { %v1093_v3 = vld [vmem:[%s1415_s1 + $0xb8] sm:$0xff]   ;;  %1037 = vmatprep.subr.bf16.mxu1 %v1092_v2  ;;  %1017 = vmatprep.subr.bf16.mxu0 %v1094_v4  ;;  %v1097_v7 = vld [vmem:[%s1415_s1 + $0xb0] sm:$0xff]   ;;  %v1101_v11 = vld [vmem:[%s1415_s1 + $0xa8] sm:$0xff]   ;;  %s1300_s12 = scalar_lea.vmem %s1414_s0, %s1081_s26  ;;  %vm877_vm4 = vsmask.f32 256 }
   0xf   : > { %1038 = vmatpush3.bf16.msra.mxu1 %v1093_v3  ;;  %v1102_v12 = vld [vmem:[%s1415_s1 + $0x60] sm:$0xff]   ;;  %v1106_v16 = vld [vmem:[%s1415_s1 + $0x58] sm:$0xff]   ;;  %v1110_v20 = vld [vmem:[%s1415_s1 + $0x50] sm:$0xff]  }
  0x10   : > { %1039 = vmatprep.subr.bf16.mxu1 %v1096_v6  ;;  %v1103_v13 = vld [vmem:[%s1415_s1 + $0x20] sm:$0xff]   ;;  %v1107_v17 = vld [vmem:[%s1415_s1 + $0x18] sm:$0xff]   ;;  %v1111_v21 = vld [vmem:[%s1415_s1 + $0x10] sm:$0xff]  }
  0x11   : > { %1018 = vmatpush3.bf16.msra.mxu0 %v1095_v5  ;;  %v1104_v14 = vld [vmem:[%s1415_s1 + $0xe0] sm:$0xff]   ;;  %v1108_v18 = vld [vmem:[%s1415_s1 + $0xd8] sm:$0xff]   ;;  %v1112_v22 = vld [vmem:[%s1415_s1 + $0xd0] sm:$0xff]  }
  0x12   : > { %1019 = vmatprep.subr.bf16.mxu0 %v1098_v8  ;;  %v1105_v15 = vld [vmem:[%s1415_s1 + $0xa0] sm:$0xff]   ;;  %v1109_v19 = vld [vmem:[%s1415_s1 + $0x98] sm:$0xff]   ;;  %v1113_v23 = vld [vmem:[%s1415_s1 + $0x90] sm:$0xff]  }
  0x13   : > { %1040 = vmatpush3.bf16.msra.mxu1 %v1097_v7  ;;  %v1114_v24 = vld [vmem:[%s1415_s1 + $0x48] sm:$0xff]   ;;  %v1118_v28 = vld [vmem:[%s1415_s1 + $0x40] sm:$0xff]   ;;  %v1128_v38 = vld [vmem:[%s1415_s1 + $0x178] sm:$0xff]  }
  0x14   : > { %1041 = vmatprep.subr.bf16.mxu1 %v1100_v10  ;;  %v1115_v25 = vld [vmem:[%s1415_s1 + $0x8] sm:$0xff]   ;;  %v1119_v29 = vld [vmem:[%s1415_s1] sm:$0xff]   ;;  %v1132_v41 = vld [vmem:[%s1300_s12 + $0x38] ss:$24 sps:$4 sm:$0xff]  }
  0x15   : > { %1020 = vmatpush3.bf16.msra.mxu0 %v1099_v9  ;;  %v1116_v26 = vld [vmem:[%s1415_s1 + $0xc8] sm:$0xff]   ;;  %v1120_v30 = vld [vmem:[%s1415_s1 + $0xc0] sm:$0xff]   ;;  %v1134_v42 = vld [vmem:[%s1300_s12 + $0x3c] ss:$24 sps:$4 sm:$0xff]  }
  0x16   : > { %1021 = vmatprep.subr.bf16.mxu0 %v1102_v12  ;;  %v1117_v27 = vld [vmem:[%s1415_s1 + $0x88] sm:$0xff]   ;;  %v1121_v31 = vld [vmem:[%s1300_s12] ss:$24 sps:$4 sm:$0xff]   ;;  %v1123_v32 = vld [vmem:[%s1300_s12 + $0x4] ss:$24 sps:$4 sm:$0xff]  }
  0x17   : > { %1042 = vmatpush3.bf16.msra.mxu1 %v1101_v11  ;;  %v1124_v33 = vld [vmem:[%s1300_s12 + $0x30] ss:$24 sps:$4 sm:$0xff]   ;;  %v1126_v34 = vld [vmem:[%s1300_s12 + $0x34] ss:$24 sps:$4 sm:$0xff]   ;;  %v1127_v35 = vld [vmem:[%s1415_s1 + $0x80] sm:$0xff]  }
  0x18   : > { %1043 = vmatprep.subr.bf16.mxu1 %v1104_v14  ;;  %v281_v36 = vpack.c.bf16 %v1126_v34, %v1123_v32  ;;  %v280_v37 = vpack.c.bf16 %v1124_v33, %v1121_v31  ;;  %v1129_v39 = vld [vmem:[%s1300_s12 + $0x8] ss:$24 sps:$4 sm:$0xff]   ;;  %v1131_v40 = vld [vmem:[%s1300_s12 + $0xc] ss:$24 sps:$4 sm:$0xff]   ;;  %v1135_v43 = vld [vmem:[%s1415_s1 + $0x138] sm:$0xff]  }
  0x19   : > { %1022 = vmatpush3.bf16.msra.mxu0 %v1103_v13  ;;  %v282_v44 = vpack.c.bf16 %v1132_v41, %v1129_v39  ;;  %v283_v45 = vpack.c.bf16 %v1134_v42, %v1131_v40  ;;  %v1136_v46 = vld [vmem:[%s1415_s1 + $0x170] sm:$0xff]   ;;  %v1138_v48 = vld [vmem:[%s1415_s1 + $0x168] sm:$0xff]   ;;  %v1140_v50 = vld [vmem:[%s1415_s1 + $0x160] sm:$0xff]  }
  0x1a   : > { %1023 = vmatprep.subr.bf16.mxu0 %v1106_v16  ;;  %709 = vmatprep.mubr.bf16.mxu0 %v281_v36  ;;  %v1137_v47 = vld [vmem:[%s1415_s1 + $0x130] sm:$0xff]   ;;  %v1139_v49 = vld [vmem:[%s1415_s1 + $0x128] sm:$0xff]   ;;  %v1141_v51 = vld [vmem:[%s1415_s1 + $0x120] sm:$0xff]  }
  0x1b   : > { %1044 = vmatpush3.bf16.msra.mxu1 %v1105_v15  ;;  %750 = vmatprep.mubr.bf16.mxu1 %v283_v45  ;;  %v1142_v52 = vld [vmem:[%s1415_s1 + $0x158] sm:$0xff]   ;;  %v1144_v54 = vld [vmem:[%s1415_s1 + $0x150] sm:$0xff]   ;;  %v1146_v59 = vld [vmem:[%s1415_s1 + $0x148] sm:$0xff]  }
  0x1c   : > { %1045 = vmatprep.subr.bf16.mxu1 %v1108_v18  ;;  %v1143_v53 = vld [vmem:[%s1415_s1 + $0x118] sm:$0xff]   ;;  %v1152_v55 = vld [vmem:[%s1300_s12 + $0x14] ss:$24 sps:$4 sm:$0xff]   ;;  %v1148_v61 = vld [vmem:[%s1415_s1 + $0x140] sm:$0xff]  }
  0x1d   : > { %1024 = vmatpush3.bf16.msra.mxu0 %v1107_v17  ;;  %v1155_v56 = vld [vmem:[%s1300_s12 + $0x44] ss:$24 sps:$4 sm:$0xff]   ;;  %v1145_v57 = vld [vmem:[%s1415_s1 + $0x110] sm:$0xff]   ;;  %v1147_v60 = vld [vmem:[%s1415_s1 + $0x108] sm:$0xff]  }
  0x1e   : > { %1025 = vmatprep.subr.bf16.mxu0 %v1110_v20  ;;  %v285_v58 = vpack.c.bf16 %v1155_v56, %v1152_v55  ;;  %v1150_v62 = vld [vmem:[%s1300_s12 + $0x10] ss:$24 sps:$4 sm:$0xff]   ;;  %v1153_v63 = vld [vmem:[%s1300_s12 + $0x40] ss:$24 sps:$4 sm:$0xff]   ;;  %vm1380_vm2 = vmand %vm859_vm0, %vm860_vm1 }
  0x1f   : > { %1046 = vmatpush3.bf16.msra.mxu1 %v1109_v19  ;;  %v1149_v0 = vld [vmem:[%s1415_s1 + $0x100] sm:$0xff]   ;;  %v284_v1 = vpack.c.bf16 %v1153_v63, %v1150_v62  ;;  %v868_v56 = vld [vmem:[%s1378_s19 + $0x8] sm:$0x7]  ;;  %vm878_vm5 = vmand %vm876_vm3, %vm877_vm4 }
  0x20   : > { %1047 = vmatprep.subr.bf16.mxu1 %v1112_v22  ;;  %v956_v7 = vld [vmem:[%s1416_s2] ss:$0 sm:$0xff] }
  0x21   : > { %1026 = vmatpush3.bf16.msra.mxu0 %v1111_v21  ;;  %v806_v19 = vld [vmem:[%s1417_s3] sm:$0xf] }
  0x22   : > { %1027 = vmatprep.subr.bf16.mxu0 %v1114_v24  ;;  %v874_v63 = vld [vmem:[%s1418_s4] sm:$0x1] }
  0x23   : > { %1048 = vmatpush3.bf16.msra.mxu1 %v1113_v23 }
  0x24   : > { %1049 = vmatprep.subr.bf16.mxu1 %v1116_v26 }
  0x25   : > { %1028 = vmatpush3.bf16.msra.mxu0 %v1115_v25 }
  0x26   : > { %1029 = vmatprep.subr.bf16.mxu0 %v1118_v28 }
  0x27   : > { %1050 = vmatpush3.bf16.msra.mxu1 %v1117_v27 }
  0x28   : > { %1051 = vmatprep.subr.bf16.mxu1 %v1120_v30 }
  0x29   : > { %1030 = vmatpush3.bf16.msra.mxu0 %v1119_v29 }
  0x2a   : > { %1059 = vmatprep.subr.bf16.mxu0 %v1128_v38 }
  0x2b   : > { %1052 = vmatpush3.bf16.msra.mxu1 %v1127_v35 }
  0x2c   : > { %710 = vmatmul.mubr.bf16.vlgmr.msra.gmra.mxu0 %v280_v37  ;;  %v862_v37 = vld [vmem:[%s1378_s19] sm:$0x7] }
  0x2d   : > { %1060 = vmatpush3.bf16.msra.mxu0 %v1135_v43  ;;  %791 = vmatprep.mubr.bf16.mxu0 %v285_v58 }
  0x2e   : > { %1061 = vmatprep.subr.bf16.mxu0 %v1136_v46  ;;  %751 = vmatmul.mubr.bf16.vlgmr.msra.gmra.mxu1 %v282_v44 }
  0x31   : > { %1062 = vmatpush3.bf16.msra.mxu0 %v1137_v47  ;;  %v865_v47 = vld [vmem:[%s1378_s19 + $0x4] sm:$0x7] }
  0x32   : > { %1063 = vmatprep.subr.bf16.mxu0 %v1138_v48 }
  0x35   : > { %1064 = vmatpush3.bf16.msra.mxu0 %v1139_v49 }
  0x36   : > { %1065 = vmatprep.subr.bf16.mxu0 %v1140_v50 }
  0x39   : > { %1066 = vmatpush3.bf16.msra.mxu0 %v1141_v51 }
  0x3a   : > { %1067 = vmatprep.subr.bf16.mxu0 %v1142_v52 }
  0x3d   : > { %1068 = vmatpush3.bf16.msra.mxu0 %v1143_v53 }
  0x3e   : > { %1069 = vmatprep.subr.bf16.mxu0 %v1144_v54 }
  0x41   : > { %1070 = vmatpush3.bf16.msra.mxu0 %v1145_v57 }
  0x42   : > { %1071 = vmatprep.subr.bf16.mxu0 %v1146_v59 }
  0x45   : > { %1072 = vmatpush3.bf16.msra.mxu0 %v1147_v60 }
  0x46   : > { %1073 = vmatprep.subr.bf16.mxu0 %v1148_v61  ;;  %v871_v61 = vld [vmem:[%s1378_s19 + $0xc] sm:$0x7] }
  0x49   : > { %1074 = vmatpush3.bf16.msra.mxu0 %v1149_v0  ;;  %v875_v0 = vpack.c.bf16 %v874_v63, %v874_v63 }
  0x4c   : > { %792 = vmatmul.mubr.bf16.vlgmr.msra.gmra.mxu0 %v284_v1 }
  0xec   : > { %v1031_v2 = vpop.f32.mrf.mxu0 }
  0xee   : > { %v1032_v3 = vpop.f32.mrf.mxu0  ;;  %v1053_v4 = vpop.f32.mrf.mxu1 }
  0xef   : > { %v1033_v6 = vadd.f32 %v1032_v3, %v1031_v2 }
  0xf0   : > { %v1034_v5 = vpop.f32.mrf.mxu0  ;;  %v1054_v8 = vpop.f32.mrf.mxu1 }
  0xf1   : > { %v712_v10 = vadd.f32 %v1033_v6, %v956_v7  ;;  %v1055_v11 = vadd.f32 %v1054_v8, %v1053_v4 }
  0xf2   : > { %v1035_v9 = vpop.f32.mrf.mxu0  ;;  %v1056_v12 = vpop.f32.mrf.mxu1 }
  0xf3   : > { %v753_v15 = vadd.f32 %v1055_v11, %v712_v10  ;;  %v1036_v16 = vadd.f32 %v1035_v9, %v1034_v5 }
  0xf4   : > { %v1057_v18 = vpop.f32.mrf.mxu1 }
  0xf5   : > { %v715_v23 = vadd.f32 %v1036_v16, %v956_v7  ;;  %v1058_v24 = vadd.f32 %v1057_v18, %v1056_v12 }
  0xf7   : > { %v756_v30 = vadd.f32 %v1058_v24, %v715_v23 }
 0x10c   : > { %v1075_v13 = vpop.f32.mrf.mxu0 }
 0x10e   : > { %v1076_v14 = vpop.f32.mrf.mxu0 }
 0x10f   : > { %v1077_v17 = vadd.f32 %v1076_v14, %v1075_v13 }
 0x110   : > { %v1078_v20 = vpop.f32.mrf.mxu0 }
 0x111   : > { %v794_v21 = vadd.f32 %v1077_v17, %v753_v15 }
 0x112   : > { %v1079_v22 = vpop.f32.mrf.mxu0 }
 0x113   : > { %v802_v25 = vcombine.high %v794_v21, %v794_v21  ;;  %v807_v26 = vadd.f32 %v806_v19, %v794_v21  ;;  %v1080_v29 = vadd.f32 %v1079_v22, %v1078_v20 }
 0x115   : > { %v808_v27 = vadd.f32 %v806_v19, %v802_v25  ;;  %v1011_v28 = vpack.c.bf16 %v807_v26, %v807_v26  ;;  %v797_v35 = vadd.f32 %v1080_v29, %v756_v30 }
 0x117   : > { %v828_v31 = vshrl.u32 %v1011_v28, 16  ;;  %v1012_v32 = vpack.c.bf16 %v808_v27, %v808_v27  ;;  %v831_v34 = vshll.u32 %v1011_v28, 16  ;;  %v809_v41 = vadd.f32 %v806_v19, %v797_v35 }
 0x118   : > { %v803_v45 = vcombine.high %v797_v35, %v797_v35 }
 0x119   : > { %v830_v33 = vrot.slane %v828_v31, 7  ;;  %v835_v39 = vshrl.u32 %v1012_v32, 16  ;;  %v1013_v43 = vpack.c.bf16 %v809_v41, %v809_v41  ;;  %v838_v44 = vshll.u32 %v1012_v32, 16 }
 0x11a   : > { %v810_v50 = vadd.f32 %v806_v19, %v803_v45 }
 0x11b   : > { %v833_v38 = vor.u32 %v831_v34, %v830_v33  ;;  %v837_v42 = vrot.slane %v835_v39, 7  ;;  %v842_v48 = vshrl.u32 %v1013_v43, 16  ;;  %v845_v53 = vshll.u32 %v1013_v43, 16 }
 0x11c   : > { %v1014_v52 = vpack.c.bf16 %v810_v50, %v810_v50 }
 0x11d   : > { %v863_v40 = vsel %vm1380_vm2, %v833_v38, %v862_v37  ;;  %v840_v46 = vor.u32 %v838_v44, %v837_v42  ;;  %v844_v51 = vrot.slane %v842_v48, 7 }
 0x11e   : > { %864 = vst [vmem:[%s1378_s19] sm:$0x7] %v863_v40  ;;  %v849_v55 = vshrl.u32 %v1014_v52, 16  ;;  %v852_v59 = vshll.u32 %v1014_v52, 16 }
 0x11f   : > { %v866_v49 = vsel %vm1380_vm2, %v840_v46, %v865_v47  ;;  %v847_v54 = vor.u32 %v845_v53, %v844_v51 }
 0x120   : > { %867 = vst [vmem:[%s1378_s19 + $0x4] sm:$0x7] %v866_v49  ;;  %v851_v58 = vrot.slane %v849_v55, 7 }
 0x121   : > { %v869_v57 = vsel %vm1380_vm2, %v847_v54, %v868_v56 }
 0x122   : > { %870 = vst [vmem:[%s1378_s19 + $0x8] sm:$0x7] %v869_v57  ;;  %v854_v60 = vor.u32 %v852_v59, %v851_v58 }
 0x124   : > { %v872_v62 = vsel %vm1380_vm2, %v854_v60, %v871_v61 }
 0x125   : > { %873 = vst [vmem:[%s1378_s19 + $0xc] sm:$0x7] %v872_v62  ;;  %v879_v1 = vld [vmem:[%s1378_s19] sm:$0x1] }
 0x126   : > { %v880_v2 = vsel %vm878_vm5, %v875_v0, %v879_v1 }
 0x127   : > { %881 = vst [vmem:[%s1378_s19] sm:$0x1] %v880_v2  ;;  %v882_v3 = vld [vmem:[%s1378_s19 + $0x4] sm:$0x1] }
 0x128   : > { %v883_v4 = vsel %vm878_vm5, %v875_v0, %v882_v3 }
 0x129   : > { %884 = vst [vmem:[%s1378_s19 + $0x4] sm:$0x1] %v883_v4  ;;  %v885_v5 = vld [vmem:[%s1378_s19 + $0x8] sm:$0x1] }
 0x12a   : > { %v886_v6 = vsel %vm878_vm5, %v875_v0, %v885_v5 }
 0x12b   : > { %887 = vst [vmem:[%s1378_s19 + $0x8] sm:$0x1] %v886_v6 }
 0x12c   : > { %v888_v7 = vld [vmem:[%s1378_s19 + $0xc] sm:$0x1] }
 0x12d   : > { %v889_v8 = vsel %vm878_vm5, %v875_v0, %v888_v7 }
 0x12e   : > { %890 = vst [vmem:[%s1378_s19 + $0xc] sm:$0x1] %v889_v8 }
 0x12f PF: > { %s15_s18 = sadd.s32 1, %s1162_s18  }
 0x130   : > { %p12_p4 = scmp.ge.s32.totalorder %s15_s18, 4  }
 0x132   :  { %14 = sbr.rel (!%p12_p4) target bundleno = 1 (0x1), region = 70 }

// kernel: combined_forward.3
= control target key start
LH: loop header
LB: loop body
LE: loop exit
PB: predicated region body
PF: predicated region fallthrough
CT: control target
= control target key end

     0   :  { %s11017_s0 = inlined_call_operand.vmem [shape: bf16[8,5,128], index: 0, kind: input, shape index: {}]   ;;  %s11018_s1 = inlined_call_operand.vmem [shape: bf16[2,128,384], index: 1, kind: input, shape index: {}]   ;;  %s11019_s2 = inlined_call_operand.vmem [shape: f32[2,1,384], index: 2, kind: input, shape index: {}]   ;;  %s11020_s3 = inlined_call_operand.vmem [shape: bf16[2,128,128], index: 3, kind: input, shape index: {}]   ;;  %s11021_s4 = inlined_call_operand.vmem [shape: f32[2,1,128], index: 4, kind: input, shape index: {}]   ;;  %s11022_s5 = inlined_call_operand.vmem [shape: f32[2,1,128], index: 5, kind: input, shape index: {}]   ;;  %s11023_s6 = inlined_call_operand.vmem [shape: f32[2,1,128], index: 6, kind: input, shape index: {}]   ;;  %s11024_s7 = inlined_call_operand.vmem [shape: bf16[2,128,256], index: 7, kind: input, shape index: {}]   ;;  %s11025_s8 = inlined_call_operand.vmem [shape: f32[2,1,256], index: 8, kind: input, shape index: {}]   ;;  %s11026_s9 = inlined_call_operand.vmem [shape: bf16[2,256,128], index: 9, kind: input, shape index: {}]   ;;  %s11027_s10 = inlined_call_operand.vmem [shape: f32[2,1,128], index: 10, kind: input, shape index: {}]   ;;  %s11028_s11 = inlined_call_operand.vmem [shape: f32[2,1,128], index: 11, kind: input, shape index: {}]   ;;  %s11029_s12 = inlined_call_operand.vmem [shape: f32[2,1,128], index: 12, kind: input, shape index: {}]   ;;  %s11030_s13 = inlined_call_operand.vmem [shape: bf16[128,128], index: 13, kind: input, shape index: {}]   ;;  %s11031_s14 = inlined_call_operand.vmem [shape: f32[1,128], index: 14, kind: input, shape index: {}]   ;;  %s11032_s15 = inlined_call_operand.vmem [shape: f32[1,128], index: 15, kind: input, shape index: {}]   ;;  %s11033_s16 = inlined_call_operand.vmem [shape: f32[1,128], index: 16, kind: input, shape index: {}]   ;;  %s11034_s17 = inlined_call_operand.hbm [shape: f32[2,4,128], index: 17, kind: output, shape index: {}]  }
   0x1   :  { %11060 = sst [smem:[#allocation23_spill]] %s11017_s0 }
   0x2   :  { %11061 = sst [smem:[#allocation24_spill]] %s11018_s1 }
   0x3   :  { %11062 = sst [smem:[#allocation25_spill]] %s11019_s2 }
   0x4   :  { %11063 = sst [smem:[#allocation26_spill]] %s11020_s3 }
   0x5   :  { %11064 = sst [smem:[#allocation27_spill]] %s11023_s6 }
   0x6   :  { %11065 = sst [smem:[#allocation28_spill]] %s11024_s7 }
   0x7   :  { %11066 = sst [smem:[#allocation29_spill]] %s11029_s12 }
   0x8   :  { %11067 = sst [smem:[#allocation30_spill]] %s11030_s13 }
   0x9   :  { %11068 = sst [smem:[#allocation31_spill]] %s11031_s14 }
   0xa   :  { %11069 = sst [smem:[#allocation32_spill]] %s11032_s15 }
   0xb   :  { %11070 = sst [smem:[#allocation33_spill]] %s11033_s16 }
   0xc   :  { %11071 = sst [smem:[#allocation34_spill]] %s11034_s17 }
   0xd   :  { %22 = vsyncpa [#allocation4], 0 }
   0xe   :  { %24 = vsyncpa [#allocation4 + $0x1], 0  ;;  %s9049_s24 = smov 0   ;;  %s9051_s25 = smov 0  }
   0xf   :  { %s9053_s26 = smov 0   ;;  %s9055_s27 = smov 0  }
  0x10   :  { %s9057_s28 = smov 0   ;;  %s9059_s29 = smov 0  }
  0x11   :  { %s9061_s0 = smov 0   ;;  %s9063_s30 = smov 0  }
  0x12 LB: > { %11072 = sst [smem:[#allocation6_spill]] %s8918_s24  ;;  %s8039_s18 = sadd.s32 4294967295, %s8946_s30   ;;  %s8946_s30 = sphi %s9063_s30, %s30_s30   ;;  %s8942_s0 = sphi %s9061_s0, %s11128_s0   ;;  %s8938_s29 = sphi %s9059_s29, %s11127_s29   ;;  %s8934_s28 = sphi %s9057_s28, %s11126_s28   ;;  %s8930_s27 = sphi %s9055_s27, %s11125_s27   ;;  %s8926_s26 = sphi %s9053_s26, %s11124_s26   ;;  %s8922_s25 = sphi %s9051_s25, %s11123_s25   ;;  %s8918_s24 = sphi %s9049_s24, %s11122_s24  }
  0x13   : > { %11073 = sst [smem:[#allocation7_spill]] %s8922_s25  ;;  %s8040_s19 = sadd.s32 4294967294, %s8946_s30  }
  0x14   : > { %11074 = sst [smem:[#allocation8_spill]] %s8926_s26  ;;  %s39_s1 = sadd.s32 1, %s8938_s29 }
  0x15   : > { %11075 = sst [smem:[#allocation9_spill]] %s8930_s27  ;;  %p40_p0 = scmp.ge.s32.totalorder %s39_s1, 2 }
  0x16   : > { %11076 = sst [smem:[#allocation10_spill]] %s8934_s28  ;;  %s42_s20 = sadd.s32 1, %s8942_s0 }
  0x17   : > { %11077 = sst [smem:[#allocation11_spill]] %s8938_s29  ;;  %p481_p1 = scmp.ne.s32.totalorder %s8926_s26, %s8922_s25 }
  0x18   : > { %11078 = sst [smem:[#allocation12_spill]] %s8942_s0  ;;  %p482_p2 = scmp.eq.s32.totalorder %s8039_s18, 3 }
  0x19   : > { %11079 = sst [smem:[#allocation13_spill]] %s8946_s30  ;;  %s11130_s1 = smov (%p40_p0, %s39_s1), 0 }
  0x1a   : > { %11080 = sst [smem:[#allocation14_spill]] %s11130_s1  ;;  %s11132_s20 = smov (!%p40_p0, %s42_s20), %s8942_s0 }
  0x1b   : > { %p9098_p3 = por %p482_p2, %p481_p1  ;;  %p487_p4 = scmp.ne.s32.totalorder %s8922_s25, %s8918_s24 }
  0x1c   : > { %p44_p5 = scmp.ge.s32.totalorder %s11132_s20, 2  ;;  %p488_p6 = scmp.eq.s32.totalorder %s8040_s19, 3 }
  0x1d   : > { %s11081_s21 = scalar_select %p9098_p3, 1, 0 }
  0x1e   : > { %p8043_p7 = scmp.ge.s32.totalorder %s8946_s30, 1  ;;  %p609_p8 = scmp.lt.s32.totalorder %s8946_s30, 5 }
  0x1f   : > { %11082 = sst [smem:[#allocation15_spill]] %s11081_s21  ;;  %s11134_s20 = smov (%p44_p5, %s11132_s20), 0 }
  0x20   : > { %11083 = sst [smem:[#allocation16_spill]] %s11134_s20  ;;  %p9108_p9 = por %p488_p6, %p487_p4 }
  0x21   : > { %p610_p10 = pnand %p8043_p7, %p609_p8  ;;  %s468_s23 = ssub.s32 %s8942_s0, %s11134_s20 }
  0x22   : > { %s11084_s22 = scalar_select %p9108_p9, 1, 0 }
  0x23   : > { %s471_s18 = sadd.s32 1, %s8926_s26  ;;  %p469_p11 = scmp.eq.s32.totalorder %s468_s23, 0 }
  0x24   : > { %11085 = sst [smem:[#allocation17_spill]] %s11084_s22  ;;  %613 = sbr.rel (%p610_p10) target bundleno = 5071 (0x13cf), region = 88 }
  0x25   : > { %s9116_s1 = scalar_select %p469_p11, %s8926_s26, %s471_s18  }
  0x27   : > { %11086 = sst [smem:[#allocation18_spill]] %s9116_s1 }
  0x29   : > { %s11040_s19 = sand.u32 1, %s8922_s25   ;;  %s8045_s29 = sshll.u32 %s8934_s28, 2 }
  0x2a   : > { %s9122_s24 = sshll.u32 %s11040_s19, 2  ;;  %p708_p12 = scmp.lt.s32.totalorder %s8045_s29, 7 }
  0x2b   : > { %p713_p13 = scmp.lt.s32.totalorder %s8930_s27, 1  ;;  %s11087_s0 = sld [smem:[#allocation23_spill]] }
  0x2c   : > { %s11136_s29 = smov (!%p708_p12, %s8045_s29), 7  ;;  %s11088_s25 = sld [smem:[#allocation24_spill]] }
  0x2d   : > { %s9126_s22 = scalar_select %p713_p13, %s8930_s27, 1 }
  0x2e   : > { %s8046_s23 = sshll.u32 %s11136_s29, 2  ;;  %s11089_s3 = sld [smem:[#allocation26_spill]] }
  0x2f   : > { %s8601_s1 = smul.u32 192, %s9126_s22  ;;  %s8207_s30 = sshll.u32 %s9126_s22, 6 }
  0x30   : > { %s8602_s26 = smul.u32 3, %s9126_s22  ;;  %s11090_s2 = sld [smem:[#allocation25_spill]] }
  0x31   : > { %s711_s19 = scalar_lea.vmem %s11087_s0, %s8046_s23  ;;  %s8208_s15 = sshll.u32 %s9126_s22, 7 }
  0x32   : > { %s9137_s28 = scalar_lea.vmem %s11088_s25, %s8601_s1  ;;  %s8052_s16 = sshll.u32 %s9126_s22, 1 }
  0x33   : > { %s11092_s7 = sld [smem:[#allocation28_spill]]  ;;  %s9171_s23 = scalar_lea.vmem %s11025_s8, %s8052_s16 }
  0x34   : > { %s9142_s29 = scalar_lea.vmem %s11089_s3, %s8207_s30  ;;  %s9176_s12 = scalar_lea.vmem %s11026_s9, %s8208_s15 }
  0x35   : > { %s752_s1 = scalar_lea.vmem %s11027_s10, %s9126_s22  ;;  %s755_s3 = scalar_lea.vmem %s11028_s11, %s9126_s22 }
  0x36   : > { %s9147_s0 = scalar_lea.vmem %s11090_s2, %s8602_s26  ;;  %s706_s26 = scalar_lea.vmem [#allocation3], %s9122_s24 }
  0x37   : > { %s11094_s16 = sld [smem:[#allocation9_spill]] }
  0x39   : > { %s9166_s14 = scalar_lea.vmem %s11092_s7, %s8208_s15  ;;  %s11093_s7 = sld [smem:[#allocation29_spill]] }
  0x3d   : > { %p8055_p0 = scmp.ne.s32.totalorder %s11094_s16, 0 }
  0x3f   : > { %s758_s6 = scalar_lea.vmem %s11093_s7, %s9126_s22  ;;  %763 = sbr.rel (%p8055_p0) target bundleno = 73 (0x49), region = 92 }
  0x44   : > { %v764_v0 = vld [vmem:[%s711_s19] sm:$0x7]  ;;  %v765_v1 = vld [vmem:[%s711_s19 + $0x4] sm:$0x7]  ;;  %v766_v2 = vld [vmem:[%s711_s19 + $0x8] sm:$0x7] }
  0x45   : > { %v768_v3 = vunpack.c.l.bf16 %v764_v0  ;;  %v769_v4 = vunpack.c.l.bf16 %v765_v1  ;;  %v770_v5 = vunpack.c.l.bf16 %v766_v2  ;;  %v767_v6 = vld [vmem:[%s711_s19 + $0xc] sm:$0x7] }
  0x46   : > { %v771_v7 = vunpack.c.l.bf16 %v767_v6 }
  0x47   : > { %772 = vst [vmem:[#allocation2 + $0x10] sm:$0x1f] %v768_v3  ;;  %773 = vst [vmem:[#allocation2] sm:$0x1f] %v769_v4 }
  0x48   : > { %774 = vst [vmem:[#allocation2 + $0x18] sm:$0x1f] %v770_v5  ;;  %775 = vst [vmem:[#allocation2 + $0x8] sm:$0x1f] %v771_v7 }
  0x49 PF: > { %v8684_v8 = vld [vmem:[%s9137_s28 + $0xac] ss:$12 sps:$4 sm:$0xff]   ;;  %v788_v9 = vlaneseq  ;;  %v8686_v10 = vld [vmem:[%s9137_s28 + $0xa8] ss:$12 sps:$4 sm:$0xff]   ;;  %v11051_v11 = vmov 0   ;;  %vm8951_vm0 = vmmov 0   ;;  %s11100_s21 = scalar_lea.vmem %s11022_s5, %s9126_s22 }
  0x4a   : > { %1296 = vmatprep.mubr.bf16.mxu0 %v11051_v11  ;;  %1264 = vmatprep.subr.bf16.mxu0 %v8684_v8  ;;  %v8687_v12 = vld [vmem:[%s9137_s28 + $0x94] ss:$12 sps:$4 sm:$0xff]   ;;  %v8949_v13 = vmov 1966171168   ;;  %v8689_v15 = vld [vmem:[%s9137_s28 + $0x90] ss:$12 sps:$4 sm:$0xff]  }
  0x4b   : > { %v786_v14 = vunpack.c.l.s4 %v8949_v13  ;;  %1265 = vmatpush1.bf16.msra.mxu0 %v8686_v10  ;;  %v8690_v16 = vld [vmem:[%s9137_s28 + $0x7c] ss:$12 sps:$4 sm:$0xff]   ;;  %v9198_v18 = vshrl.u32 %v788_v9, 7  ;;  %v8692_v19 = vld [vmem:[%s9137_s28 + $0x78] ss:$12 sps:$4 sm:$0xff]   ;;  %vm1719_vm1 = vcmask 261120  }
  0x4c   : > { %1266 = vmatprep.subr.bf16.mxu0 %v8687_v12  ;;  %v8693_v20 = vld [vmem:[%s9137_s28 + $0x64] ss:$12 sps:$4 sm:$0xff]   ;;  %v8695_v22 = vld [vmem:[%s9137_s28 + $0x60] ss:$12 sps:$4 sm:$0xff]   ;;  %v8698_v35 = vld [vmem:[%s9137_s28 + $0x48] ss:$12 sps:$4 sm:$0xff]  }
  0x4d   : > { %v787_v17 = vunpack.c.0.s8 %v786_v14  ;;  %v8696_v23 = vld [vmem:[%s9137_s28 + $0x4c] ss:$12 sps:$4 sm:$0xff]   ;;  %v8712_v34 = vld [vmem:[%s9137_s28 + $0xb0] ss:$12 sps:$4 sm:$0xff]   ;;  %v8699_v45 = vld [vmem:[%s9137_s28 + $0x34] ss:$12 sps:$4 sm:$0xff]  }
  0x4e   : > { %v776_v24 = vld [vmem:[#allocation2 + $0x10] sm:$0x1f]  ;;  %v777_v25 = vld [vmem:[#allocation2] sm:$0x1f]  ;;  %8337 = vmatprep.subr.bf16.mxu1 %v8712_v34  ;;  %v8702_v60 = vld [vmem:[%s9137_s28 + $0x1c] ss:$12 sps:$4 sm:$0xff]  }
  0x4f   : > { %1267 = vmatpush1.bf16.msra.mxu0 %v8689_v15  ;;  %v9203_v21 = vsub.s32 %v787_v17, %v9198_v18  ;;  %v778_v26 = vld [vmem:[#allocation2 + $0x18] sm:$0x1f]  ;;  %v779_v27 = vld [vmem:[#allocation2 + $0x8] sm:$0x1f]  ;;  %v784_v28 = vcombine.high %v776_v24, %v776_v24  ;;  %v823_v30 = vcombine.high %v777_v25, %v777_v25  ;;  %8338 = vmatpush3.bf16.msra.mxu1 %v8712_v34  ;;  %vm2139_vm2 = vcmask 1041408   ;;  %s8953_s2 = smov 96  }
  0x50   : > { %1268 = vmatprep.subr.bf16.mxu0 %v8690_v16  ;;  %v862_v32 = vcombine.high %v778_v26, %v778_v26  ;;  %v8713_v44 = vld [vmem:[%s9137_s28 + $0x98] ss:$12 sps:$4 sm:$0xff]   ;;  %v8714_v54 = vld [vmem:[%s9137_s28 + $0x80] ss:$12 sps:$4 sm:$0xff]   ;;  %v8701_v55 = vld [vmem:[%s9137_s28 + $0x30] ss:$12 sps:$4 sm:$0xff]   ;;  %v901_v0 = vcombine.high %v779_v27, %v779_v27 }
  0x51   : > { %v791_v29 = vrot.slane %v776_v24, %v9203_v21  ;;  %v830_v31 = vrot.slane %v777_v25, %v9203_v21  ;;  %v869_v33 = vrot.slane %v778_v26, %v9203_v21  ;;  %v798_v36 = vrot.slane %v784_v28, %v9203_v21  ;;  %8339 = vmatprep.subr.bf16.mxu1 %v8713_v44  ;;  %v8715_v9 = vld [vmem:[%s9137_s28 + $0x68] ss:$12 sps:$4 sm:$0xff]   ;;  %v8704_v10 = vld [vmem:[%s9137_s28 + $0x18] ss:$12 sps:$4 sm:$0xff]   ;;  %s8954_s7 = smov 64   ;;  %s8955_s13 = smov 32  }
  0x52   : > { %v9217_v39 = vrot.slane %v779_v27, %v9203_v21  ;;  %v837_v40 = vrot.slane %v823_v30, %v9203_v21  ;;  %v876_v43 = vrot.slane %v862_v32, %v9203_v21  ;;  %v915_v15 = vrot.slane %v901_v0, %v9203_v21  ;;  %v8705_v16 = vld [vmem:[%s9137_s28 + $0x4] ss:$12 sps:$4 sm:$0xff]   ;;  %v8707_v30 = vld [vmem:[%s9137_s28] ss:$12 sps:$4 sm:$0xff]   ;;  %s11101_s20 = sld [smem:[#allocation27_spill]] }
  0x53   : > { %1269 = vmatpush1.bf16.msra.mxu0 %v8692_v19  ;;  %v799_v37 = vcombine.high %v791_v29, %v791_v29  ;;  %v9214_v38 = vrot.slane %v791_v29, %v9203_v21  ;;  %v838_v41 = vcombine.high %v830_v31, %v830_v31  ;;  %v9221_v42 = vrot.slane %v830_v31, %v9203_v21 }
  0x54   : > { %1270 = vmatprep.subr.bf16.mxu0 %v8693_v20  ;;  %v9227_v46 = vrot.slane %v798_v36, %v9203_v21  ;;  %v877_v48 = vcombine.high %v869_v33, %v869_v33  ;;  %v9233_v49 = vrot.slane %v869_v33, %v9203_v21  ;;  %v9236_v50 = vrot.slane %v837_v40, %v9203_v21 }
  0x55   : > { %v9230_v47 = vrot.slane %v799_v37, %v9203_v21  ;;  %v9239_v51 = vrot.slane %v838_v41, %v9203_v21  ;;  %v9243_v52 = vcombine.high %v9221_v42, %v9221_v42  ;;  %v9246_v53 = vrot.slane %v876_v43, %v9203_v21  ;;  %8340 = vmatpush3.bf16.msra.mxu1 %v8713_v44 }
  0x56   : > { %v9251_v56 = vrot.slane %v877_v48, %v9203_v21  ;;  %v9255_v57 = vrot.slane %v9217_v39, %v9203_v21  ;;  %v962_v62 = vcombine.low %v9227_v46, %v9221_v42  ;;  %8341 = vmatprep.subr.bf16.mxu1 %v8714_v54  ;;  %v9294_v24 = vrot.slane %v915_v15, %v9203_v21  ;;  %v8716_v48 = vld [vmem:[%s9137_s28 + $0x50] ss:$12 sps:$4 sm:$0xff]  }
  0x57   : > { %1271 = vmatpush1.bf16.msra.mxu0 %v8695_v22  ;;  %v960_v58 = vcombine.low %v9214_v38, %v9230_v47  ;;  %v8056_v59 = vcombine.high %v9214_v38, %v9230_v47  ;;  %v9264_v61 = vcombine.high %v9239_v51, %v9239_v51  ;;  %v963_v63 = vcombine.low %v9239_v51, %v9243_v52 }
  0x58   : > { %1272 = vmatprep.subr.bf16.mxu0 %v8696_v23  ;;  %v1010_v3 = vcombine.low %v9233_v49, %v9251_v56  ;;  %v8057_v4 = vcombine.high %v9233_v49, %v9251_v56  ;;  %v984_v5 = vrot.slane %v962_v62, %v9203_v21  ;;  %v1012_v8 = vcombine.low %v9246_v53, %v9255_v57  ;;  %v9333_v62 = vld [vmem:[%s9147_s0] sm:$0x7]  ;;  %s11102_s18 = scalar_lea.vmem %s11101_s20, %s9126_s22 }
  0x59   : > { %v970_v1 = vrot.slane %v960_v58, %v9203_v21  ;;  %v977_v2 = vrot.slane %v8056_v59, %v9203_v21  ;;  %v991_v6 = vrot.slane %v963_v63, %v9203_v21  ;;  %v1009_v7 = vcombine.low %v9264_v61, %v9236_v50  ;;  %8342 = vmatpush3.bf16.msra.mxu1 %v8714_v54  ;;  %v8717_v54 = vld [vmem:[%s9137_s28 + $0x38] ss:$12 sps:$4 sm:$0xff]   ;;  %v8719_v58 = vld [vmem:[%s9137_s28 + $0x8] ss:$12 sps:$4 sm:$0xff]  }
  0x5a   : > { %v1026_v13 = vrot.slane %v1010_v3, %v9203_v21  ;;  %v1033_v14 = vrot.slane %v8057_v4, %v9203_v21  ;;  %v1040_v20 = vrot.slane %v1012_v8, %v9203_v21  ;;  %v916_v22 = vcombine.high %v9217_v39, %v9217_v39  ;;  %8343 = vmatprep.subr.bf16.mxu1 %v8715_v9 }
  0x5b   : > { %1273 = vmatpush1.bf16.msra.mxu0 %v8698_v35  ;;  %v992_v12 = vcombine.low %v970_v1, %v977_v2  ;;  %v993_v17 = vcombine.low %v984_v5, %v991_v6  ;;  %v1019_v19 = vrot.slane %v1009_v7, %v9203_v21  ;;  %v9298_v25 = vcombine.high %v9255_v57, %v9255_v57 }
  0x5c   : > { %1274 = vmatprep.subr.bf16.mxu0 %v8699_v45  ;;  %v1042_v28 = vcombine.low %v1033_v14, %v1040_v20  ;;  %v9302_v29 = vrot.slane %v916_v22, %v9203_v21  ;;  %v8950_v59 = vmov 0.0   ;;  %v9338_v0 = vsub.s32 1, %v9198_v18 }
  0x5d   : > { %v1000_v23 = vrot.slane %v992_v12, %v9203_v21  ;;  %v1007_v26 = vrot.slane %v993_v17, %v9203_v21  ;;  %v1041_v27 = vcombine.low %v1019_v19, %v1026_v13  ;;  %8344 = vmatpush3.bf16.msra.mxu1 %v8715_v9  ;;  %vm2140_vm3 = vcmask 1042432  }
  0x5e   : > { %v1056_v33 = vrot.slane %v1042_v28, %v9203_v21  ;;  %v9309_v34 = vcombine.high %v9302_v29, %v9302_v29  ;;  %v1058_v35 = vcombine.low %v9302_v29, %v9298_v25  ;;  %8345 = vmatprep.subr.bf16.mxu1 %v8716_v48  ;;  %v1128_v4 = vrot.slane %v9333_v62, %v9338_v0 }
  0x5f   : > { %1275 = vmatpush1.bf16.msra.mxu0 %v8701_v55  ;;  %v1008_v31 = vcombine.low %v1000_v23, %v1007_v26  ;;  %v1049_v32 = vrot.slane %v1041_v27, %v9203_v21  ;;  %v8718_v55 = vld [vmem:[%s9137_s28 + $0x20] ss:$12 sps:$4 sm:$0xff]   ;;  %vm2060_vm4 = vcmask 36864   ;;  %vm2135_vm5 = vcmask 39936  }
  0x60   : > { %1276 = vmatprep.subr.bf16.mxu0 %v8702_v60  ;;  %v1059_v37 = vcombine.low %v9309_v34, %v9294_v24  ;;  %v1066_v39 = vrot.slane %v1058_v35, %v9203_v21  ;;  %v9330_v60 = vsub.s32 0, %v9198_v18  ;;  %vm5466_vm6 = vcmask 1043456  }
  0x61   : > { %v1057_v36 = vcombine.low %v1049_v32, %v1056_v33  ;;  %8346 = vmatpush3.bf16.msra.mxu1 %v8716_v48 }
  0x62   : > { %v1073_v41 = vrot.slane %v1059_v37, %v9203_v21  ;;  %8347 = vmatprep.subr.bf16.mxu1 %v8717_v54  ;;  %v1124_v63 = vrot.slane %v9333_v62, %v9330_v60 }
  0x63   : > { %1277 = vmatpush1.bf16.msra.mxu0 %v8704_v10  ;;  %v1085_v40 = vpack.c.bf16 %v1057_v36, %v1008_v31 }
  0x64   : > { %1278 = vmatprep.subr.bf16.mxu0 %v8705_v16  ;;  %v1074_v43 = vcombine.low %v1066_v39, %v1073_v41 }
  0x65   : > { %8353 = vmatprep.mubr.bf16.mxu1 %v1085_v40  ;;  %8348 = vmatpush3.bf16.msra.mxu1 %v8717_v54 }
  0x66   : > { %v1081_v44 = vrot.slane %v1074_v43, %v9203_v21  ;;  %8349 = vmatprep.subr.bf16.mxu1 %v8718_v55 }
  0x67   : > { %1279 = vmatpush1.bf16.msra.mxu0 %v8707_v30 }
  0x68   : > { %v1086_v45 = vpack.c.bf16 %v1081_v44, %v1081_v44  ;;  %8363 = vmatprep.subr.bf16.mxu0 %v8950_v59 }
  0x69   : > { %8350 = vmatpush3.bf16.msra.mxu1 %v8718_v55 }
  0x6a   : > { %1297 = vmatmul.mubr.bf16.vlgmr.msra.gmra.mxu0 %v1085_v40  ;;  %8351 = vmatprep.subr.bf16.mxu1 %v8719_v58 }
  0x6b   : > { %1306 = vmatprep.mubr.bf16.mxu0 %v11051_v11 }
  0x6d   : > { %8352 = vmatpush3.bf16.msra.mxu1 %v8719_v58 }
  0x6e   : > { %8357 = vmatprep.subr.bf16.mxu1 %v8950_v59 }
  0x70   : > { %8354 = vmatmul.mubr.bf16.vlgmr.msra.gmra.mxu1 %v1086_v45 }
  0x71   : > { %8359 = vmatprep.mubr.msk.bf16.mxu1 %vm8951_vm0, %v8950_v59 }
  0x72   : > { %1307 = vmatmul.mubr.bf16.gmra.mxu0 %v1086_v45 }
  0x73   : > { %8365 = vmatprep.mubr.msk.bf16.mxu0 %vm8951_vm0, %v8950_v59 }
 0x12a   : > { %v1298_v1 = vpop.f32.mrf.mxu0 }
 0x12b   : > { %v1299_v3 = vadd.f32 %v1298_v1, %v1124_v63 }
 0x12c   : > { %v1300_v2 = vpop.f32.mrf.mxu0 }
 0x12d   : > { %v1363_v8 = vmul.f32 0.17677669, %v1299_v3  ;;  %v1301_v9 = vadd.f32 %v1300_v2, %v1128_v4 }
 0x12e   : > { %v1302_v5 = vpop.f32.mrf.mxu0 }
 0x12f   : > { %v1303_v6 = vadd.f32 %v1302_v5, %v1124_v63 }
 0x130   : > { %v1304_v7 = vpop.f32.mrf.mxu0 }
 0x131   : > { %v1364_v10 = vmul.f32 0.17677669, %v1303_v6  ;;  %v1305_v12 = vadd.f32 %v1304_v7, %v1128_v4 }
 0x132   : > { %v1308_v13 = vpop.f32.mrf.mxu0 }
 0x133   : > { %v1366_v14 = vpack.c.bf16 %v1364_v10, %v1363_v8  ;;  %v8082_v15 = vpack.c.bf16 %v1364_v10, %v1364_v10  ;;  %v1368_v16 = vpack.c.bf16 %v1305_v12, %v1301_v9  ;;  %v8083_v17 = vpack.c.bf16 %v1305_v12, %v1305_v12 }
 0x134   : > { %v1310_v19 = vpop.f32.mrf.mxu0  ;;  %v1309_v39 = vadd.f32 %v1308_v13, %v1124_v63 }
 0x135   : > { %v1397_v20 = vrot.slane %v1366_v14, %v9203_v21  ;;  %v1404_v22 = vrot.slane %v8082_v15, %v9203_v21  ;;  %v1490_v23 = vrot.slane %v1368_v16, %v9203_v21  ;;  %v1497_v26 = vrot.slane %v8083_v17, %v9203_v21 }
 0x136   : > { %v1312_v27 = vpop.f32.mrf.mxu0  ;;  %v1365_v1 = vmul.f32 0.17677669, %v1309_v39  ;;  %v1311_v2 = vadd.f32 %v1310_v19, %v1128_v4 }
 0x137   : > { %v1405_v28 = vcombine.high %v1397_v20, %v1397_v20  ;;  %v1413_v30 = vrot.slane %v1397_v20, %v9203_v21  ;;  %v1498_v31 = vcombine.high %v1490_v23, %v1490_v23  ;;  %v1499_v32 = vcombine.high %v1497_v26, %v1497_v26 }
 0x138   : > { %v1506_v33 = vrot.slane %v1490_v23, %v9203_v21  ;;  %v1313_v35 = vpop.f32.mrf.mxu0  ;;  %v1406_v36 = vcombine.high %v1404_v22, %v1404_v22  ;;  %v9350_v40 = vrot.slane %v1404_v22, %v9203_v21  ;;  %v1513_v48 = vrot.slane %v1497_v26, %v9203_v21 }
 0x139   : > { %v1427_v37 = vrot.slane %v1405_v28, %v9203_v21  ;;  %v1435_v41 = vcombine.high %v1413_v30, %v1413_v30  ;;  %v1520_v43 = vrot.slane %v1498_v31, %v9203_v21  ;;  %v1527_v44 = vrot.slane %v1499_v32, %v9203_v21 }
 0x13a   : > { %v1528_v54 = vcombine.high %v1506_v33, %v1506_v33  ;;  %v9356_v55 = vrot.slane %v1406_v36, %v9203_v21  ;;  %v1436_v63 = vcombine.high %v9350_v40, %v9350_v40  ;;  %v1529_v8 = vcombine.high %v1513_v48, %v1513_v48 }
 0x13b   : > { %v1437_v45 = vcombine.high %v1427_v37, %v1427_v37  ;;  %v1466_v3 = vunpack.i.h.s16 %v1435_v41  ;;  %v1530_v5 = vcombine.high %v1520_v43, %v1520_v43  ;;  %v1531_v6 = vcombine.high %v1527_v44, %v1527_v44 }
 0x13c   : > { %v1465_v7 = vunpack.i.l.s16 %v1435_v41  ;;  %v1558_v9 = vunpack.i.l.s16 %v1528_v54  ;;  %v1559_v10 = vunpack.i.h.s16 %v1528_v54  ;;  %v1470_v12 = vunpack.i.h.s16 %v9350_v40 }
 0x13d   : > { %v1468_v58 = vunpack.i.h.s16 %v1437_v45  ;;  %v1670_v13 = vcombine.low %v1413_v30, %v1427_v37  ;;  %v1561_v15 = vunpack.i.h.s16 %v1530_v5  ;;  %v1563_v16 = vunpack.i.h.s16 %v1513_v48 }
 0x13e   : > { %v1568_v17 = vunpack.i.l.s16 %v1531_v6  ;;  %v1696_v4 = vcombine.low %v1506_v33, %v1520_v43  ;;  %v1710_v19 = vrot.slane %v1558_v9, %v9203_v21  ;;  %v1438_v20 = vcombine.high %v9356_v55, %v9356_v55 }
 0x13f   : > { %v8087_v14 = vpack.i.b16 %v9350_v40, %v1468_v58  ;;  %v8086_v22 = vpack.i.b16 %v1437_v45, %v1466_v3  ;;  %v8088_v23 = vpack.i.b16 %v1530_v5, %v1559_v10  ;;  %v8089_v26 = vpack.i.b16 %v1513_v48, %v1561_v15 }
 0x140   : > { %v1684_v27 = vrot.slane %v1465_v7, %v9203_v21  ;;  %v1703_v28 = vrot.slane %v1696_v4, %v9203_v21  ;;  %v1893_v31 = vcombine.low %v1527_v44, %v1529_v8  ;;  %v1367_v30 = vpack.c.bf16 %v1365_v1, %v1365_v1 }
 0x141   : > { %v1677_v32 = vrot.slane %v1670_v13, %v9203_v21  ;;  %v1769_v35 = vcombine.low %v8086_v22, %v8087_v14  ;;  %v1795_v36 = vcombine.low %v8088_v23, %v8089_v26  ;;  %v1369_v37 = vpack.c.bf16 %v1311_v2, %v1311_v2 }
 0x142   : > { %v1711_v33 = vcombine.low %v1703_v28, %v1710_v19  ;;  %v1809_v39 = vrot.slane %v1563_v16, %v9203_v21  ;;  %v1907_v41 = vrot.slane %v1568_v17, %v9203_v21  ;;  %v1445_v43 = vrot.slane %v1367_v30, %v9203_v21 }
 0x143   : > { %v1802_v45 = vrot.slane %v1795_v36, %v9203_v21  ;;  %v1476_v48 = vunpack.i.h.s16 %v1438_v20  ;;  %v1538_v54 = vrot.slane %v1369_v37, %v9203_v21  ;;  %v1569_v58 = vunpack.i.h.s16 %v1531_v6 }
 0x144   : > { %v1900_v44 = vrot.slane %v1893_v31, %v9203_v21  ;;  %v1446_v1 = vcombine.high %v1445_v43, %v1445_v43  ;;  %v1453_v3 = vrot.slane %v1445_v43, %v9203_v21  ;;  %v9376_v2 = vrot.slane %v1711_v33, %v9203_v21 }
 0x145   : > { %v1776_v5 = vrot.slane %v1769_v35, %v9203_v21  ;;  %v1539_v7 = vcombine.high %v1538_v54, %v1538_v54  ;;  %v1546_v8 = vrot.slane %v1538_v54, %v9203_v21  ;;  %v1810_v9 = vcombine.low %v1802_v45, %v1809_v39 }
 0x146   : > { %v1460_v10 = vrot.slane %v1446_v1, %v9203_v21  ;;  %v1478_v13 = vunpack.i.h.s16 %v1453_v3  ;;  %v1724_v6 = vsel %vm1719_vm1, %v9376_v2, 0  ;;  %v1908_v14 = vcombine.low %v1900_v44, %v1907_v41 }
 0x147   : > { %v1553_v15 = vrot.slane %v1539_v7, %v9203_v21  ;;  %v1571_v16 = vunpack.i.h.s16 %v1546_v8  ;;  %v8094_v17 = vpack.i.b16 %v1546_v8, %v1569_v58  ;;  %8358 = vmatpush3.bf16.xpose.msra.mxu1 %v1724_v6  ;;  %v9385_v4 = vrot.slane %v1810_v9, %v9203_v21 }
 0x148   : > { %v1475_v19 = vunpack.i.l.s16 %v1438_v20  ;;  %v1685_v22 = vcombine.low %v1677_v32, %v1684_v27  ;;  %v1783_v23 = vrot.slane %v1470_v12, %v9203_v21  ;;  %v8092_v26 = vpack.i.b16 %v1453_v3, %v1476_v48  ;;  %8369 = vmatprep.subr.bf16.mxu1 %v8950_v59 }
 0x149   : > { %v8093_v28 = vpack.i.b16 %v1460_v10, %v1478_v13  ;;  %v1573_v31 = vunpack.i.h.s16 %v1553_v15  ;;  %v8095_v30 = vpack.i.b16 %v1553_v15, %v1571_v16  ;;  %v1822_v35 = vsel %vm1719_vm1, %v9385_v4, 0 }
 0x14a   : > { %v1867_v36 = vcombine.low %v9356_v55, %v1436_v63  ;;  %8364 = vmatpush3.bf16.xpose.msra.mxu0 %v1822_v35  ;;  %v9396_v20 = vrot.slane %v1908_v14, %v9203_v21  ;;  %v1784_v27 = vcombine.low %v1776_v5, %v1783_v23  ;;  %v1881_v37 = vrot.slane %v1475_v19, %v9203_v21 }
 0x14b   : > { %v1991_v12 = vcombine.low %v8094_v17, %v8095_v30  ;;  %v2005_v32 = vrot.slane %v1573_v31, %v9203_v21  ;;  %8375 = vmatprep.subr.bf16.mxu0 %v8950_v59  ;;  %v9402_v33 = vrot.slane %v1685_v22, %v9203_v21  ;;  %v1480_v39 = vunpack.i.h.s16 %v1460_v10  ;;  %v8355_v10 = vpop.f32.mrf.mxu1 }
 0x14c   : > { %v1965_v41 = vcombine.low %v8092_v26, %v8093_v28  ;;  %v1874_v55 = vrot.slane %v1867_v36, %v9203_v21  ;;  %v1920_v63 = vsel %vm1719_vm1, %v9396_v20, 0  ;;  %v9411_v45 = vrot.slane %v1784_v27, %v9203_v21 }
 0x14d   : > { %v1998_v40 = vrot.slane %v1991_v12, %v9203_v21  ;;  %v1979_v58 = vrot.slane %v1480_v39, %v9203_v21  ;;  %v9443_v8 = vsub.s32 2, %v9198_v18  ;;  %v1349_v6 = vpop.f32.mrf.mxu1 }
 0x14e   : > { %8360 = vmatmul.mubr.msk.bf16.vlgmr.msra.gmra.mxu1 %vm1719_vm1, %v9402_v33  ;;  %v1882_v48 = vcombine.low %v1874_v55, %v1881_v37  ;;  %v1972_v54 = vrot.slane %v1965_v41, %v9203_v21 }
 0x14f   : > { %v2006_v43 = vcombine.low %v1998_v40, %v2005_v32  ;;  %8370 = vmatpush3.bf16.xpose.msra.mxu1 %v1920_v63  ;;  %8371 = vmatprep.mubr.msk.bf16.mxu1 %vm8951_vm0, %v8950_v59  ;;  %v1132_v9 = vrot.slane %v9333_v62, %v9443_v8  ;;  %v8356_v15 = vpop.f32.mrf.mxu1 }
 0x150   : > { %8381 = vmatprep.subr.bf16.mxu1 %v8950_v59  ;;  %v9428_v3 = vrot.slane %v1882_v48, %v9203_v21  ;;  %v1980_v5 = vcombine.low %v1972_v54, %v1979_v58 }
 0x151   : > { %8366 = vmatmul.mubr.msk.bf16.vlgmr.msra.gmra.mxu0 %vm1719_vm1, %v9411_v45  ;;  %v9421_v44 = vrot.slane %v2006_v43, %v9203_v21  ;;  %v1358_v13 = vadd.f32 %v8355_v10, %v1132_v9  ;;  %v1350_v16 = vadd.f32 %v1349_v6, %v1132_v9  ;;  %v1352_v19 = vpop.f32.mrf.mxu1 }
 0x152   : > { %8377 = vmatprep.mubr.msk.bf16.mxu0 %vm8951_vm0, %v8950_v59  ;;  %v9436_v7 = vrot.slane %v1980_v5, %v9203_v21  ;;  %v1353_v22 = vadd.f32 %v1352_v19, %v1132_v9 }
 0x153   : > { %v2018_v1 = vsel %vm1719_vm1, %v9421_v44, 0  ;;  %v1371_v14 = vpack.c.bf16 %v1358_v13, %v1358_v13 }
 0x154   : > { %8376 = vmatpush3.bf16.xpose.msra.mxu0 %v2018_v1  ;;  %v1370_v23 = vpack.c.bf16 %v1353_v22, %v1350_v16  ;;  %v8084_v26 = vpack.c.bf16 %v1353_v22, %v1353_v22 }
 0x155   : > { %8387 = vmatprep.subr.bf16.mxu0 %v8950_v59  ;;  %v1631_v17 = vrot.slane %v1371_v14, %v9203_v21 }
 0x156   : > { %8372 = vmatmul.mubr.msk.bf16.vlgmr.msra.gmra.mxu1 %vm1719_vm1, %v9428_v3  ;;  %v1583_v30 = vrot.slane %v1370_v23, %v9203_v21  ;;  %v1590_v35 = vrot.slane %v8084_v26, %v9203_v21 }
 0x157   : > { %8383 = vmatprep.mubr.msk.bf16.mxu1 %vm8951_vm0, %v8950_v59  ;;  %v1632_v28 = vcombine.high %v1631_v17, %v1631_v17  ;;  %v1639_v31 = vrot.slane %v1631_v17, %v9203_v21 }
 0x158   : > { %v1591_v62 = vcombine.high %v1583_v30, %v1583_v30  ;;  %v1592_v36 = vcombine.high %v1590_v35, %v1590_v35  ;;  %v1599_v27 = vrot.slane %v1583_v30, %v9203_v21  ;;  %v1606_v37 = vrot.slane %v1590_v35, %v9203_v21 }
 0x159   : > { %v1646_v12 = vrot.slane %v1632_v28, %v9203_v21  ;;  %v1664_v32 = vunpack.i.h.s16 %v1639_v31 }
 0x15a   : > { %v1613_v39 = vrot.slane %v1591_v62, %v9203_v21  ;;  %v1620_v41 = vrot.slane %v1592_v36, %v9203_v21  ;;  %v1621_v40 = vcombine.high %v1599_v27, %v1599_v27  ;;  %v1622_v55 = vcombine.high %v1606_v37, %v1606_v37 }
 0x15b   : > { %8378 = vmatmul.mubr.msk.bf16.vlgmr.msra.gmra.mxu0 %vm1719_vm1, %v9436_v7  ;;  %v8103_v58 = vpack.i.b16 %v1646_v12, %v1664_v32  ;;  %v1656_v1 = vunpack.i.h.s16 %v1606_v37  ;;  %v1666_v19 = vunpack.i.h.s16 %v1646_v12 }
 0x15c   : > { %8389 = vmatprep.mubr.msk.bf16.mxu0 %vm8951_vm0, %v8950_v59  ;;  %v1623_v63 = vcombine.high %v1613_v39, %v1613_v39  ;;  %v1624_v43 = vcombine.high %v1620_v41, %v1620_v41  ;;  %v1651_v48 = vunpack.i.l.s16 %v1621_v40  ;;  %v1652_v54 = vunpack.i.h.s16 %v1621_v40 }
 0x15d   : > { %v2112_v5 = vcombine.low %v1599_v27, %v1613_v39  ;;  %v2261_v9 = vcombine.low %v1620_v41, %v1622_v55  ;;  %v2203_v28 = vrot.slane %v1656_v1, %v9203_v21  ;;  %v9464_v27 = vrot.slane %v1666_v19, %v9203_v21 }
 0x15e   : > { %v1654_v10 = vunpack.i.h.s16 %v1623_v63  ;;  %v1661_v13 = vunpack.i.l.s16 %v1624_v43  ;;  %v1662_v6 = vunpack.i.h.s16 %v1624_v43  ;;  %v2126_v14 = vrot.slane %v1651_v48, %v9203_v21 }
 0x15f   : > { %v2119_v15 = vrot.slane %v2112_v5, %v9203_v21  ;;  %v8098_v16 = vpack.i.b16 %v1623_v63, %v1652_v54  ;;  %v2268_v17 = vrot.slane %v2261_v9, %v9203_v21 }
 0x160   : > { %v8099_v22 = vpack.i.b16 %v1606_v37, %v1654_v10  ;;  %v2275_v23 = vrot.slane %v1661_v13, %v9203_v21  ;;  %v8102_v26 = vpack.i.b16 %v1639_v31, %v1662_v6  ;;  %v8952_v31 = vmov 65535  }
 0x161   : > { %v2127_v30 = vcombine.low %v2119_v15, %v2126_v14  ;;  %v2141_v41 = vsel %vm2139_vm2, 4294967295, %v8952_v31 }
 0x162   : > { %v2189_v35 = vcombine.low %v8098_v16, %v8099_v22  ;;  %v9461_v62 = vcombine.low %v2268_v17, %v2275_v23  ;;  %v2333_v36 = vcombine.low %v8102_v26, %v8103_v58  ;;  %v9478_v63 = vsel %vm2140_vm3, %v2141_v41, 0 }
 0x163   : > { %v9471_v12 = vrot.slane %v2127_v30, %v9203_v21 }
 0x164   : > { %v2196_v32 = vrot.slane %v2189_v35, %v9203_v21  ;;  %v9468_v39 = vrot.slane %v2333_v36, %v9203_v21 }
 0x165   : > { %v2144_v43 = vand.u32 %v9478_v63, %v9471_v12 }
 0x166   : > { %v2204_v37 = vcombine.low %v2196_v32, %v2203_v28  ;;  %v2348_v55 = vcombine.low %v9468_v39, %v9464_v27 }
 0x167   : > { %8382 = vmatpush3.bf16.msra.mxu1 %v2144_v43 }
 0x168   : > { %v9474_v40 = vrot.slane %v2204_v37, %v9203_v21  ;;  %8393 = vmatprep.subr.bf16.mxu1 %v8950_v59 }
 0x16a   : > { %v2216_v48 = vand.u32 %v9474_v40, %v9478_v63 }
 0x16c   : > { %8388 = vmatpush3.bf16.msra.mxu0 %v2216_v48 }
 0x16d   : > { %8399 = vmatprep.subr.bf16.mxu0 %v8950_v59 }
 0x20e   : > { %v1760_v54 = vpop.f32.mrf.mxu1 }
 0x20f   : > { %v2061_v58 = vsel %vm2060_vm4, %v1760_v54, -inf }
 0x210   : > { %2062 = vmax.xlane.f32.xlu0 %v2061_v58  ;;  %v8361_v1 = vpop.f32.mrf.mxu1 }
 0x211   : > { %v1858_v5 = vpop.f32.mrf.mxu0 }
 0x212   : > { %v1763_v9 = vpop.f32.mrf.mxu1  ;;  %v2064_v10 = vsel %vm2060_vm4, %v1858_v5, -inf }
 0x213   : > { %v8367_v13 = vpop.f32.mrf.mxu0 }
 0x214   : > { %v8362_v6 = vpop.f32.mrf.mxu1  ;;  %2065 = vmax.xlane.f32.xlu0 %v2064_v10 }
 0x215   : > { %v1861_v14 = vpop.f32.mrf.mxu0 }
 0x216   : > { %v1956_v15 = vpop.f32.mrf.mxu1 }
 0x217   : > { %v2067_v16 = vsel %vm2060_vm4, %v1956_v15, -inf  ;;  %v8368_v17 = vpop.f32.mrf.mxu0 }
 0x218   : > { %2068 = vmax.xlane.f32.xlu1 %v2067_v16  ;;  %v8373_v19 = vpop.f32.mrf.mxu1 }
 0x21a   : > { %v1959_v22 = vpop.f32.mrf.mxu1 }
 0x21b   : > { %v2054_v23 = vpop.f32.mrf.mxu0 }
 0x21c   : > { %v8374_v26 = vpop.f32.mrf.mxu1  ;;  %v2070_v28 = vsel %vm2060_vm4, %v2054_v23, -inf }
 0x21d   : > { %2071 = vmax.xlane.f32.xlu1 %v2070_v28  ;;  %v8379_v30 = vpop.f32.mrf.mxu0 }
 0x21f   : > { %v2057_v35 = vpop.f32.mrf.mxu0 }
 0x220   : > { %v9512_v35 = vrot.slane %v9461_v62, %v9203_v21 }
 0x221   : > { %v8380_v36 = vpop.f32.mrf.mxu0 }
 0x299   : > { %v2063_v32 = vpop.xlane.xlu0 %2062 }
 0x29a   : > { %v2073_v37 = vsub.f32 %v1760_v54, %v2063_v32 }
 0x29c   : > { %v2077_v31 = vmul.f32 1.442695, %v2073_v37 }
 0x29d   : > { %v2066_v41 = vpop.xlane.xlu0 %2065 }
 0x29e   : > { %8768 = vpow2.f32 %v2077_v31  ;;  %v2074_v43 = vsub.f32 %v1858_v5, %v2066_v41  ;;  %v2288_v31 = vand.u32 %v9512_v35, %v9478_v63  ;;  %v9520_v41 = vrot.slane %v2348_v55, %v9203_v21 }
 0x2a0   : > { %v2079_v48 = vmul.f32 1.442695, %v2074_v43 }
 0x2a1   : > { %v2069_v58 = vpop.xlane.xlu1 %2068 }
 0x2a2   : > { %8770 = vpow2.f32 %v2079_v48  ;;  %v2075_v1 = vsub.f32 %v1956_v15, %v2069_v58  ;;  %v2360_v58 = vand.u32 %v9520_v41, %v9478_v63 }
 0x2a4   : > { %v2081_v9 = vmul.f32 1.442695, %v2075_v1 }
 0x2a6   : > { %8772 = vpow2.f32 %v2081_v9  ;;  %v2072_v5 = vpop.xlane.xlu1 %2071 }
 0x2a7   : > { %v2076_v15 = vsub.f32 %v2054_v23, %v2072_v5 }
 0x2a9   : > { %v2083_v17 = vmul.f32 1.442695, %v2076_v15 }
 0x2ab   : > { %v8769_v10 = vpop.eup %8768  ;;  %8774 = vpow2.f32 %v2083_v17 }
 0x2ac   : > { %v2085_v13 = vsel %vm2060_vm4, %v8769_v10, 0.0 }
 0x2ad   : > { %2086 = vadd.xlane.f32.xlu0 %v2085_v13 }
 0x2af   : > { %v8771_v6 = vpop.eup %8770 }
 0x2b0   : > { %v2088_v14 = vsel %vm2060_vm4, %v8771_v6, 0.0 }
 0x2b1   : > { %2089 = vadd.xlane.f32.xlu1 %v2088_v14 }
 0x2b3   : > { %v8773_v16 = vpop.eup %8772 }
 0x2b4   : > { %v2091_v54 = vsel %vm2060_vm4, %v8773_v16, 0.0 }
 0x2b5   : > { %2092 = vadd.xlane.f32.xlu0 %v2091_v54 }
 0x2b8   : > { %v8775_v19 = vpop.eup %8774 }
 0x2b9   : > { %v2094_v22 = vsel %vm2060_vm4, %v8775_v19, 0.0 }
 0x2c2   : > { %2741 = vrot.lane.b32.xlu1 %v9385_v4, %s8953_s2 }
 0x2c6   : > { %2689 = vrot.lane.b32.xlu1 %v9402_v33, %s8953_s2 }
 0x2cb   : > { %2691 = vrot.lane.b32.xlu0 %v9376_v2, %s8953_s2 }
 0x2cf   : > { %2739 = vrot.lane.b32.xlu0 %v9411_v45, %s8953_s2 }
 0x2d3   : > { %2789 = vrot.lane.b32.xlu0 %v9428_v3, %s8953_s2 }
 0x2ea   : > { %2095 = vadd.xlane.f32.xlu1 %v2094_v22 }
 0x2fb   : > { %2791 = vrot.lane.b32.xlu1 %v9396_v20, %s8953_s2 }
 0x2ff   : > { %2841 = vrot.lane.b32.xlu1 %v9421_v44, %s8953_s2 }
 0x303   : > { %2839 = vrot.lane.b32.xlu1 %v9436_v7, %s8953_s2 }
 0x336   : > { %v2087_v26 = vpop.xlane.xlu0 %2086 }
 0x337   : > { %8776 = vrcp.f32 %v2087_v26 }
 0x33a   : > { %v2090_v23 = vpop.xlane.xlu1 %2089 }
 0x33b   : > { %8778 = vrcp.f32 %v2090_v23 }
 0x33e   : > { %v2093_v28 = vpop.xlane.xlu0 %2092  ;;  %v2742_v9 = vpop.permute.xlu1 %2741 }
 0x33f   : > { %8780 = vrcp.f32 %v2093_v28  ;;  %v2747_v22 = vsel %vm1719_vm1, %v2742_v9, 0 }
 0x342   : > { %v2692_v27 = vpop.permute.xlu0 %2691 }
 0x343   : > { %v2697_v55 = vsel %vm1719_vm1, %v2692_v27, 0 }
 0x344   : > { %v8777_v30 = vpop.eup %8776 }
 0x345   : > { %v2101_v36 = vmul.f32 %v8777_v30, %v8769_v10  ;;  %v2690_v10 = vpop.permute.xlu1 %2689 }
 0x347   : > { %v2105_v32 = vpack.c.bf16 %v2101_v36, %v2101_v36 }
 0x348   : > { %v8779_v37 = vpop.eup %8778 }
 0x349   : > { %8384 = vmatmul.mubr.msk.bf16.vlgmr.msra.gmra.mxu1 %vm2135_vm5, %v2105_v32  ;;  %v2102_v43 = vmul.f32 %v8779_v37, %v8771_v6 }
 0x34a   : > { %8394 = vmatpush3.bf16.msra.mxu1 %v2288_v31  ;;  %8395 = vmatprep.mubr.msk.bf16.mxu1 %vm8951_vm0, %v8950_v59 }
 0x34b   : > { %v2106_v62 = vpack.c.bf16 %v2102_v43, %v2102_v43  ;;  %8405 = vmatprep.subr.bf16.mxu1 %v8950_v59 }
 0x34c   : > { %v8781_v48 = vpop.eup %8780 }
 0x34d   : > { %8390 = vmatmul.mubr.msk.bf16.vlgmr.msra.gmra.mxu0 %vm2135_vm5, %v2106_v62  ;;  %v2103_v1 = vmul.f32 %v8781_v48, %v8773_v16  ;;  %v2740_v16 = vpop.permute.xlu0 %2739 }
 0x34e   : > { %8400 = vmatpush3.bf16.msra.mxu0 %v2360_v58  ;;  %8401 = vmatprep.mubr.msk.bf16.mxu0 %vm8951_vm0, %v8950_v59 }
 0x34f   : > { %v2107_v39 = vpack.c.bf16 %v2103_v1, %v2103_v1  ;;  %8411 = vmatprep.subr.bf16.mxu0 %v8950_v59 }
 0x351   : > { %8396 = vmatmul.mubr.msk.bf16.vlgmr.msra.gmra.mxu1 %vm2135_vm5, %v2107_v39  ;;  %v2790_v54 = vpop.permute.xlu0 %2789 }
 0x352   : > { %8406 = vmatpush3.bf16.xpose.msra.mxu1 %v2697_v55  ;;  %8407 = vmatprep.mubr.msk.bf16.mxu1 %vm8951_vm0, %v8950_v59 }
 0x353   : > { %8417 = vmatprep.subr.bf16.mxu1 %v8950_v59 }
 0x359   : > { %8408 = vmatmul.mubr.msk.bf16.vlgmr.msra.gmra.mxu1 %vm1719_vm1, %v2690_v10 }
 0x35a   : > { %8419 = vmatprep.mubr.msk.bf16.mxu1 %vm8951_vm0, %v8950_v59 }
 0x373   : > { %v2096_v13 = vpop.xlane.xlu1 %2095 }
 0x374   : > { %8782 = vrcp.f32 %v2096_v13 }
 0x377   : > { %v2792_v6 = vpop.permute.xlu1 %2791 }
 0x378   : > { %v2797_v14 = vsel %vm1719_vm1, %v2792_v6, 0 }
 0x379   : > { %8418 = vmatpush3.bf16.xpose.msra.mxu1 %v2797_v14 }
 0x37a   : > { %8429 = vmatprep.subr.bf16.mxu1 %v8950_v59 }
 0x37b   : > { %v2842_v26 = vpop.permute.xlu1 %2841 }
 0x37c   : > { %v2847_v23 = vsel %vm1719_vm1, %v2842_v26, 0 }
 0x380   : > { %8420 = vmatmul.mubr.msk.bf16.vlgmr.msra.gmra.mxu1 %vm1719_vm1, %v2790_v54 }
 0x381   : > { %v8783_v5 = vpop.eup %8782  ;;  %8431 = vmatprep.mubr.msk.bf16.mxu1 %vm8951_vm0, %v8950_v59 }
 0x382   : > { %v2104_v15 = vmul.f32 %v8783_v5, %v8775_v19  ;;  %v2840_v19 = vpop.permute.xlu1 %2839 }
 0x384   : > { %v2108_v17 = vpack.c.bf16 %v2104_v15, %v2104_v15 }
 0x386   : > { %8402 = vmatmul.mubr.msk.bf16.vlgmr.msra.gmra.mxu0 %vm2135_vm5, %v2108_v17 }
 0x387   : > { %8412 = vmatpush3.bf16.xpose.msra.mxu0 %v2747_v22  ;;  %8413 = vmatprep.mubr.msk.bf16.mxu0 %vm8951_vm0, %v8950_v59 }
 0x388   : > { %8423 = vmatprep.subr.bf16.mxu0 %v8950_v59 }
 0x38e   : > { %8414 = vmatmul.mubr.msk.bf16.vlgmr.msra.gmra.mxu0 %vm1719_vm1, %v2740_v16 }
 0x38f   : > { %8424 = vmatpush3.bf16.xpose.msra.mxu0 %v2847_v23  ;;  %8425 = vmatprep.mubr.msk.bf16.mxu0 %vm8951_vm0, %v8950_v59 }
 0x390   : > { %8435 = vmatprep.subr.bf16.mxu0 %v8950_v59 }
 0x396   : > { %8426 = vmatmul.mubr.msk.bf16.vlgmr.msra.gmra.mxu0 %vm1719_vm1, %v2840_v19 }
 0x397   : > { %8437 = vmatprep.mubr.msk.bf16.mxu0 %vm8951_vm0, %v8950_v59 }
 0x409   : > { %v2180_v28 = vpop.f32.mrf.mxu1 }
 0x40a   : > { %v2406_v30 = vcombine.high %v2180_v28, %v2180_v28  ;;  %v2413_v36 = vrot.slane %v2180_v28, %v9203_v21 }
 0x40b   : > { %v8385_v32 = vpop.f32.mrf.mxu1 }
 0x40c   : > { %v2421_v37 = vcombine.high %v2413_v36, %v2413_v36  ;;  %v2420_v31 = vrot.slane %v2406_v30, %v9203_v21  ;;  %v2428_v48 = vrot.slane %v2413_v36, %v9203_v21 }
 0x40d   : > { %v2183_v43 = vpop.f32.mrf.mxu1  ;;  %v2252_v62 = vpop.f32.mrf.mxu0 }
 0x40e   : > { %v2442_v58 = vrot.slane %v2421_v37, %v9203_v21  ;;  %v2445_v1 = vcombine.high %v2252_v62, %v2252_v62  ;;  %v2452_v27 = vrot.slane %v2252_v62, %v9203_v21  ;;  %v2435_v14 = vrot.slane %v2420_v31, %v9203_v21 }
 0x40f   : > { %v8386_v39 = vpop.f32.mrf.mxu1  ;;  %v8391_v55 = vpop.f32.mrf.mxu0 }
 0x410   : > { %v2562_v9 = vcombine.low %v2428_v48, %v2442_v58  ;;  %v8105_v10 = vcombine.high %v2428_v48, %v2442_v58  ;;  %v2459_v13 = vrot.slane %v2445_v1, %v9203_v21  ;;  %v2460_v6 = vcombine.high %v2452_v27, %v2452_v27 }
 0x411   : > { %v2467_v16 = vrot.slane %v2452_v27, %v9203_v21  ;;  %v2324_v54 = vpop.f32.mrf.mxu1  ;;  %v2255_v5 = vpop.f32.mrf.mxu0 }
 0x412   : > { %v2572_v15 = vrot.slane %v2562_v9, %v9203_v21  ;;  %v2579_v17 = vrot.slane %v8105_v10, %v9203_v21  ;;  %v2481_v22 = vrot.slane %v2460_v6, %v9203_v21  ;;  %v2491_v19 = vrot.slane %v2324_v54, %v9203_v21 }
 0x413   : > { %v2482_v26 = vcombine.high %v2467_v16, %v2467_v16  ;;  %v2564_v23 = vcombine.low %v2435_v14, %v2467_v16  ;;  %v8397_v28 = vpop.f32.mrf.mxu1  ;;  %v8392_v30 = vpop.f32.mrf.mxu0  ;;  %v2474_v36 = vrot.slane %v2459_v13, %v9203_v21 }
 0x414   : > { %v2483_v32 = vcombine.high %v2481_v22, %v2481_v22  ;;  %v2499_v31 = vcombine.high %v2491_v19, %v2491_v19  ;;  %v2594_v62 = vcombine.low %v2572_v15, %v2579_v17  ;;  %v2506_v27 = vrot.slane %v2491_v19, %v9203_v21 }
 0x415   : > { %v2565_v37 = vcombine.low %v2481_v22, %v2482_v26  ;;  %v2327_v43 = vpop.f32.mrf.mxu1  ;;  %v2586_v58 = vrot.slane %v2564_v23, %v9203_v21  ;;  %v2484_v30 = vcombine.high %v2324_v54, %v2324_v54 }
 0x416   : > { %v2611_v48 = vcombine.low %v2483_v32, %v2474_v36  ;;  %v2520_v39 = vrot.slane %v2499_v31, %v9203_v21  ;;  %v2602_v15 = vrot.slane %v2594_v62, %v9203_v21 }
 0x417   : > { %v2593_v1 = vrot.slane %v2565_v37, %v9203_v21  ;;  %v8398_v55 = vpop.f32.mrf.mxu1  ;;  %v2498_v31 = vrot.slane %v2484_v30, %v9203_v21 }
 0x418   : > { %v2621_v10 = vrot.slane %v2611_v48, %v9203_v21  ;;  %v2612_v6 = vcombine.low %v2506_v27, %v2520_v39  ;;  %v8106_v55 = vcombine.high %v2506_v27, %v2520_v39 }
 0x419   : > { %v2595_v9 = vcombine.low %v2586_v58, %v2593_v1  ;;  %v2733_v13 = vpop.f32.mrf.mxu1  ;;  %v2513_v1 = vrot.slane %v2498_v31, %v9203_v21 }
 0x41a   : > { %v2889_v14 = vsel %vm2060_vm4, %v2733_v13, -inf  ;;  %v2628_v16 = vrot.slane %v2612_v6, %v9203_v21 }
 0x41b   : > { %2890 = vmax.xlane.f32.xlu0 %v2889_v14  ;;  %v8409_v5 = vpop.f32.mrf.mxu1  ;;  %v2609_v17 = vrot.slane %v2595_v9, %v9203_v21  ;;  %v2635_v14 = vrot.slane %v8106_v55, %v9203_v21 }
 0x41c   : > { %v2643_v22 = vcombine.low %v2621_v10, %v2628_v16 }
 0x41d   : > { %v2736_v26 = vpop.f32.mrf.mxu1  ;;  %v9580_v23 = vcombine.low %v2602_v15, %v2609_v17 }
 0x41e   : > { %v2651_v27 = vrot.slane %v2643_v22, %v9203_v21 }
 0x41f   : > { %v8410_v19 = vpop.f32.mrf.mxu1 }
 0x440   : > { %v2833_v28 = vpop.f32.mrf.mxu1 }
 0x441   : > { %v2895_v36 = vsel %vm2060_vm4, %v2833_v28, -inf }
 0x442   : > { %2896 = vmax.xlane.f32.xlu0 %v2895_v36  ;;  %v8421_v32 = vpop.f32.mrf.mxu1 }
 0x444   : > { %v2836_v37 = vpop.f32.mrf.mxu1 }
 0x446   : > { %v9584_v43 = vpop.f32.mrf.mxu0  ;;  %v8422_v48 = vpop.f32.mrf.mxu1 }
 0x447   : > { %v9588_v62 = vrot.slane %v9584_v43, %v9203_v21 }
 0x448   : > { %v8403_v58 = vpop.f32.mrf.mxu0 }
 0x449   : > { %v9593_v54 = vrot.slane %v9588_v62, %v9203_v21 }
 0x44a   : > { %v2399_v9 = vpop.f32.mrf.mxu0 }
 0x44b   : > { %v2614_v10 = vcombine.low %v2513_v1, %v9593_v54 }
 0x44c   : > { %v8404_v6 = vpop.f32.mrf.mxu0 }
 0x44d   : > { %v2642_v16 = vrot.slane %v2614_v10, %v9203_v21 }
 0x44e   : > { %v2783_v5 = vpop.f32.mrf.mxu0 }
 0x44f   : > { %v2644_v15 = vcombine.low %v2635_v14, %v2642_v16  ;;  %v2892_v17 = vsel %vm2060_vm4, %v2783_v5, -inf }
 0x450   : > { %2893 = vmax.xlane.f32.xlu1 %v2892_v17  ;;  %v8415_v26 = vpop.f32.mrf.mxu0 }
 0x451   : > { %v2658_v39 = vrot.slane %v2644_v15, %v9203_v21 }
 0x452   : > { %v2786_v19 = vpop.f32.mrf.mxu0 }
 0x453   : > { %v9601_v30 = vcombine.low %v2651_v27, %v2658_v39 }
 0x454   : > { %v8416_v36 = vpop.f32.mrf.mxu0 }
 0x455   : > { %v2687_v32 = vpack.c.bf16 %v9601_v30, %v9580_v23 }
 0x456   : > { %v2883_v37 = vpop.f32.mrf.mxu0 }
 0x457   : > { %v2898_v31 = vsel %vm2060_vm4, %v2883_v37, -inf }
 0x458   : > { %2899 = vmax.xlane.f32.xlu0 %v2898_v31  ;;  %v8427_v48 = vpop.f32.mrf.mxu0 }
 0x45a   : > { %v2886_v58 = vpop.f32.mrf.mxu0 }
 0x45c   : > { %v8428_v1 = vpop.f32.mrf.mxu0 }
 0x4a4   : > { %v2891_v55 = vpop.xlane.xlu0 %2890 }
 0x4a5   : > { %v2901_v9 = vsub.f32 %v2733_v13, %v2891_v55 }
 0x4a7   : > { %v2905_v10 = vmul.f32 1.442695, %v2901_v9 }
 0x4a9   : > { %8784 = vpow2.f32 %v2905_v10 }
 0x4b6   : > { %v8785_v22 = vpop.eup %8784 }
 0x4b7   : > { %v2913_v6 = vsel %vm2060_vm4, %v8785_v22, 0.0 }
 0x4b8   : > { %2914 = vadd.xlane.f32.xlu0 %v2913_v6 }
 0x4cb   : > { %v2897_v14 = vpop.xlane.xlu0 %2896 }
 0x4cc   : > { %v2903_v16 = vsub.f32 %v2833_v28, %v2897_v14 }
 0x4ce   : > { %v2909_v15 = vmul.f32 1.442695, %v2903_v16 }
 0x4d0   : > { %8786 = vpow2.f32 %v2909_v15 }
 0x4d9   : > { %v2894_v17 = vpop.xlane.xlu1 %2893 }
 0x4da   : > { %v2902_v26 = vsub.f32 %v2783_v5, %v2894_v17 }
 0x4dc   : > { %v2907_v27 = vmul.f32 1.442695, %v2902_v26 }
 0x4dd   : > { %v8787_v39 = vpop.eup %8786 }
 0x4de   : > { %8788 = vpow2.f32 %v2907_v27  ;;  %v2919_v19 = vsel %vm2060_vm4, %v8787_v39, 0.0 }
 0x4df   : > { %2920 = vadd.xlane.f32.xlu0 %v2919_v19 }
 0x4e1   : > { %v2900_v28 = vpop.xlane.xlu0 %2899 }
 0x4e2   : > { %v2904_v5 = vsub.f32 %v2883_v37, %v2900_v28 }
 0x4e4   : > { %v2911_v31 = vmul.f32 1.442695, %v2904_v5 }
 0x4e6   : > { %8790 = vpow2.f32 %v2911_v31 }
 0x4eb   : > { %v8789_v36 = vpop.eup %8788 }
 0x4ec   : > { %v2916_v13 = vsel %vm2060_vm4, %v8789_v36, 0.0 }
 0x4ed   : > { %2917 = vadd.xlane.f32.xlu1 %v2916_v13 }
 0x4f3   : > { %v8791_v48 = vpop.eup %8790 }
 0x4f4   : > { %v2922_v58 = vsel %vm2060_vm4, %v8791_v48, 0.0 }
 0x4f5   : > { %2937 = vrot.lane.b32.xlu0 %v9471_v12, %s8953_s2 }
 0x4f9   : > { %3550 = vrot.lane.b32.xlu0 %v9376_v2, %s8954_s7 }
 0x4fd   : > { %3548 = vrot.lane.b32.xlu0 %v9402_v33, %s8954_s7 }
 0x4fe   : > { %2985 = vrot.lane.b32.xlu1 %v9474_v40, %s8953_s2 }
 0x501   : > { %3598 = vrot.lane.b32.xlu0 %v9411_v45, %s8954_s7 }
 0x502   : > { %3033 = vrot.lane.b32.xlu1 %v9512_v35, %s8953_s2 }
 0x505   : > { %3648 = vrot.lane.b32.xlu0 %v9428_v3, %s8954_s7 }
 0x526   : > { %2923 = vadd.xlane.f32.xlu1 %v2922_v58  ;;  %v2523_v58 = vcombine.high %v9584_v43, %v9584_v43 }
 0x537   : > { %3081 = vrot.lane.b32.xlu1 %v9520_v41, %s8953_s2 }
 0x53b   : > { %3600 = vrot.lane.b32.xlu1 %v9385_v4, %s8954_s7 }
 0x53f   : > { %3650 = vrot.lane.b32.xlu1 %v9396_v20, %s8954_s7 }
 0x541   : > { %v2915_v37 = vpop.xlane.xlu0 %2914 }
 0x542   : > { %8792 = vrcp.f32 %v2915_v37 }
 0x543   : > { %3700 = vrot.lane.b32.xlu1 %v9421_v44, %s8954_s7 }
 0x547   : > { %3698 = vrot.lane.b32.xlu1 %v9436_v7, %s8954_s7 }
 0x54f   : > { %v8793_v55 = vpop.eup %8792 }
 0x550   : > { %v2929_v10 = vmul.f32 %v8793_v55, %v8785_v22  ;;  %v2537_v55 = vrot.slane %v2523_v58, %v9203_v21 }
 0x552   : > { %v2933_v14 = vpack.c.bf16 %v2929_v10, %v2929_v10 }
 0x568   : > { %v2921_v1 = vpop.xlane.xlu0 %2920 }
 0x569   : > { %8794 = vrcp.f32 %v2921_v1 }
 0x56c   : > { %v2938_v9 = vpop.permute.xlu0 %2937 }
 0x56d   : > { %v2943_v6 = vand.u32 %v2938_v9, %v9478_v63 }
 0x56f   : > { %8430 = vmatpush3.bf16.msra.mxu1 %v2943_v6 }
 0x570   : > { %8441 = vmatprep.subr.bf16.mxu1 %v8950_v59 }
 0x572   : > { %8432 = vmatmul.mubr.msk.bf16.vlgmr.msra.gmra.mxu1 %vm2135_vm5, %v2933_v14  ;;  %v2552_v14 = vrot.slane %v2537_v55, %v9203_v21  ;;  %v8723_v55 = vld [vmem:[%s9142_s29 + $0x10] sm:$0xff]  }
 0x573   : > { %8443 = vmatprep.mubr.msk.bf16.mxu1 %vm8951_vm0, %v8950_v59 }
 0x576   : > { %v2918_v16 = vpop.xlane.xlu1 %2917  ;;  %v8795_v17 = vpop.eup %8794 }
 0x577   : > { %8796 = vrcp.f32 %v2918_v16  ;;  %v2931_v27 = vmul.f32 %v8795_v17, %v8787_v39  ;;  %v2538_v39 = vcombine.high %v9588_v62, %v9588_v62  ;;  %v2560_v62 = vcombine.high %v9593_v54, %v9593_v54 }
 0x579   : > { %v2935_v13 = vpack.c.bf16 %v2931_v27, %v2931_v27  ;;  %v2559_v1 = vrot.slane %v2538_v39, %v9203_v21 }
 0x57a   : > { %v2986_v15 = vpop.permute.xlu1 %2985 }
 0x57b   : > { %v2991_v26 = vand.u32 %v2986_v15, %v9478_v63  ;;  %v2561_v10 = vcombine.high %v2559_v1, %v2559_v1  ;;  %v2660_v16 = vcombine.low %v2559_v1, %v2560_v62  ;;  %v8722_v1 = vld [vmem:[%s9142_s29 + $0x18] sm:$0xff]  }
 0x57d   : > { %8436 = vmatpush3.bf16.msra.mxu0 %v2991_v26  ;;  %v2661_v43 = vcombine.low %v2561_v10, %v2552_v14  ;;  %v2668_v26 = vrot.slane %v2660_v16, %v9203_v21 }
 0x57e   : > { %v3034_v22 = vpop.permute.xlu1 %3033  ;;  %8447 = vmatprep.subr.bf16.mxu0 %v8950_v59 }
 0x57f   : > { %v3039_v19 = vand.u32 %v3034_v22, %v9478_v63  ;;  %v2675_v15 = vrot.slane %v2661_v43, %v9203_v21 }
 0x581   : > { %8442 = vmatpush3.bf16.msra.mxu1 %v3039_v19  ;;  %v2676_v27 = vcombine.low %v2668_v26, %v2675_v15 }
 0x582   : > { %8453 = vmatprep.subr.bf16.mxu1 %v8722_v1 }
 0x583   : > { %v2683_v54 = vrot.slane %v2676_v27, %v9203_v21 }
 0x584   : > { %v8797_v28 = vpop.eup %8796  ;;  %8444 = vmatmul.mubr.msk.bf16.vlgmr.msra.gmra.mxu1 %vm2135_vm5, %v2935_v13  ;;  %v8721_v13 = vld [vmem:[%s9142_s29] sm:$0xff]  }
 0x585   : > { %v2930_v5 = vmul.f32 %v8797_v28, %v8789_v36  ;;  %v8720_v36 = vld [vmem:[%s9142_s29 + $0x8] sm:$0xff]   ;;  %8454 = vmatpush3.bf16.msra.mxu1 %v8722_v1 }
 0x586   : > { %8455 = vmatprep.subr.bf16.mxu1 %v8723_v55 }
 0x587   : > { %v2934_v31 = vpack.c.bf16 %v2930_v5, %v2930_v5  ;;  %v9666_v5 = vpop.permute.xlu0 %3550 }
 0x589   : > { %8438 = vmatmul.mubr.msk.bf16.vlgmr.msra.gmra.mxu0 %vm2135_vm5, %v2934_v31  ;;  %8456 = vmatpush3.bf16.msra.mxu1 %v8723_v55 }
 0x58a   : > { %8449 = vmatprep.mubr.msk.bf16.mxu0 %vm8951_vm0, %v8950_v59  ;;  %8469 = vmatprep.subr.bf16.mxu1 %v8950_v59 }
 0x58b   : > { %v9673_v23 = vpop.permute.xlu0 %3548 }
 0x5af   : > { %v2924_v37 = vpop.xlane.xlu1 %2923 }
 0x5b0   : > { %8798 = vrcp.f32 %v2924_v37 }
 0x5b3   : > { %v3082_v9 = vpop.permute.xlu1 %3081 }
 0x5b4   : > { %v3087_v6 = vand.u32 %v3082_v9, %v9478_v63 }
 0x5b6   : > { %8448 = vmatpush3.bf16.msra.mxu0 %v3087_v6 }
 0x5b7   : > { %8461 = vmatprep.subr.bf16.mxu0 %v8720_v36  ;;  %v3601_v28 = vpop.permute.xlu1 %3600 }
 0x5b8   : > { %v3606_v39 = vsel %vm1719_vm1, %v3601_v28, 0 }
 0x5bb   : > { %v9669_v31 = vpop.permute.xlu1 %3650 }
 0x5bd   : > { %v8799_v17 = vpop.eup %8798 }
 0x5be   : > { %v2932_v22 = vmul.f32 %v8799_v17, %v8791_v48  ;;  %v2688_v48 = vpack.c.bf16 %v2683_v54, %v2683_v54 }
 0x5bf   : > { %v3701_v30 = vpop.permute.xlu1 %3700 }
 0x5c0   : > { %v2936_v19 = vpack.c.bf16 %v2932_v22, %v2932_v22  ;;  %v3706_v58 = vsel %vm1719_vm1, %v3701_v30, 0 }
 0x5c2   : > { %8450 = vmatmul.mubr.msk.bf16.vlgmr.msra.gmra.mxu0 %vm2135_vm5, %v2936_v19 }
 0x5c3   : > { %8462 = vmatpush3.bf16.msra.mxu0 %v8720_v36  ;;  %8465 = vmatprep.mubr.msk.bf16.mxu0 %vm1719_vm1, %v2687_v32  ;;  %v3599_v32 = vpop.permute.xlu0 %3598  ;;  %v3699_v37 = vpop.permute.xlu1 %3698 }
 0x5c4   : > { %8463 = vmatprep.subr.bf16.mxu0 %v8721_v13 }
 0x5c7   : > { %8464 = vmatpush3.bf16.msra.mxu0 %v8721_v13 }
 0x5c8   : > { %8475 = vmatprep.subr.bf16.mxu0 %v8950_v59 }
 0x5ca   : > { %8466 = vmatmul.mubr.msk.bf16.vlgmr.msra.gmra.mxu0 %vm1719_vm1, %v2688_v48 }
 0x5cb   : > { %8476 = vmatpush3.bf16.xpose.msra.mxu0 %v3606_v39  ;;  %8477 = vmatprep.mubr.msk.bf16.mxu0 %vm8951_vm0, %v8950_v59 }
 0x5cc   : > { %8487 = vmatprep.subr.bf16.mxu0 %v8950_v59 }
 0x5d2   : > { %8478 = vmatmul.mubr.msk.bf16.vlgmr.msra.gmra.mxu0 %vm1719_vm1, %v3599_v32 }
 0x5d3   : > { %8488 = vmatpush3.bf16.xpose.msra.mxu0 %v3706_v58  ;;  %8489 = vmatprep.mubr.msk.bf16.mxu0 %vm8951_vm0, %v8950_v59 }
 0x5d4   : > { %8499 = vmatprep.subr.bf16.mxu0 %v8950_v59 }
 0x5da   : > { %8490 = vmatmul.mubr.msk.bf16.vlgmr.msra.gmra.mxu0 %vm1719_vm1, %v3699_v37 }
 0x5db   : > { %8501 = vmatprep.mubr.msk.bf16.mxu0 %vm8951_vm0, %v8950_v59 }
 0x632   : > { %v2979_v9 = vpop.f32.mrf.mxu1 }
 0x633   : > { %v3140_v19 = vrot.slane %v2979_v9, %v9203_v21  ;;  %v3133_v48 = vcombine.high %v2979_v9, %v2979_v9 }
 0x634   : > { %v8433_v36 = vpop.f32.mrf.mxu1 }
 0x635   : > { %v3148_v39 = vcombine.high %v3140_v19, %v3140_v19  ;;  %v3147_v1 = vrot.slane %v3133_v48, %v9203_v21 }
 0x636   : > { %v2982_v10 = vpop.f32.mrf.mxu1 }
 0x637   : > { %v3169_v55 = vrot.slane %v3148_v39, %v9203_v21 }
 0x638   : > { %v8434_v6 = vpop.f32.mrf.mxu1 }
 0x644   : > { %v3075_v14 = vpop.f32.mrf.mxu1 }
 0x645   : > { %v3218_v28 = vrot.slane %v3075_v14, %v9203_v21  ;;  %v3211_v10 = vcombine.high %v3075_v14, %v3075_v14 }
 0x646   : > { %v8445_v62 = vpop.f32.mrf.mxu1 }
 0x647   : > { %v3226_v58 = vcombine.high %v3218_v28, %v3218_v28  ;;  %v3155_v62 = vrot.slane %v3140_v19, %v9203_v21 }
 0x648   : > { %v3078_v43 = vpop.f32.mrf.mxu1 }
 0x649   : > { %v3027_v16 = vpop.f32.mrf.mxu0  ;;  %v3247_v43 = vrot.slane %v3226_v58, %v9203_v21 }
 0x64a   : > { %v8446_v15 = vpop.f32.mrf.mxu1  ;;  %v3179_v27 = vrot.slane %v3027_v16, %v9203_v21  ;;  %v3172_v54 = vcombine.high %v3027_v16, %v3027_v16  ;;  %v3162_v16 = vrot.slane %v3147_v1, %v9203_v21 }
 0x64b   : > { %v8439_v17 = vpop.f32.mrf.mxu0  ;;  %v3289_v15 = vcombine.low %v3155_v62, %v3169_v55 }
 0x64c   : > { %v3187_v13 = vcombine.high %v3179_v27, %v3179_v27  ;;  %v3194_v30 = vrot.slane %v3179_v27, %v9203_v21  ;;  %v3186_v37 = vrot.slane %v3172_v54, %v9203_v21  ;;  %v3233_v27 = vrot.slane %v3218_v28, %v9203_v21 }
 0x64d   : > { %v3030_v26 = vpop.f32.mrf.mxu0  ;;  %v3299_v39 = vrot.slane %v3289_v15, %v9203_v21 }
 0x64e   : > { %v3208_v32 = vrot.slane %v3187_v13, %v9203_v21  ;;  %v3209_v36 = vcombine.high %v3194_v30, %v3194_v30  ;;  %v3201_v9 = vrot.slane %v3186_v37, %v9203_v21  ;;  %v8115_v26 = vcombine.high %v3155_v62, %v3169_v55 }
 0x64f   : > { %v8440_v22 = vpop.f32.mrf.mxu0  ;;  %v3291_v54 = vcombine.low %v3162_v16, %v3194_v30  ;;  %v3339_v48 = vcombine.low %v3233_v27, %v3247_v43  ;;  %v8116_v55 = vcombine.high %v3233_v27, %v3247_v43 }
 0x650   : > { %v3210_v6 = vcombine.high %v3208_v32, %v3208_v32  ;;  %v3292_v17 = vcombine.low %v3208_v32, %v3209_v36  ;;  %v3225_v22 = vrot.slane %v3211_v10, %v9203_v21  ;;  %v3306_v1 = vrot.slane %v8115_v26, %v9203_v21 }
 0x651   : > { %v3313_v28 = vrot.slane %v3291_v54, %v9203_v21  ;;  %v3362_v43 = vrot.slane %v8116_v55, %v9203_v21 }
 0x652   : > { %v3338_v13 = vcombine.low %v3210_v6, %v3201_v9  ;;  %v3320_v19 = vrot.slane %v3292_v17, %v9203_v21  ;;  %v3240_v32 = vrot.slane %v3225_v22, %v9203_v21  ;;  %v3355_v9 = vrot.slane %v3339_v48, %v9203_v21 }
 0x653   : > { %v3321_v22 = vcombine.low %v3299_v39, %v3306_v1 }
 0x654   : > { %v3348_v36 = vrot.slane %v3338_v13, %v9203_v21  ;;  %v3322_v15 = vcombine.low %v3313_v28, %v3320_v19 }
 0x655   : > { %v3329_v39 = vrot.slane %v3321_v22, %v9203_v21 }
 0x656   : > { %v3370_v27 = vcombine.low %v3348_v36, %v3355_v9  ;;  %v3336_v19 = vrot.slane %v3322_v15, %v9203_v21 }
 0x658   : > { %v3378_v55 = vrot.slane %v3370_v27, %v9203_v21  ;;  %v3556_v27 = vsel %vm1719_vm1, %v9666_v5, 0 }
 0x682   : > { %v3123_v14 = vpop.f32.mrf.mxu0 }
 0x683   : > { %v3250_v58 = vcombine.high %v3123_v14, %v3123_v14  ;;  %v3257_v37 = vrot.slane %v3123_v14, %v9203_v21 }
 0x684   : > { %v8451_v10 = vpop.f32.mrf.mxu0 }
 0x685   : > { %v3264_v30 = vrot.slane %v3250_v58, %v9203_v21  ;;  %v3265_v6 = vcombine.high %v3257_v37, %v3257_v37  ;;  %v3272_v62 = vrot.slane %v3257_v37, %v9203_v21 }
 0x686   : > { %v3126_v16 = vpop.f32.mrf.mxu0 }
 0x687   : > { %v3286_v17 = vrot.slane %v3265_v6, %v9203_v21  ;;  %v3287_v26 = vcombine.high %v3272_v62, %v3272_v62  ;;  %v3341_v14 = vcombine.low %v3240_v32, %v3272_v62  ;;  %v3279_v54 = vrot.slane %v3264_v30, %v9203_v21 }
 0x688   : > { %v8452_v13 = vpop.f32.mrf.mxu0  ;;  %v3337_v62 = vcombine.low %v3329_v39, %v3336_v19  ;;  %v3649_v19 = vpop.permute.xlu0 %3648 }
 0x689   : > { %v3288_v10 = vcombine.high %v3286_v17, %v3286_v17  ;;  %v3369_v58 = vrot.slane %v3341_v14, %v9203_v21  ;;  %v3387_v11 = vcombine.low %v3286_v17, %v3287_v26 }
 0x68a   : > { %v9717_v37 = vpop.f32.mrf.mxu0 }
 0x68b   : > { %v3371_v48 = vcombine.low %v3362_v43, %v3369_v58  ;;  %v3388_v16 = vcombine.low %v3288_v10, %v3279_v54  ;;  %v3395_v1 = vrot.slane %v3387_v11, %v9203_v21 }
 0x68c   : > { %v9720_v28 = vpop.f32.mrf.mxu0 }
 0x68d   : > { %v3402_v32 = vrot.slane %v3388_v16, %v9203_v21  ;;  %v3385_v36 = vrot.slane %v3371_v48, %v9203_v21  ;;  %v3656_v48 = vsel %vm1719_vm1, %v9669_v31, 0 }
 0x68e   : > { %v8468_v30 = vpop.f32.mrf.mxu0 }
 0x68f   : > { %v3403_v6 = vcombine.low %v3395_v1, %v3402_v32  ;;  %v3386_v9 = vcombine.low %v3378_v55, %v3385_v36 }
 0x690   : > { %v9727_v17 = vpop.f32.mrf.mxu0 }
 0x691   : > { %v3414_v26 = vpack.c.bf16 %v3386_v9, %v3337_v62  ;;  %v3410_v15 = vrot.slane %v3403_v6, %v9203_v21 }
 0x692   : > { %v3642_v14 = vpop.f32.mrf.mxu0 }
 0x693   : > { %8457 = vmatprep.mubr.msk.bf16.mxu1 %vm1719_vm1, %v3414_v26  ;;  %v3751_v11 = vsel %vm2060_vm4, %v3642_v14, -inf  ;;  %v3415_v22 = vpack.c.bf16 %v3410_v15, %v3410_v15 }
 0x694   : > { %3752 = vmax.xlane.f32.xlu1 %v3751_v11  ;;  %v8479_v43 = vpop.f32.mrf.mxu0 }
 0x695   : > { %8458 = vmatmul.mubr.msk.bf16.vlgmr.msra.gmra.mxu1 %vm1719_vm1, %v3415_v22 }
 0x696   : > { %8470 = vmatpush3.bf16.xpose.msra.mxu1 %v3556_v27  ;;  %v3645_v13 = vpop.f32.mrf.mxu0  ;;  %8471 = vmatprep.mubr.msk.bf16.mxu1 %vm8951_vm0, %v8950_v59 }
 0x697   : > { %8481 = vmatprep.subr.bf16.mxu1 %v8950_v59 }
 0x698   : > { %v8480_v54 = vpop.f32.mrf.mxu0 }
 0x69a   : > { %v3742_v10 = vpop.f32.mrf.mxu0 }
 0x69b   : > { %v3757_v13 = vsel %vm2060_vm4, %v3742_v10, -inf }
 0x69c   : > { %v8491_v58 = vpop.f32.mrf.mxu0 }
 0x69d   : > { %8472 = vmatmul.mubr.msk.bf16.vlgmr.msra.gmra.mxu1 %vm1719_vm1, %v9673_v23 }
 0x69e   : > { %8482 = vmatpush3.bf16.xpose.msra.mxu1 %v3656_v48  ;;  %v3745_v5 = vpop.f32.mrf.mxu0  ;;  %8483 = vmatprep.mubr.msk.bf16.mxu1 %vm8951_vm0, %v8950_v59 }
 0x69f   : > { %8493 = vmatprep.subr.bf16.mxu1 %v8950_v59 }
 0x6a0   : > { %v8492_v16 = vpop.f32.mrf.mxu0 }
 0x6a5   : > { %8484 = vmatmul.mubr.msk.bf16.vlgmr.msra.gmra.mxu1 %vm1719_vm1, %v3649_v19 }
 0x6a6   : > { %8495 = vmatprep.mubr.msk.bf16.mxu1 %vm8951_vm0, %v8950_v59 }
 0x71d   : > { %v3753_v39 = vpop.xlane.xlu1 %3752 }
 0x71e   : > { %v3761_v1 = vsub.f32 %v3642_v14, %v3753_v39 }
 0x720   : > { %v3766_v31 = vmul.f32 1.442695, %v3761_v1 }
 0x722   : > { %8800 = vpow2.f32 %v3766_v31 }
 0x72f   : > { %v9748_v32 = vpop.eup %8800 }
 0x730   : > { %v3775_v23 = vsel %vm2060_vm4, %v9748_v32, 0.0 }
 0x731   : > { %3776 = vadd.xlane.f32.xlu1 %v3775_v23 }
 0x755   : > { %v9752_v55 = vpop.f32.mrf.mxu1 }
 0x757   : > { %v9754_v36 = vpop.f32.mrf.mxu1 }
 0x759   : > { %v8460_v30 = vpop.f32.mrf.mxu1 }
 0x75b   : > { %v9756_v6 = vpop.f32.mrf.mxu1 }
 0x75d   : > { %v3592_v62 = vpop.f32.mrf.mxu1 }
 0x75e   : > { %v3748_v9 = vsel %vm2060_vm4, %v3592_v62, -inf }
 0x75f   : > { %3749 = vmax.xlane.f32.xlu0 %v3748_v9  ;;  %v8473_v26 = vpop.f32.mrf.mxu1 }
 0x761   : > { %v3595_v15 = vpop.f32.mrf.mxu1 }
 0x763   : > { %v8474_v14 = vpop.f32.mrf.mxu1 }
 0x765   : > { %v3692_v11 = vpop.f32.mrf.mxu1 }
 0x766   : > { %v3754_v22 = vsel %vm2060_vm4, %v3692_v11, -inf }
 0x767   : > { %3755 = vmax.xlane.f32.xlu0 %v3754_v22  ;;  %v8485_v43 = vpop.f32.mrf.mxu1 }
 0x769   : > { %v3695_v27 = vpop.f32.mrf.mxu1 }
 0x76b   : > { %v8486_v54 = vpop.f32.mrf.mxu1  ;;  %3758 = vmax.xlane.f32.xlu0 %v3757_v13 }
 0x7e8   : > { %v3750_v58 = vpop.xlane.xlu0 %3749 }
 0x7e9   : > { %v3760_v48 = vsub.f32 %v3592_v62, %v3750_v58 }
 0x7eb   : > { %v3764_v5 = vmul.f32 1.442695, %v3760_v48 }
 0x7ed   : > { %8802 = vpow2.f32 %v3764_v5 }
 0x7f0   : > { %v3756_v16 = vpop.xlane.xlu0 %3755 }
 0x7f1   : > { %v3762_v19 = vsub.f32 %v3692_v11, %v3756_v16 }
 0x7f3   : > { %v3768_v39 = vmul.f32 1.442695, %v3762_v19 }
 0x7f4   : > { %v3759_v1 = vpop.xlane.xlu0 %3758 }
 0x7f5   : > { %8804 = vpow2.f32 %v3768_v39  ;;  %v3763_v31 = vsub.f32 %v3742_v10, %v3759_v1 }
 0x7f7   : > { %v3770_v23 = vmul.f32 1.442695, %v3763_v31 }
 0x7f9   : > { %8806 = vpow2.f32 %v3770_v23 }
 0x7fa   : > { %v8803_v30 = vpop.eup %8802 }
 0x7fb   : > { %v3772_v9 = vsel %vm2060_vm4, %v8803_v30, 0.0 }
 0x7fc   : > { %3773 = vadd.xlane.f32.xlu0 %v3772_v9 }
 0x802   : > { %v8805_v26 = vpop.eup %8804 }
 0x803   : > { %v3778_v15 = vsel %vm2060_vm4, %v8805_v26, 0.0 }
 0x804   : > { %3779 = vadd.xlane.f32.xlu0 %v3778_v15 }
 0x806   : > { %v8807_v14 = vpop.eup %8806 }
 0x807   : > { %v3781_v62 = vsel %vm2060_vm4, %v8807_v14, 0.0 }
 0x808   : > { %3782 = vadd.xlane.f32.xlu1 %v3781_v62 }
 0x819   : > { %3844 = vrot.lane.b32.xlu1 %v9474_v40, %s8954_s7 }
 0x81a   : > { %3796 = vrot.lane.b32.xlu0 %v9471_v12, %s8954_s7 }
 0x81d   : > { %3892 = vrot.lane.b32.xlu1 %v9512_v35, %s8954_s7 }
 0x81e   : > { %4346 = vrot.lane.b32.xlu0 %v9376_v2, %s8955_s13  ;;  %v3777_v2 = vpop.xlane.xlu1 %3776 }
 0x81f   : > { %8808 = vrcp.f32 %v3777_v2 }
 0x821   : > { %3940 = vrot.lane.b32.xlu1 %v9520_v41, %s8954_s7 }
 0x822   : > { %4344 = vrot.lane.b32.xlu0 %v9402_v33, %s8955_s13 }
 0x825   : > { %4396 = vrot.lane.b32.xlu1 %v9385_v4, %s8955_s13 }
 0x826   : > { %4394 = vrot.lane.b32.xlu0 %v9411_v45, %s8955_s13 }
 0x829   : > { %4446 = vrot.lane.b32.xlu1 %v9396_v20, %s8955_s13 }
 0x82a   : > { %4444 = vrot.lane.b32.xlu0 %v9428_v3, %s8955_s13 }
 0x82c   : > { %v8809_v11 = vpop.eup %8808 }
 0x82d   : > { %4496 = vrot.lane.b32.xlu1 %v9421_v44, %s8955_s13  ;;  %v3789_v44 = vmul.f32 %v8809_v11, %v9748_v32 }
 0x82f   : > { %v3793_v54 = vpack.c.bf16 %v3789_v44, %v3789_v44 }
 0x831   : > { %4494 = vrot.lane.b32.xlu1 %v9436_v7, %s8955_s13 }
 0x885   : > { %v3774_v33 = vpop.xlane.xlu0 %3773 }
 0x886   : > { %8810 = vrcp.f32 %v3774_v33  ;;  %v8724_v33 = vld [vmem:[%s9142_s29 + $0x28] sm:$0xff]  }
 0x88d   : > { %v3780_v4 = vpop.xlane.xlu0 %3779 }
 0x88e   : > { %8812 = vrcp.f32 %v3780_v4  ;;  %v8725_v4 = vld [vmem:[%s9142_s29 + $0x20] sm:$0xff]  }
 0x891   : > { %v3783_v10 = vpop.xlane.xlu1 %3782  ;;  %v3797_v45 = vpop.permute.xlu0 %3796 }
 0x892   : > { %8814 = vrcp.f32 %v3783_v10  ;;  %v3802_v20 = vand.u32 %v3797_v45, %v9478_v63 }
 0x893   : > { %v8811_v22 = vpop.eup %8810 }
 0x894   : > { %8494 = vmatpush3.bf16.msra.mxu1 %v3802_v20  ;;  %v3788_v3 = vmul.f32 %v8811_v22, %v8803_v30 }
 0x895   : > { %v3845_v43 = vpop.permute.xlu1 %3844  ;;  %8505 = vmatprep.subr.bf16.mxu1 %v8950_v59  ;;  %v4347_v31 = vpop.permute.xlu0 %4346 }
 0x896   : > { %v3850_v7 = vand.u32 %v3845_v43, %v9478_v63  ;;  %v3792_v27 = vpack.c.bf16 %v3788_v3, %v3788_v3  ;;  %v4352_v9 = vsel %vm1719_vm1, %v4347_v31, 0 }
 0x898   : > { %8496 = vmatmul.mubr.msk.bf16.vlgmr.msra.gmra.mxu1 %vm2135_vm5, %v3792_v27  ;;  %8500 = vmatpush3.bf16.msra.mxu0 %v3850_v7 }
 0x899   : > { %v3893_v13 = vpop.permute.xlu1 %3892  ;;  %8507 = vmatprep.mubr.msk.bf16.mxu1 %vm8951_vm0, %v8950_v59  ;;  %8511 = vmatprep.subr.bf16.mxu0 %v8950_v59 }
 0x89a   : > { %v3898_v58 = vand.u32 %v3893_v13, %v9478_v63 }
 0x89b   : > { %v8813_v48 = vpop.eup %8812  ;;  %8502 = vmatmul.mubr.msk.bf16.vlgmr.msra.gmra.mxu0 %vm2135_vm5, %v3793_v54 }
 0x89c   : > { %8506 = vmatpush3.bf16.msra.mxu1 %v3898_v58  ;;  %v3790_v32 = vmul.f32 %v8813_v48, %v8805_v26  ;;  %8513 = vmatprep.mubr.msk.bf16.mxu0 %vm8951_vm0, %v8950_v59  ;;  %v4345_v26 = vpop.permute.xlu0 %4344 }
 0x89d   : > { %v3941_v5 = vpop.permute.xlu1 %3940  ;;  %8517 = vmatprep.subr.bf16.mxu1 %v8724_v33 }
 0x89e   : > { %v3946_v16 = vand.u32 %v3941_v5, %v9478_v63  ;;  %v3794_v19 = vpack.c.bf16 %v3790_v32, %v3790_v32 }
 0x89f   : > { %v8815_v39 = vpop.eup %8814 }
 0x8a0   : > { %8508 = vmatmul.mubr.msk.bf16.vlgmr.msra.gmra.mxu1 %vm2135_vm5, %v3794_v19  ;;  %8512 = vmatpush3.bf16.msra.mxu0 %v3946_v16  ;;  %v3791_v1 = vmul.f32 %v8815_v39, %v8807_v14  ;;  %v9812_v62 = vpop.permute.xlu0 %4394 }
 0x8a1   : > { %8525 = vmatprep.subr.bf16.mxu0 %v8950_v59  ;;  %v9803_v30 = vpop.permute.xlu1 %4396  ;;  %8518 = vmatpush3.bf16.msra.mxu1 %v8724_v33 }
 0x8a2   : > { %v3795_v23 = vpack.c.bf16 %v3791_v1, %v3791_v1  ;;  %8519 = vmatprep.subr.bf16.mxu1 %v8725_v4 }
 0x8a4   : > { %8514 = vmatmul.mubr.msk.bf16.vlgmr.msra.gmra.mxu0 %vm2135_vm5, %v3795_v23  ;;  %v4445_v2 = vpop.permute.xlu0 %4444 }
 0x8a5   : > { %8526 = vmatpush3.bf16.xpose.msra.mxu0 %v4352_v9  ;;  %8527 = vmatprep.mubr.msk.bf16.mxu0 %vm8951_vm0, %v8950_v59  ;;  %v4447_v15 = vpop.permute.xlu1 %4446 }
 0x8a6   : > { %8537 = vmatprep.subr.bf16.mxu0 %v8950_v59  ;;  %v4452_v14 = vsel %vm1719_vm1, %v4447_v15, 0  ;;  %8520 = vmatpush3.bf16.msra.mxu1 %v8725_v4 }
 0x8a7   : > { %8531 = vmatprep.subr.bf16.mxu1 %v8950_v59 }
 0x8ac   : > { %8528 = vmatmul.mubr.msk.bf16.vlgmr.msra.gmra.mxu0 %vm1719_vm1, %v4345_v26 }
 0x8ad   : > { %8538 = vmatpush3.bf16.xpose.msra.mxu0 %v4452_v14  ;;  %8539 = vmatprep.mubr.msk.bf16.mxu0 %vm8951_vm0, %v8950_v59 }
 0x8ae   : > { %8549 = vmatprep.subr.bf16.mxu0 %v8950_v59 }
 0x8b4   : > { %8540 = vmatmul.mubr.msk.bf16.vlgmr.msra.gmra.mxu0 %vm1719_vm1, %v4445_v2 }
 0x8b5   : > { %8551 = vmatprep.mubr.msk.bf16.mxu0 %vm8951_vm0, %v8950_v59 }
 0x958   : > { %v3838_v10 = vpop.f32.mrf.mxu1 }
 0x959   : > { %v3992_v45 = vcombine.high %v3838_v10, %v3838_v10  ;;  %v3999_v11 = vrot.slane %v3838_v10, %v9203_v21 }
 0x95a   : > { %v8497_v20 = vpop.f32.mrf.mxu1 }
 0x95b   : > { %v4007_v22 = vcombine.high %v3999_v11, %v3999_v11  ;;  %v3886_v3 = vpop.f32.mrf.mxu0  ;;  %v4006_v43 = vrot.slane %v3992_v45, %v9203_v21  ;;  %v4014_v5 = vrot.slane %v3999_v11, %v9203_v21 }
 0x95c   : > { %v4031_v44 = vcombine.high %v3886_v3, %v3886_v3  ;;  %v4038_v7 = vrot.slane %v3886_v3, %v9203_v21  ;;  %v3841_v27 = vpop.f32.mrf.mxu1 }
 0x95d   : > { %v8503_v13 = vpop.f32.mrf.mxu0  ;;  %v4028_v54 = vrot.slane %v4007_v22, %v9203_v21  ;;  %v4021_v19 = vrot.slane %v4006_v43, %v9203_v21 }
 0x95e   : > { %v4046_v58 = vcombine.high %v4038_v7, %v4038_v7  ;;  %v4053_v48 = vrot.slane %v4038_v7, %v9203_v21  ;;  %v8498_v32 = vpop.f32.mrf.mxu1  ;;  %v4045_v39 = vrot.slane %v4031_v44, %v9203_v21 }
 0x95f   : > { %v3889_v16 = vpop.f32.mrf.mxu0  ;;  %v4148_v14 = vcombine.low %v4014_v5, %v4028_v54  ;;  %v8133_v10 = vcombine.high %v4014_v5, %v4028_v54 }
 0x960   : > { %v4067_v1 = vrot.slane %v4046_v58, %v9203_v21  ;;  %v4068_v31 = vcombine.high %v4053_v48, %v4053_v48  ;;  %v3934_v23 = vpop.f32.mrf.mxu1  ;;  %v4060_v11 = vrot.slane %v4045_v39, %v9203_v21  ;;  %v4150_v20 = vcombine.low %v4021_v19, %v4053_v48 }
 0x961   : > { %v4070_v9 = vcombine.high %v3934_v23, %v3934_v23  ;;  %v4077_v26 = vrot.slane %v3934_v23, %v9203_v21  ;;  %v8504_v15 = vpop.f32.mrf.mxu0  ;;  %v4158_v58 = vrot.slane %v4148_v14, %v9203_v21  ;;  %v4165_v48 = vrot.slane %v8133_v10, %v9203_v21 }
 0x962   : > { %v4069_v2 = vcombine.high %v4067_v1, %v4067_v1  ;;  %v4151_v33 = vcombine.low %v4067_v1, %v4068_v31  ;;  %v8509_v4 = vpop.f32.mrf.mxu1  ;;  %v4172_v31 = vrot.slane %v4150_v20, %v9203_v21 }
 0x963   : > { %v4085_v45 = vcombine.high %v4077_v26, %v4077_v26  ;;  %v4084_v22 = vrot.slane %v4070_v9, %v9203_v21  ;;  %v4092_v44 = vrot.slane %v4077_v26, %v9203_v21 }
 0x964   : > { %v3937_v3 = vpop.f32.mrf.mxu1  ;;  %v3982_v43 = vpop.f32.mrf.mxu0  ;;  %v4179_v32 = vrot.slane %v4151_v33, %v9203_v21  ;;  %v4197_v54 = vcombine.low %v4069_v2, %v4060_v11 }
 0x965   : > { %v4106_v7 = vrot.slane %v4085_v45, %v9203_v21  ;;  %v4109_v27 = vcombine.high %v3982_v43, %v3982_v43  ;;  %v4116_v13 = vrot.slane %v3982_v43, %v9203_v21  ;;  %v4099_v23 = vrot.slane %v4084_v22, %v9203_v21 }
 0x966   : > { %v8510_v5 = vpop.f32.mrf.mxu1  ;;  %v8515_v16 = vpop.f32.mrf.mxu0  ;;  %v4181_v33 = vcombine.low %v4172_v31, %v4179_v32  ;;  %v4207_v4 = vrot.slane %v4197_v54, %v9203_v21  ;;  %v4180_v3 = vcombine.low %v4158_v58, %v4165_v48 }
 0x967   : > { %v4198_v19 = vcombine.low %v4092_v44, %v4106_v7  ;;  %v4123_v39 = vrot.slane %v4109_v27, %v9203_v21  ;;  %v4124_v1 = vcombine.high %v4116_v13, %v4116_v13  ;;  %v8134_v9 = vcombine.high %v4092_v44, %v4106_v7 }
 0x968   : > { %v4131_v26 = vrot.slane %v4116_v13, %v9203_v21  ;;  %v3985_v15 = vpop.f32.mrf.mxu0 }
 0x969   : > { %v4214_v14 = vrot.slane %v4198_v19, %v9203_v21  ;;  %v4145_v2 = vrot.slane %v4124_v1, %v9203_v21  ;;  %v4138_v43 = vrot.slane %v4123_v39, %v9203_v21  ;;  %v4221_v22 = vrot.slane %v8134_v9, %v9203_v21 }
 0x96a   : > { %v4146_v10 = vcombine.high %v4131_v26, %v4131_v26  ;;  %v4200_v45 = vcombine.low %v4099_v23, %v4131_v26  ;;  %v8516_v11 = vpop.f32.mrf.mxu0  ;;  %v4195_v19 = vrot.slane %v4181_v33, %v9203_v21  ;;  %v4188_v1 = vrot.slane %v4180_v3, %v9203_v21 }
 0x96b   : > { %v4147_v20 = vcombine.high %v4145_v2, %v4145_v2  ;;  %v4229_v44 = vcombine.low %v4207_v4, %v4214_v14  ;;  %v4402_v3 = vsel %vm1719_vm1, %v9803_v30, 0 }
 0x96c   : > { %v4228_v7 = vrot.slane %v4200_v45, %v9203_v21  ;;  %v4246_v27 = vcombine.low %v4145_v2, %v4146_v10  ;;  %v4388_v13 = vpop.f32.mrf.mxu0  ;;  %v4196_v15 = vcombine.low %v4188_v1, %v4195_v19 }
 0x96d   : > { %v4247_v5 = vcombine.low %v4147_v20, %v4138_v43  ;;  %v4544_v16 = vsel %vm2060_vm4, %v4388_v13, -inf  ;;  %v4237_v31 = vrot.slane %v4229_v44, %v9203_v21 }
 0x96e   : > { %v4230_v32 = vcombine.low %v4221_v22, %v4228_v7  ;;  %4545 = vmax.xlane.f32.xlu0 %v4544_v16  ;;  %v8529_v54 = vpop.f32.mrf.mxu0  ;;  %v4254_v58 = vrot.slane %v4246_v27, %v9203_v21  ;;  %v4497_v22 = vpop.permute.xlu1 %4496  ;;  %v3543_v16 = vadd.f32 %v9717_v37, %v9752_v55 }
 0x96f   : > { %v4261_v48 = vrot.slane %v4247_v5, %v9203_v21  ;;  %v4502_v44 = vsel %vm1719_vm1, %v4497_v22, 0 }
 0x970   : > { %v4391_v39 = vpop.f32.mrf.mxu0  ;;  %v4244_v23 = vrot.slane %v4230_v32, %v9203_v21 }
 0x971   : > { %v4262_v9 = vcombine.low %v4254_v58, %v4261_v48 }
 0x972   : > { %v8530_v26 = vpop.f32.mrf.mxu0  ;;  %v4245_v14 = vcombine.low %v4237_v31, %v4244_v23  ;;  %v4495_v30 = vpop.permute.xlu1 %4494  ;;  %v3538_v31 = vadd.f32 %v9727_v17, %v9756_v6 }
 0x973   : > { %v4269_v2 = vrot.slane %v4262_v9, %v9203_v21 }
 0x974   : > { %v4488_v4 = vpop.f32.mrf.mxu0  ;;  %v4273_v10 = vpack.c.bf16 %v4245_v14, %v4196_v15 }
 0x975   : > { %v4550_v33 = vsel %vm2060_vm4, %v4488_v4, -inf  ;;  %v4274_v45 = vpack.c.bf16 %v4269_v2, %v4269_v2 }
 0x976   : > { %8521 = vmatprep.mubr.msk.bf16.mxu1 %vm1719_vm1, %v4273_v10  ;;  %4551 = vmax.xlane.f32.xlu0 %v4550_v33  ;;  %v8541_v11 = vpop.f32.mrf.mxu0 }
 0x977   : > { %8522 = vmatmul.mubr.msk.bf16.vlgmr.msra.gmra.mxu1 %vm1719_vm1, %v4274_v45 }
 0x978   : > { %8532 = vmatpush3.bf16.xpose.msra.mxu1 %v4402_v3  ;;  %v4491_v43 = vpop.f32.mrf.mxu0  ;;  %8533 = vmatprep.mubr.msk.bf16.mxu1 %vm8951_vm0, %v8950_v59 }
 0x979   : > { %8543 = vmatprep.subr.bf16.mxu1 %v8950_v59 }
 0x97a   : > { %v8542_v20 = vpop.f32.mrf.mxu0 }
 0x97f   : > { %8534 = vmatmul.mubr.msk.bf16.vlgmr.msra.gmra.mxu1 %vm1719_vm1, %v9812_v62  ;;  %v3535_v62 = vadd.f32 %v9720_v28, %v9754_v36 }
 0x980   : > { %8544 = vmatpush3.bf16.xpose.msra.mxu1 %v4502_v44  ;;  %8545 = vmatprep.mubr.msk.bf16.mxu1 %vm8951_vm0, %v8950_v59 }
 0x981   : > { %8555 = vmatprep.subr.bf16.mxu1 %v8950_v59 }
 0x987   : > { %8546 = vmatmul.mubr.msk.bf16.vlgmr.msra.gmra.mxu1 %vm1719_vm1, %v4495_v30 }
 0x988   : > { %8557 = vmatprep.mubr.msk.bf16.mxu1 %vm8951_vm0, %v8950_v59 }
 0x9f7   : > { %v4546_v7 = vpop.xlane.xlu0 %4545 }
 0x9f8   : > { %v4556_v27 = vsub.f32 %v4388_v13, %v4546_v7 }
 0x9fa   : > { %v4560_v54 = vmul.f32 1.442695, %v4556_v27 }
 0x9fc   : > { %8816 = vpow2.f32 %v4560_v54 }
 0x9ff   : > { %v4552_v5 = vpop.xlane.xlu0 %4551 }
 0xa00   : > { %v4558_v19 = vsub.f32 %v4488_v4, %v4552_v5 }
 0xa02   : > { %v4564_v13 = vmul.f32 1.442695, %v4558_v19 }
 0xa04   : > { %8818 = vpow2.f32 %v4564_v13 }
 0xa09   : > { %v8817_v2 = vpop.eup %8816 }
 0xa0a   : > { %v4568_v6 = vsel %vm2060_vm4, %v8817_v2, 0.0 }
 0xa11   : > { %v8819_v10 = vpop.eup %8818 }
 0xa12   : > { %v4574_v45 = vsel %vm2060_vm4, %v8819_v10, 0.0 }
 0xa37   : > { %v8523_v32 = vpop.f32.mrf.mxu1 }
 0xa38   : > { %v9880_v58 = vadd.f32 %v8523_v32, %v3543_v16 }
 0xa39   : > { %v4327_v48 = vpop.f32.mrf.mxu1 }
 0xa3a   : > { %v9882_v39 = vadd.f32 %v4327_v48, %v3535_v62 }
 0xa3b   : > { %v8524_v1 = vpop.f32.mrf.mxu1 }
 0xa3d   : > { %v4330_v23 = vpop.f32.mrf.mxu1 }
 0xa3e   : > { %v9886_v9 = vadd.f32 %v4330_v23, %v3538_v31 }
 0xa3f   : > { %v4438_v37 = vpop.f32.mrf.mxu1 }
 0xa40   : > { %v4547_v28 = vsel %vm2060_vm4, %v4438_v37, -inf }
 0xa41   : > { %4548 = vmax.xlane.f32.xlu1 %v4547_v28  ;;  %v8535_v55 = vpop.f32.mrf.mxu1 }
 0xa43   : > { %v4441_v36 = vpop.f32.mrf.mxu1 }
 0xa45   : > { %v8536_v26 = vpop.f32.mrf.mxu1 }
 0xa47   : > { %v4538_v15 = vpop.f32.mrf.mxu1 }
 0xa48   : > { %v4553_v14 = vsel %vm2060_vm4, %v4538_v15, -inf }
 0xa49   : > { %v8547_v4 = vpop.f32.mrf.mxu1  ;;  %4554 = vmax.xlane.f32.xlu0 %v4553_v14 }
 0xa4b   : > { %v4541_v17 = vpop.f32.mrf.mxu1 }
 0xa4d   : > { %v8548_v33 = vpop.f32.mrf.mxu1  ;;  %4569 = vadd.xlane.f32.xlu0 %v4568_v6  ;;  %v11095_v6 = vmov 0  }
 0xa51   : > { %4575 = vadd.xlane.f32.xlu0 %v4574_v45 }
 0xa52   : > { %4640 = vrot.lane.b32.xlu1 %v9474_v40, %s8955_s13 }
 0xa56   : > { %4688 = vrot.lane.b32.xlu1 %v9512_v35, %s8955_s13 }
 0xa67   : > { %4592 = vrot.lane.b32.xlu0 %v9471_v12, %s8955_s13 }
 0xaca   : > { %v4549_v11 = vpop.xlane.xlu1 %4548 }
 0xacb   : > { %v4557_v3 = vsub.f32 %v4438_v37, %v4549_v11 }
 0xacd   : > { %v4562_v43 = vmul.f32 1.442695, %v4557_v3 }
 0xace   : > { %v4641_v20 = vpop.permute.xlu1 %4640 }
 0xacf   : > { %8820 = vpow2.f32 %v4562_v43  ;;  %v4646_v22 = vand.u32 %v4641_v20, %v9478_v63 }
 0xad1   : > { %8556 = vmatpush3.bf16.msra.mxu1 %v4646_v22  ;;  %v8726_v22 = vld [vmem:[%s9142_s29 + $0x38] sm:$0xff]  }
 0xad2   : > { %v4555_v44 = vpop.xlane.xlu0 %4554  ;;  %8567 = vmatprep.subr.bf16.mxu1 %v8950_v59  ;;  %v4689_v19 = vpop.permute.xlu1 %4688 }
 0xad3   : > { %v4559_v30 = vsub.f32 %v4538_v15, %v4555_v44  ;;  %v4694_v13 = vand.u32 %v4689_v19, %v9478_v63  ;;  %v8727_v44 = vld [vmem:[%s9142_s29 + $0x30] sm:$0xff]   ;;  %s11096_s29 = scalar_lea.vmem %s11021_s4, %s9126_s22 }
 0xad5   : > { %v4566_v7 = vmul.f32 1.442695, %v4559_v30 }
 0xad6   : > { %v4570_v40 = vpop.xlane.xlu0 %4569 }
 0xad7   : > { %8822 = vpow2.f32 %v4566_v7 }
 0xad8   : > { %8824 = vrcp.f32 %v4570_v40 }
 0xada   : > { %v4576_v35 = vpop.xlane.xlu0 %4575 }
 0xadb   : > { %8826 = vrcp.f32 %v4576_v35 }
 0xadc   : > { %v8821_v27 = vpop.eup %8820 }
 0xadd   : > { %v4571_v12 = vsel %vm2060_vm4, %v8821_v27, 0.0 }
 0xade   : > { %4572 = vadd.xlane.f32.xlu1 %v4571_v12  ;;  %v4593_v5 = vpop.permute.xlu0 %4592 }
 0xadf   : > { %v4598_v16 = vand.u32 %v4593_v5, %v9478_v63 }
 0xae1   : > { %8550 = vmatpush3.bf16.msra.mxu0 %v4598_v16 }
 0xae2   : > { %8561 = vmatprep.subr.bf16.mxu0 %v8950_v59 }
 0xae4   : > { %v8823_v32 = vpop.eup %8822 }
 0xae5   : > { %v8825_v62 = vpop.eup %8824  ;;  %v4577_v54 = vsel %vm2060_vm4, %v8823_v32, 0.0 }
 0xae6   : > { %4578 = vadd.xlane.f32.xlu1 %v4577_v54  ;;  %v4584_v48 = vmul.f32 %v8825_v62, %v8817_v2 }
 0xae8   : > { %v4588_v1 = vpack.c.bf16 %v4584_v48, %v4584_v48  ;;  %v8827_v31 = vpop.eup %8826 }
 0xae9   : > { %v4586_v23 = vmul.f32 %v8827_v31, %v8819_v10 }
 0xaea   : > { %8552 = vmatmul.mubr.msk.bf16.vlgmr.msra.gmra.mxu0 %vm2135_vm5, %v4588_v1 }
 0xaeb   : > { %8562 = vmatpush3.bf16.msra.mxu0 %v4694_v13  ;;  %8563 = vmatprep.mubr.msk.bf16.mxu0 %vm8951_vm0, %v8950_v59  ;;  %v4590_v37 = vpack.c.bf16 %v4586_v23, %v4586_v23 }
 0xaec   : > { %8573 = vmatprep.subr.bf16.mxu0 %v8726_v22 }
 0xaf2   : > { %8564 = vmatmul.mubr.msk.bf16.vlgmr.msra.gmra.mxu0 %vm2135_vm5, %v4590_v37 }
 0xaf3   : > { %8574 = vmatpush3.bf16.msra.mxu0 %v8726_v22 }
 0xaf4   : > { %8575 = vmatprep.subr.bf16.mxu0 %v8727_v44 }
 0xaf7   : > { %4736 = vrot.lane.b32.xlu1 %v9520_v41, %s8955_s13  ;;  %8576 = vmatpush3.bf16.msra.mxu0 %v8727_v44 }
 0xb67   : > { %v4573_v28 = vpop.xlane.xlu1 %4572 }
 0xb68   : > { %8828 = vrcp.f32 %v4573_v28 }
 0xb6f   : > { %v4579_v55 = vpop.xlane.xlu1 %4578 }
 0xb70   : > { %8830 = vrcp.f32 %v4579_v55 }
 0xb73   : > { %v4737_v26 = vpop.permute.xlu1 %4736 }
 0xb74   : > { %v4742_v2 = vand.u32 %v4737_v26, %v9478_v63 }
 0xb75   : > { %v8829_v36 = vpop.eup %8828 }
 0xb76   : > { %v4585_v15 = vmul.f32 %v8829_v36, %v8821_v27 }
 0xb78   : > { %v4589_v14 = vpack.c.bf16 %v4585_v15, %v4585_v15 }
 0xb7a   : > { %8558 = vmatmul.mubr.msk.bf16.vlgmr.msra.gmra.mxu1 %vm2135_vm5, %v4589_v14 }
 0xb7b   : > { %8568 = vmatpush3.bf16.msra.mxu1 %v4742_v2  ;;  %8569 = vmatprep.mubr.msk.bf16.mxu1 %vm8951_vm0, %v8950_v59 }
 0xb7d   : > { %v8831_v4 = vpop.eup %8830 }
 0xb7e   : > { %v4587_v41 = vmul.f32 %v8831_v4, %v8823_v32 }
 0xb80   : > { %v4591_v17 = vpack.c.bf16 %v4587_v41, %v4587_v41 }
 0xb82   : > { %8570 = vmatmul.mubr.msk.bf16.vlgmr.msra.gmra.mxu1 %vm2135_vm5, %v4591_v17 }
 0xb83   : > { %6352 = vmatprep.mubr.bf16.mxu1 %v11095_v6 }
 0xbaa   : > { %v4634_v10 = vpop.f32.mrf.mxu0 }
 0xbab   : > { %v4795_v59 = vrot.slane %v4634_v10, %v9203_v21  ;;  %v4788_v30 = vcombine.high %v4634_v10, %v4634_v10 }
 0xbac   : > { %v8553_v33 = vpop.f32.mrf.mxu0 }
 0xbad   : > { %v4803_v7 = vcombine.high %v4795_v59, %v4795_v59  ;;  %v4802_v5 = vrot.slane %v4788_v30, %v9203_v21  ;;  %v4810_v31 = vrot.slane %v4795_v59, %v9203_v21 }
 0xbae   : > { %v4637_v45 = vpop.f32.mrf.mxu0 }
 0xbaf   : > { %v4824_v16 = vrot.slane %v4803_v7, %v9203_v21  ;;  %v4817_v28 = vrot.slane %v4802_v5, %v9203_v21 }
 0xbb0   : > { %v8554_v11 = vpop.f32.mrf.mxu0 }
 0xbb1   : > { %v4944_v55 = vcombine.low %v4810_v31, %v4824_v16  ;;  %v8147_v36 = vcombine.high %v4810_v31, %v4824_v16 }
 0xbb2   : > { %v4730_v63 = vpop.f32.mrf.mxu0 }
 0xbb3   : > { %v4873_v40 = vrot.slane %v4730_v63, %v9203_v21  ;;  %v4866_v54 = vcombine.high %v4730_v63, %v4730_v63  ;;  %v4961_v44 = vrot.slane %v8147_v36, %v9203_v21 }
 0xbb4   : > { %v8565_v3 = vpop.f32.mrf.mxu0 }
 0xbb5   : > { %v4881_v32 = vcombine.high %v4873_v40, %v4873_v40  ;;  %v4880_v14 = vrot.slane %v4866_v54, %v9203_v21  ;;  %v4888_v17 = vrot.slane %v4873_v40, %v9203_v21  ;;  %v4954_v3 = vrot.slane %v4944_v55, %v9203_v21 }
 0xbb6   : > { %v4733_v43 = vpop.f32.mrf.mxu0 }
 0xbb7   : > { %v4902_v26 = vrot.slane %v4881_v32, %v9203_v21  ;;  %v4895_v59 = vrot.slane %v4880_v14, %v9203_v21 }
 0xbb8   : > { %v8566_v20 = vpop.f32.mrf.mxu0 }
 0xbb9   : > { %v4994_v43 = vcombine.low %v4888_v17, %v4902_v26  ;;  %v8148_v40 = vcombine.high %v4888_v17, %v4902_v26 }
 0xbbb   : > { %v5010_v32 = vrot.slane %v4994_v43, %v9203_v21 }
 0xc3a   : > { %v4682_v35 = vpop.f32.mrf.mxu1 }
 0xc3b   : > { %v4827_v27 = vcombine.high %v4682_v35, %v4682_v35  ;;  %v4834_v12 = vrot.slane %v4682_v35, %v9203_v21 }
 0xc3c   : > { %v8559_v62 = vpop.f32.mrf.mxu1 }
 0xc3d   : > { %v4841_v19 = vrot.slane %v4827_v27, %v9203_v21  ;;  %v4842_v48 = vcombine.high %v4834_v12, %v4834_v12  ;;  %v4849_v1 = vrot.slane %v4834_v12, %v9203_v21 }
 0xc3e   : > { %v4685_v13 = vpop.f32.mrf.mxu1 }
 0xc3f   : > { %v4863_v23 = vrot.slane %v4842_v48, %v9203_v21  ;;  %v4864_v37 = vcombine.high %v4849_v1, %v4849_v1  ;;  %v4856_v2 = vrot.slane %v4841_v19, %v9203_v21  ;;  %v4946_v10 = vcombine.low %v4817_v28, %v4849_v1 }
 0xc40   : > { %v8560_v15 = vpop.f32.mrf.mxu1  ;;  %v4976_v1 = vcombine.low %v4954_v3, %v4961_v44 }
 0xc41   : > { %v4865_v4 = vcombine.high %v4863_v23, %v4863_v23  ;;  %v4947_v41 = vcombine.low %v4863_v23, %v4864_v37  ;;  %v4968_v35 = vrot.slane %v4946_v10, %v9203_v21  ;;  %v5017_v23 = vrot.slane %v8148_v40, %v9203_v21 }
 0xc42   : > { %v4778_v33 = vpop.f32.mrf.mxu1 }
 0xc43   : > { %v4993_v45 = vcombine.low %v4865_v4, %v4856_v2  ;;  %v4905_v11 = vcombine.high %v4778_v33, %v4778_v33  ;;  %v4912_v63 = vrot.slane %v4778_v33, %v9203_v21  ;;  %v4975_v20 = vrot.slane %v4947_v41, %v9203_v21 }
 0xc44   : > { %v8571_v22 = vpop.f32.mrf.mxu1  ;;  %v4984_v4 = vrot.slane %v4976_v1, %v9203_v21  ;;  %v900_v1 = vcombine.high %v9251_v56, %v9251_v56 }
 0xc45   : > { %v4919_v30 = vrot.slane %v4905_v11, %v9203_v21  ;;  %v4920_v7 = vcombine.high %v4912_v63, %v4912_v63  ;;  %v5003_v27 = vrot.slane %v4993_v45, %v9203_v21  ;;  %v4927_v12 = vrot.slane %v4912_v63, %v9203_v21 }
 0xc46   : > { %v4781_v5 = vpop.f32.mrf.mxu1  ;;  %v4977_v62 = vcombine.low %v4968_v35, %v4975_v20  ;;  %v8153_v20 = vld [vmem:[%s11096_s29] ss:$0 sm:$0xff] }
 0xc47   : > { %v4941_v16 = vrot.slane %v4920_v7, %v9203_v21  ;;  %v4942_v54 = vcombine.high %v4927_v12, %v4927_v12  ;;  %v4996_v19 = vcombine.low %v4895_v59, %v4927_v12  ;;  %v4934_v31 = vrot.slane %v4919_v30, %v9203_v21 }
 0xc48   : > { %v8572_v48 = vpop.f32.mrf.mxu1  ;;  %v5025_v37 = vcombine.low %v5003_v27, %v5010_v32  ;;  %v4991_v15 = vrot.slane %v4977_v62, %v9203_v21  ;;  %v821_v62 = vcombine.high %v9214_v38, %v9214_v38 }
 0xc49   : > { %v4943_v13 = vcombine.high %v4941_v16, %v4941_v16  ;;  %v5024_v28 = vrot.slane %v4996_v19, %v9203_v21  ;;  %v5042_v55 = vcombine.low %v4941_v16, %v4942_v54  ;;  %v822_v48 = vcombine.high %v9230_v47, %v9230_v47 }
 0xc4a   : > { %v5033_v41 = vrot.slane %v5025_v37, %v9203_v21  ;;  %v4992_v33 = vcombine.low %v4984_v4, %v4991_v15 }
 0xc4b   : > { %v5043_v36 = vcombine.low %v4943_v13, %v4934_v31  ;;  %v5026_v26 = vcombine.low %v5017_v23, %v5024_v28  ;;  %v5050_v14 = vrot.slane %v5042_v55, %v9203_v21 }
 0xc4d   : > { %v5057_v2 = vrot.slane %v5043_v36, %v9203_v21  ;;  %v5040_v17 = vrot.slane %v5026_v26, %v9203_v21 }
 0xc4f   : > { %v5058_v10 = vcombine.low %v5050_v14, %v5057_v2  ;;  %v5041_v45 = vcombine.low %v5033_v41, %v5040_v17 }
 0xc51   : > { %v5065_v11 = vrot.slane %v5058_v10, %v9203_v21  ;;  %v5069_v63 = vpack.c.bf16 %v5041_v45, %v4992_v33 }
 0xc53   : > { %v5070_v3 = vpack.c.bf16 %v5065_v11, %v5065_v11  ;;  %8577 = vmatprep.mubr.msk.bf16.mxu0 %vm1719_vm1, %v5069_v63 }
 0xc55   : > { %8578 = vmatmul.mubr.msk.bf16.vlgmr.msra.gmra.mxu0 %vm1719_vm1, %v5070_v3 }
 0xd15   : > { %v8579_v43 = vpop.f32.mrf.mxu0 }
 0xd16   : > { %v5139_v22 = vadd.f32 %v8579_v43, %v9880_v58  ;;  %v899_v58 = vcombine.high %v9233_v49, %v9233_v49 }
 0xd17   : > { %v5123_v44 = vpop.f32.mrf.mxu0 }
 0xd18   : > { %v5149_v59 = vadd.f32 %v8153_v20, %v5139_v22  ;;  %v5137_v30 = vadd.f32 %v5123_v44, %v9882_v39 }
 0xd19   : > { %v8580_v7 = vpop.f32.mrf.mxu0 }
 0xd1a   : > { %v5257_v40 = vrot.slane %v5149_v59, %v9203_v21  ;;  %v5147_v35 = vadd.f32 %v8153_v20, %v5137_v30 }
 0xd1b   : > { %v5126_v27 = vpop.f32.mrf.mxu0 }
 0xd1c   : > { %v5258_v12 = vcombine.high %v5257_v40, %v5257_v40  ;;  %v9965_v5 = vrot.slane %v5257_v40, %v9203_v21  ;;  %v5153_v16 = vcombine.high %v5147_v35, %v5147_v35  ;;  %v5160_v32 = vrot.slane %v5147_v35, %v9203_v21 }
 0xd1d   : > { %v5138_v39 = vadd.f32 %v5126_v27, %v9886_v9 }
 0xd1e   : > { %v9974_v54 = vrot.slane %v5258_v12, %v9203_v21  ;;  %v5167_v19 = vrot.slane %v5153_v16, %v9203_v21  ;;  %v5273_v31 = vcombine.high %v9965_v5, %v9965_v5  ;;  %v5168_v13 = vcombine.high %v5160_v32, %v5160_v32 }
 0xd1f   : > { %v5176_v23 = vrot.slane %v5160_v32, %v9203_v21  ;;  %v5148_v37 = vadd.f32 %v8153_v20, %v5138_v39 }
 0xd20   : > { %v5274_v9 = vcombine.high %v9974_v54, %v9974_v54  ;;  %v5169_v28 = vcombine.high %v5167_v19, %v5167_v19  ;;  %v5183_v55 = vrot.slane %v5167_v19, %v9203_v21  ;;  %v9989_v36 = vadd.f32 %v9974_v54, %v9298_v25 }
 0xd21   : > { %v5190_v26 = vrot.slane %v5168_v13, %v9203_v21  ;;  %v5198_v15 = vcombine.high %v5176_v23, %v5176_v23  ;;  %v9993_v14 = vadd.f32 %v5176_v23, %v9214_v38  ;;  %v5202_v2 = vcombine.high %v5148_v37, %v5148_v37 }
 0xd22   : > { %v5197_v4 = vrot.slane %v5169_v28, %v9203_v21  ;;  %v5199_v41 = vcombine.high %v5183_v55, %v5183_v55  ;;  %v9997_v17 = vadd.f32 %v5183_v55, %v9227_v46  ;;  %v5209_v10 = vrot.slane %v5148_v37, %v9203_v21 }
 0xd23   : > { %v5200_v33 = vcombine.high %v5190_v26, %v5190_v26  ;;  %v10001_v45 = vadd.f32 %v5190_v26, %v9230_v47  ;;  %v10003_v25 = vadd.f32 %v5198_v15, %v821_v62  ;;  %v5216_v11 = vrot.slane %v5202_v2, %v9203_v21 }
 0xd24   : > { %v5201_v63 = vcombine.high %v5197_v4, %v5197_v4  ;;  %v5217_v38 = vcombine.high %v5209_v10, %v5209_v10  ;;  %v5225_v3 = vrot.slane %v5209_v10, %v9203_v21  ;;  %v10008_v43 = vadd.f32 %v5197_v4, %v9221_v42 }
 0xd25   : > { %v5218_v20 = vcombine.high %v5216_v11, %v5216_v11  ;;  %v5232_v46 = vrot.slane %v5216_v11, %v9203_v21  ;;  %v10011_v22 = vadd.f32 %v5200_v33, %v822_v48  ;;  %v10014_v44 = vadd.f32 %v5199_v41, %v9239_v51 }
 0xd26   : > { %v5239_v47 = vrot.slane %v5217_v38, %v9203_v21  ;;  %v5247_v59 = vcombine.high %v5225_v3, %v5225_v3  ;;  %v10018_v30 = vadd.f32 %v5225_v3, %v9264_v61  ;;  %v10021_v7 = vadd.f32 %v5201_v63, %v9243_v52 }
 0xd27   : > { %v5246_v42 = vrot.slane %v5218_v20, %v9203_v21  ;;  %v5248_v40 = vcombine.high %v5232_v46, %v5232_v46  ;;  %v10024_v35 = vadd.f32 %v5232_v46, %v899_v58  ;;  %v5337_v27 = vcombine.low %v9993_v14, %v10001_v45 }
 0xd28   : > { %v5249_v12 = vcombine.high %v5239_v47, %v5239_v47  ;;  %v10029_v51 = vadd.f32 %v5239_v47, %v9236_v50  ;;  %v10032_v16 = vadd.f32 %v5247_v59, %v9233_v49  ;;  %v5338_v61 = vcombine.low %v10003_v25, %v10011_v22 }
 0xd29   : > { %v5250_v52 = vcombine.high %v5246_v42, %v5246_v42  ;;  %v5339_v32 = vcombine.low %v9997_v17, %v10008_v43  ;;  %v5340_v62 = vcombine.low %v10014_v44, %v10021_v7  ;;  %v5347_v58 = vrot.slane %v5337_v27, %v9203_v21 }
 0xd2a   : > { %v5354_v39 = vrot.slane %v5338_v61, %v9203_v21  ;;  %v10043_v50 = vadd.f32 %v5249_v12, %v9251_v56  ;;  %v10045_v54 = vadd.f32 %v5246_v42, %v900_v1  ;;  %v10048_v49 = vadd.f32 %v5248_v40, %v9246_v53 }
 0xd2b   : > { %v5361_v19 = vrot.slane %v5339_v32, %v9203_v21  ;;  %v5368_v48 = vrot.slane %v5340_v62, %v9203_v21  ;;  %v10053_v13 = vadd.f32 %v5250_v52, %v9255_v57  ;;  %v5386_v23 = vcombine.low %v10018_v30, %v10029_v51 }
 0xd2c   : > { %v10059_v37 = vadd.f32 %v9965_v5, %v9302_v29  ;;  %v5369_v56 = vcombine.low %v5347_v58, %v5354_v39  ;;  %v5387_v1 = vcombine.low %v10032_v16, %v10043_v50  ;;  %v5388_v53 = vcombine.low %v10024_v35, %v10045_v54 }
 0xd2d   : > { %v5370_v28 = vcombine.low %v5361_v19, %v5368_v48  ;;  %v5389_v55 = vcombine.low %v10048_v49, %v10053_v13  ;;  %v10068_v57 = vadd.f32 %v5273_v31, %v9309_v34  ;;  %v10071_v26 = vadd.f32 %v5274_v9, %v9294_v24 }
 0xd2e   : > { %v5377_v29 = vrot.slane %v5369_v56, %v9203_v21  ;;  %v5396_v5 = vrot.slane %v5386_v23, %v9203_v21  ;;  %v5403_v15 = vrot.slane %v5387_v1, %v9203_v21  ;;  %v5435_v2 = vcombine.low %v10059_v37, %v9989_v36 }
 0xd2f   : > { %v5384_v4 = vrot.slane %v5370_v28, %v9203_v21  ;;  %v5410_v41 = vrot.slane %v5388_v53, %v9203_v21  ;;  %v5417_v10 = vrot.slane %v5389_v55, %v9203_v21  ;;  %v5436_v34 = vcombine.low %v10068_v57, %v10071_v26 }
 0xd30   : > { %v5418_v24 = vcombine.low %v5396_v5, %v5403_v15  ;;  %v5443_v33 = vrot.slane %v5435_v2, %v9203_v21  ;;  %v10090_v59 = vsub.s32 3, %v9198_v18  ;;  %v10093_v40 = vsub.s32 4, %v9198_v18 }
 0xd31   : > { %v5385_v31 = vcombine.low %v5377_v29, %v5384_v4  ;;  %v5419_v9 = vcombine.low %v5410_v41, %v5417_v10  ;;  %v5450_v11 = vrot.slane %v5436_v34, %v9203_v21  ;;  %v10096_v27 = vsub.s32 5, %v9198_v18 }
 0xd32   : > { %v5426_v63 = vrot.slane %v5418_v24, %v9203_v21  ;;  %11097 = vst [vmem:[#allocation19_spill] sm:$0xff] %v10093_v40  ;;  %v10099_v12 = vsub.s32 6, %v9198_v18  ;;  %v10102_v61 = vsub.s32 7, %v9198_v18 }
 0xd33   : > { %5462 = vadd.xlane.f32.xlu0 %v5385_v31  ;;  %v5433_v38 = vrot.slane %v5419_v9, %v9203_v21  ;;  %v5451_v3 = vcombine.low %v5443_v33, %v5450_v11  ;;  %11098 = vst [vmem:[#allocation20_spill] sm:$0xff] %v10096_v27 }
 0xd34   : > { %11099 = vst [vmem:[#allocation21_spill] sm:$0xff] %v10099_v12 }
 0xd35   : > { %v5434_v20 = vcombine.low %v5426_v63, %v5433_v38  ;;  %v5458_v46 = vrot.slane %v5451_v3, %v9203_v21 }
 0xd37   : > { %5464 = vadd.xlane.f32.xlu1 %v5434_v20  ;;  %v5467_v47 = vsel %vm5466_vm6, %v5458_v46, 0.0 }
 0xd38   : > { %5468 = vadd.xlane.f32.xlu0 %v5467_v47 }
 0xdbc   : > { %v5463_v42 = vpop.xlane.xlu0 %5462 }
 0xdbd   : > { %v5471_v52 = vmul.f32 0.0078125, %v5463_v42 }
 0xdbf   : > { %v5480_v32 = vrot.slane %v5471_v52, %v9330_v60  ;;  %v5484_v62 = vrot.slane %v5471_v52, %v9338_v0  ;;  %v5488_v58 = vrot.slane %v5471_v52, %v9443_v8  ;;  %v5492_v39 = vrot.slane %v5471_v52, %v10090_v59 }
 0xdc0   : > { %v5465_v19 = vpop.xlane.xlu1 %5464  ;;  %v5496_v48 = vrot.slane %v5471_v52, %v10093_v40  ;;  %v5500_v23 = vrot.slane %v5471_v52, %v10096_v27  ;;  %v5504_v56 = vrot.slane %v5471_v52, %v10099_v12  ;;  %v5508_v1 = vrot.slane %v5471_v52, %v10102_v61 }
 0xdc1   : > { %v10112_v18 = vmul.f32 0.0078125, %v5465_v19  ;;  %v5469_v53 = vpop.xlane.xlu0 %5468  ;;  %v10115_v28 = vsub.f32 %v9993_v14, %v5480_v32  ;;  %v10118_v55 = vsub.f32 %v10001_v45, %v5484_v62  ;;  %v10121_v29 = vsub.f32 %v10003_v25, %v5488_v58 }
 0xdc2   : > { %v5473_v5 = vmul.f32 0.0078125, %v5469_v53  ;;  %v10124_v15 = vsub.f32 %v10011_v22, %v5492_v39  ;;  %v10127_v2 = vsub.f32 %v9997_v17, %v5496_v48  ;;  %v10130_v4 = vsub.f32 %v10008_v43, %v5500_v23 }
 0xdc3   : > { %v10133_v41 = vsub.f32 %v10014_v44, %v5504_v56  ;;  %v10136_v14 = vsub.f32 %v10021_v7, %v5508_v1  ;;  %v5597_v45 = vmul.f32 %v10115_v28, %v10115_v28  ;;  %v5598_v25 = vmul.f32 %v10118_v55, %v10118_v55 }
 0xdc4   : > { %v5544_v22 = vrot.slane %v5473_v5, %v9330_v60  ;;  %v5548_v17 = vrot.slane %v5473_v5, %v9338_v0  ;;  %v5552_v10 = vrot.slane %v5473_v5, %v9443_v8  ;;  %v5556_v43 = vrot.slane %v5473_v5, %v10090_v59 }
 0xdc5   : > { %v5599_v44 = vmul.f32 %v10121_v29, %v10121_v29  ;;  %v5600_v7 = vmul.f32 %v10124_v15, %v10124_v15  ;;  %v5601_v34 = vmul.f32 %v10127_v2, %v10127_v2  ;;  %v5602_v24 = vmul.f32 %v10130_v4, %v10130_v4 }
 0xdc6   : > { %v10155_v31 = vsub.f32 %v10059_v37, %v5544_v22  ;;  %v10158_v9 = vsub.f32 %v9989_v36, %v5548_v17  ;;  %v10161_v33 = vsub.f32 %v10068_v57, %v5552_v10  ;;  %v10164_v11 = vsub.f32 %v10071_v26, %v5556_v43 }
 0xdc7   : > { %v5603_v63 = vmul.f32 %v10133_v41, %v10133_v41  ;;  %v5604_v38 = vmul.f32 %v10136_v14, %v10136_v14  ;;  %v5637_v3 = vcombine.low %v5597_v45, %v5598_v25  ;;  %v5638_v20 = vcombine.low %v5599_v44, %v5600_v7 }
 0xdc8   : > { %v5639_v46 = vcombine.low %v5601_v34, %v5602_v24  ;;  %v5613_v37 = vmul.f32 %v10155_v31, %v10155_v31  ;;  %v5614_v36 = vmul.f32 %v10158_v9, %v10158_v9  ;;  %v5615_v57 = vmul.f32 %v10161_v33, %v10161_v33 }
 0xdc9   : > { %v5640_v26 = vcombine.low %v5603_v63, %v5604_v38  ;;  %v5647_v47 = vrot.slane %v5637_v3, %v9203_v21  ;;  %v5654_v42 = vrot.slane %v5638_v20, %v9203_v21  ;;  %v5616_v52 = vmul.f32 %v10164_v11, %v10164_v11 }
 0xdca   : > { %v5661_v32 = vrot.slane %v5639_v46, %v9203_v21  ;;  %v5735_v62 = vcombine.low %v5613_v37, %v5614_v36  ;;  %v5512_v58 = vrot.slane %v10112_v18, %v9330_v60  ;;  %v5516_v39 = vrot.slane %v10112_v18, %v9338_v0 }
 0xdcb   : > { %v5668_v19 = vrot.slane %v5640_v26, %v9203_v21  ;;  %v5669_v48 = vcombine.low %v5647_v47, %v5654_v42  ;;  %v5736_v23 = vcombine.low %v5615_v57, %v5616_v52  ;;  %v5520_v56 = vrot.slane %v10112_v18, %v9443_v8 }
 0xdcc   : > { %v5743_v1 = vrot.slane %v5735_v62, %v9203_v21  ;;  %v5524_v53 = vrot.slane %v10112_v18, %v10090_v59  ;;  %v5528_v5 = vrot.slane %v10112_v18, %v10093_v40  ;;  %v5532_v45 = vrot.slane %v10112_v18, %v10096_v27 }
 0xdcd   : > { %v5670_v25 = vcombine.low %v5661_v32, %v5668_v19  ;;  %v5677_v22 = vrot.slane %v5669_v48, %v9203_v21  ;;  %v5750_v17 = vrot.slane %v5736_v23, %v9203_v21  ;;  %v5536_v10 = vrot.slane %v10112_v18, %v10099_v12 }
 0xdce   : > { %v5540_v43 = vrot.slane %v10112_v18, %v10102_v61  ;;  %v10202_v44 = vsub.f32 %v10018_v30, %v5512_v58  ;;  %v10205_v7 = vsub.f32 %v10029_v51, %v5516_v39  ;;  %v10208_v34 = vsub.f32 %v10032_v16, %v5520_v56 }
 0xdcf   : > { %v5684_v24 = vrot.slane %v5670_v25, %v9203_v21  ;;  %v5751_v63 = vcombine.low %v5743_v1, %v5750_v17  ;;  %v10212_v38 = vsub.f32 %v10043_v50, %v5524_v53  ;;  %v10215_v3 = vsub.f32 %v10024_v35, %v5528_v5  ;;  %v8728_v53 = vld [vmem:[%s9166_s14 + $0x70] ss:$8 sps:$4 sm:$0xff]   ;;  %v8730_v5 = vld [vmem:[%s9166_s14 + $0x74] ss:$8 sps:$4 sm:$0xff]   ;;  %v8731_v25 = vld [vmem:[%s9166_s14 + $0x60] ss:$8 sps:$4 sm:$0xff]  }
 0xdd0   : > { %v10218_v18 = vsub.f32 %v10045_v54, %v5532_v45  ;;  %v10221_v30 = vsub.f32 %v10048_v49, %v5536_v10  ;;  %v10224_v51 = vsub.f32 %v10053_v13, %v5540_v43  ;;  %v5605_v16 = vmul.f32 %v10202_v44, %v10202_v44  ;;  %v8733_v45 = vld [vmem:[%s9166_s14 + $0x64] ss:$8 sps:$4 sm:$0xff]   ;;  %6320 = vmatprep.subr.bf16.mxu1 %v8730_v5  ;;  %v8734_v17 = vld [vmem:[%s9166_s14 + $0x50] ss:$8 sps:$4 sm:$0xff]   ;;  %v8737_v43 = vld [vmem:[%s9166_s14 + $0x40] ss:$8 sps:$4 sm:$0xff]  }
 0xdd1   : > { %v5685_v20 = vcombine.low %v5677_v22, %v5684_v24  ;;  %v5758_v46 = vrot.slane %v5751_v63, %v9203_v21  ;;  %v5606_v50 = vmul.f32 %v10205_v7, %v10205_v7  ;;  %v5607_v35 = vmul.f32 %v10208_v34, %v10208_v34  ;;  %6321 = vmatpush1.bf16.msra.mxu1 %v8728_v53  ;;  %v8736_v22 = vld [vmem:[%s9166_s14 + $0x54] ss:$8 sps:$4 sm:$0xff]   ;;  %v8739_v10 = vld [vmem:[%s9166_s14 + $0x44] ss:$8 sps:$4 sm:$0xff]   ;;  %v8740_v63 = vld [vmem:[%s9166_s14 + $0x30] ss:$8 sps:$4 sm:$0xff]  }
 0xdd2   : > { %v5608_v54 = vmul.f32 %v10212_v38, %v10212_v38  ;;  %v5609_v49 = vmul.f32 %v10215_v3, %v10215_v3  ;;  %v5610_v13 = vmul.f32 %v10218_v18, %v10218_v18  ;;  %v5611_v37 = vmul.f32 %v10221_v30, %v10221_v30  ;;  %6322 = vmatprep.subr.bf16.mxu1 %v8733_v45  ;;  %v8742_v24 = vld [vmem:[%s9166_s14 + $0x34] ss:$8 sps:$4 sm:$0xff]  }
 0xdd3   : > { %5762 = vadd.xlane.f32.xlu0 %v5685_v20  ;;  %v5766_v36 = vsel %vm5466_vm6, %v5758_v46, 0.0  ;;  %v5612_v57 = vmul.f32 %v10224_v51, %v10224_v51  ;;  %v5686_v26 = vcombine.low %v5605_v16, %v5606_v50  ;;  %v8745_v16 = vld [vmem:[%s9166_s14 + $0x24] ss:$8 sps:$4 sm:$0xff]   ;;  %v8743_v20 = vld [vmem:[%s9166_s14 + $0x20] ss:$8 sps:$4 sm:$0xff]  }
 0xdd4   : > { %5767 = vadd.xlane.f32.xlu1 %v5766_v36  ;;  %v5687_v47 = vcombine.low %v5607_v35, %v5608_v54  ;;  %v5688_v42 = vcombine.low %v5609_v49, %v5610_v13  ;;  %v8748_v46 = vld [vmem:[%s9166_s14 + $0x14] ss:$8 sps:$4 sm:$0xff]   ;;  %v8746_v50 = vld [vmem:[%s9166_s14 + $0x10] ss:$8 sps:$4 sm:$0xff]   ;;  %v8751_v35 = vld [vmem:[%s9166_s14 + $0x4] ss:$8 sps:$4 sm:$0xff]  }
 0xdd5   : > { %v5689_v52 = vcombine.low %v5611_v37, %v5612_v57  ;;  %v5696_v32 = vrot.slane %v5686_v26, %v9203_v21  ;;  %6323 = vmatpush1.bf16.msra.mxu1 %v8731_v25  ;;  %v8749_v54 = vld [vmem:[%s9166_s14] ss:$8 sps:$4 sm:$0xff]   ;;  %v8752_v49 = vld [vmem:[%s9176_s12 + $0x78] sm:$0xff]   ;;  %v8754_v37 = vld [vmem:[%s9176_s12 + $0x70] sm:$0xff]  }
 0xdd6   : > { %v5703_v62 = vrot.slane %v5687_v47, %v9203_v21  ;;  %v5710_v58 = vrot.slane %v5688_v42, %v9203_v21  ;;  %6324 = vmatprep.subr.bf16.mxu1 %v8736_v22  ;;  %v8753_v13 = vld [vmem:[%s9176_s12 + $0x38] sm:$0xff]   ;;  %8300 = vmatprep.subr.bf16.mxu0 %v8752_v49  ;;  %v8755_v36 = vld [vmem:[%s9176_s12 + $0x30] sm:$0xff]   ;;  %v8756_v57 = vld [vmem:[%s9176_s12 + $0x68] sm:$0xff]  }
 0xdd7   : > { %v5717_v39 = vrot.slane %v5689_v52, %v9203_v21  ;;  %8301 = vmatpush3.bf16.msra.mxu0 %v8753_v13  ;;  %v8757_v26 = vld [vmem:[%s9176_s12 + $0x28] sm:$0xff]   ;;  %v8758_v47 = vld [vmem:[%s9176_s12 + $0x60] sm:$0xff]   ;;  %v8760_v52 = vld [vmem:[%s9176_s12 + $0x58] sm:$0xff]  }
 0xdd8   : > { %v5718_v19 = vcombine.low %v5696_v32, %v5703_v62  ;;  %8302 = vmatprep.subr.bf16.mxu0 %v8754_v37  ;;  %v8759_v42 = vld [vmem:[%s9176_s12 + $0x20] sm:$0xff]   ;;  %v8761_v32 = vld [vmem:[%s9176_s12 + $0x18] sm:$0xff]  }
 0xdd9   : > { %v5719_v48 = vcombine.low %v5710_v58, %v5717_v39  ;;  %6325 = vmatpush1.bf16.msra.mxu1 %v8734_v17  ;;  %v8154_v62 = vld [vmem:[%s11100_s21] ss:$0 sm:$0xff] }
 0xdda   : > { %v5726_v23 = vrot.slane %v5718_v19, %v9203_v21  ;;  %6326 = vmatprep.subr.bf16.mxu1 %v8739_v10  ;;  %v8155_v58 = vld [vmem:[%s11102_s18] ss:$0 sm:$0xff]  ;;  %v5913_v5 = vrot.slane %v8154_v62, %v9203_v21 }
 0xddb   : > { %v5733_v56 = vrot.slane %v5719_v48, %v9203_v21  ;;  %8303 = vmatpush3.bf16.msra.mxu0 %v8755_v36  ;;  %v5995_v25 = vrot.slane %v8155_v58, %v9203_v21 }
 0xddc   : > { %8304 = vmatprep.subr.bf16.mxu0 %v8756_v57  ;;  %v5921_v10 = vcombine.high %v5913_v5, %v5913_v5 }
 0xddd   : > { %v5734_v1 = vcombine.low %v5726_v23, %v5733_v56  ;;  %6327 = vmatpush1.bf16.msra.mxu1 %v8737_v43  ;;  %v5906_v23 = vcombine.high %v8154_v62, %v8154_v62  ;;  %v5988_v56 = vcombine.high %v8155_v58, %v8155_v58  ;;  %v10303_v49 = vrot.slane %v5995_v25, %v9203_v21 }
 0xdde   : > { %6328 = vmatprep.subr.bf16.mxu1 %v8742_v24  ;;  %v6003_v24 = vcombine.high %v5995_v25, %v5995_v25 }
 0xddf   : > { %5764 = vadd.xlane.f32.xlu0 %v5734_v1  ;;  %8305 = vmatpush3.bf16.msra.mxu0 %v8757_v26  ;;  %v5920_v45 = vrot.slane %v5906_v23, %v9203_v21  ;;  %v6002_v22 = vrot.slane %v5988_v56, %v9203_v21  ;;  %v10332_v62 = vcombine.high %v10303_v49, %v10303_v49 }
 0xde0   : > { %8306 = vmatprep.subr.bf16.mxu0 %v8758_v47  ;;  %v10309_v37 = vrot.slane %v6003_v24, %v9203_v21 }
 0xde1   : > { %6329 = vmatpush1.bf16.msra.mxu1 %v8740_v63  ;;  %v5922_v43 = vcombine.high %v5920_v45, %v5920_v45  ;;  %v6004_v63 = vcombine.high %v6002_v22, %v6002_v22  ;;  %v10306_v13 = vrot.slane %v6002_v22, %v9203_v21 }
 0xde2   : > { %6330 = vmatprep.subr.bf16.mxu1 %v8745_v16 }
 0xde3   : > { %8307 = vmatpush3.bf16.msra.mxu0 %v8759_v42  ;;  %v10312_v36 = vrot.slane %v6004_v63, %v9203_v21  ;;  %v10336_v58 = vcombine.high %v10306_v13, %v10306_v13 }
 0xde4   : > { %8308 = vmatprep.subr.bf16.mxu0 %v8760_v52 }
 0xde5   : > { %6331 = vmatpush1.bf16.msra.mxu1 %v8743_v20  ;;  %v10291_v20 = vrot.slane %v5913_v5, %v9203_v21 }
 0xde6   : > { %6332 = vmatprep.subr.bf16.mxu1 %v8748_v46 }
 0xde7   : > { %8309 = vmatpush3.bf16.msra.mxu0 %v8761_v32  ;;  %v10316_v26 = vcombine.high %v10291_v20, %v10291_v20 }
 0xde9   : > { %6333 = vmatpush1.bf16.msra.mxu1 %v8746_v50  ;;  %v10294_v50 = vrot.slane %v5920_v45, %v9203_v21 }
 0xdea   : > { %6334 = vmatprep.subr.bf16.mxu1 %v8751_v35  ;;  %v10297_v35 = vrot.slane %v5921_v10, %v9203_v21 }
 0xdeb   : > { %v10320_v47 = vcombine.high %v10294_v50, %v10294_v50 }
 0xdec   : > { %v10324_v42 = vcombine.high %v10297_v35, %v10297_v35 }
 0xded   : > { %6335 = vmatpush1.bf16.msra.mxu1 %v8749_v54  ;;  %v10300_v54 = vrot.slane %v5922_v43, %v9203_v21 }
 0xdef   : > { %v10328_v52 = vcombine.high %v10300_v54, %v10300_v54 }
 0xe5c   : > { %v5763_v39 = vpop.xlane.xlu0 %5762 }
 0xe5d   : > { %v5769_v19 = vmul.f32 0.0078125, %v5763_v39  ;;  %v5768_v48 = vpop.xlane.xlu1 %5767  ;;  %v10340_v39 = vcombine.high %v10309_v37, %v10309_v37 }
 0xe5e   : > { %v5771_v53 = vmul.f32 0.0078125, %v5768_v48 }
 0xe5f   : > { %v5772_v1 = vadd.f32 1e-05, %v5769_v19  ;;  %v10344_v19 = vcombine.high %v10312_v36, %v10312_v36 }
 0xe60   : > { %v5774_v17 = vadd.f32 1e-05, %v5771_v53 }
 0xe61   : > { %8832 = vrsqrt.f32 %v5772_v1 }
 0xe62   : > { %8834 = vrsqrt.f32 %v5774_v17 }
 0xe68   : > { %v5765_v16 = vpop.xlane.xlu0 %5764 }
 0xe69   : > { %v5770_v46 = vmul.f32 0.0078125, %v5765_v16 }
 0xe6b   : > { %v5773_v57 = vadd.f32 1e-05, %v5770_v46 }
 0xe6d   : > { %8836 = vrsqrt.f32 %v5773_v57 }
 0xe6e   : > { %v8833_v32 = vpop.eup %8832 }
 0xe6f   : > { %v5784_v48 = vrot.slane %v8833_v32, %v9330_v60  ;;  %v5788_v23 = vrot.slane %v8833_v32, %v9338_v0  ;;  %v5792_v56 = vrot.slane %v8833_v32, %v9443_v8  ;;  %v5796_v1 = vrot.slane %v8833_v32, %v10090_v59 }
 0xe70   : > { %v5800_v53 = vrot.slane %v8833_v32, %v10093_v40  ;;  %v5804_v5 = vrot.slane %v8833_v32, %v10096_v27  ;;  %v5808_v45 = vrot.slane %v8833_v32, %v10099_v12  ;;  %v5812_v25 = vrot.slane %v8833_v32, %v10102_v61 }
 0xe71   : > { %v5881_v22 = vmul.f32 %v5784_v48, %v10115_v28  ;;  %v5882_v17 = vmul.f32 %v5788_v23, %v10118_v55  ;;  %v5883_v10 = vmul.f32 %v5792_v56, %v10121_v29  ;;  %v5884_v43 = vmul.f32 %v5796_v1, %v10124_v15  ;;  %v8835_v48 = vpop.eup %8834 }
 0xe72   : > { %v5885_v24 = vmul.f32 %v5800_v53, %v10127_v2  ;;  %v5886_v63 = vmul.f32 %v5804_v5, %v10130_v4  ;;  %v5887_v16 = vmul.f32 %v5808_v45, %v10133_v41  ;;  %v5888_v46 = vmul.f32 %v5812_v25, %v10136_v14 }
 0xe73   : > { %v5963_v57 = vmul.f32 %v10291_v20, %v5881_v22  ;;  %v5964_v32 = vmul.f32 %v10297_v35, %v5882_v17  ;;  %v5965_v28 = vmul.f32 %v10316_v26, %v5883_v10  ;;  %v5966_v55 = vmul.f32 %v10324_v42, %v5884_v43 }
 0xe74   : > { %v5967_v29 = vmul.f32 %v10294_v50, %v5885_v24  ;;  %v5968_v15 = vmul.f32 %v10300_v54, %v5886_v63  ;;  %v5969_v2 = vmul.f32 %v10320_v47, %v5887_v16  ;;  %v5970_v4 = vmul.f32 %v10328_v52, %v5888_v46 }
 0xe75   : > { %v10371_v41 = vadd.f32 %v10303_v49, %v5963_v57  ;;  %v10374_v14 = vadd.f32 %v10309_v37, %v5964_v32  ;;  %v10377_v23 = vadd.f32 %v10332_v62, %v5965_v28  ;;  %v10380_v56 = vadd.f32 %v10340_v39, %v5966_v55 }
 0xe76   : > { %v10383_v1 = vadd.f32 %v10306_v13, %v5967_v29  ;;  %v10386_v53 = vadd.f32 %v10312_v36, %v5968_v15  ;;  %v10389_v5 = vadd.f32 %v10336_v58, %v5969_v2  ;;  %v10392_v45 = vadd.f32 %v10344_v19, %v5970_v4 }
 0xe77   : > { %v6085_v25 = vcombine.low %v10371_v41, %v10374_v14  ;;  %v6086_v22 = vcombine.low %v10377_v23, %v10380_v56  ;;  %v5848_v17 = vrot.slane %v8835_v48, %v9330_v60  ;;  %v5852_v10 = vrot.slane %v8835_v48, %v9338_v0 }
 0xe78   : > { %11103 = vst [vmem:[#allocation22_spill] sm:$0xff] %v10392_v45  ;;  %v6087_v43 = vcombine.low %v10383_v1, %v10386_v53  ;;  %v6088_v24 = vcombine.low %v10389_v5, %v10392_v45  ;;  %v5856_v63 = vrot.slane %v8835_v48, %v9443_v8  ;;  %v5860_v16 = vrot.slane %v8835_v48, %v10090_v59 }
 0xe79   : > { %v6095_v46 = vrot.slane %v6085_v25, %v9203_v21  ;;  %v6102_v57 = vrot.slane %v6086_v22, %v9203_v21  ;;  %v5897_v32 = vmul.f32 %v5848_v17, %v10155_v31  ;;  %v5898_v28 = vmul.f32 %v5852_v10, %v10158_v9 }
 0xe7a   : > { %v8837_v55 = vpop.eup %8836  ;;  %v6109_v29 = vrot.slane %v6087_v43, %v9203_v21  ;;  %v6116_v15 = vrot.slane %v6088_v24, %v9203_v21  ;;  %v5899_v2 = vmul.f32 %v5856_v63, %v10161_v33  ;;  %v5900_v4 = vmul.f32 %v5860_v16, %v10164_v11 }
 0xe7b   : > { %v5816_v45 = vrot.slane %v8837_v55, %v9330_v60  ;;  %v5820_v48 = vrot.slane %v8837_v55, %v9338_v0  ;;  %v5824_v25 = vrot.slane %v8837_v55, %v9443_v8  ;;  %v5828_v22 = vrot.slane %v8837_v55, %v10090_v59 }
 0xe7c   : > { %v5832_v31 = vrot.slane %v8837_v55, %v10093_v40  ;;  %v5836_v9 = vrot.slane %v8837_v55, %v10096_v27  ;;  %v5840_v17 = vrot.slane %v8837_v55, %v10099_v12  ;;  %v5844_v10 = vrot.slane %v8837_v55, %v10102_v61 }
 0xe7d   : > { %v5889_v33 = vmul.f32 %v5816_v45, %v10202_v44  ;;  %v5890_v11 = vmul.f32 %v5820_v48, %v10205_v7  ;;  %v5891_v43 = vmul.f32 %v5824_v25, %v10208_v34  ;;  %v5892_v24 = vmul.f32 %v5828_v22, %v10212_v38 }
 0xe7e   : > { %v5893_v63 = vmul.f32 %v5832_v31, %v10215_v3  ;;  %v5894_v16 = vmul.f32 %v5836_v9, %v10218_v18  ;;  %v5895_v40 = vmul.f32 %v5840_v17, %v10221_v30  ;;  %v5896_v27 = vmul.f32 %v5844_v10, %v10224_v51 }
 0xe7f   : > { %v5971_v12 = vmul.f32 %v10291_v20, %v5889_v33  ;;  %v5972_v55 = vmul.f32 %v10297_v35, %v5890_v11  ;;  %v5973_v44 = vmul.f32 %v10316_v26, %v5891_v43  ;;  %v5974_v7 = vmul.f32 %v10324_v42, %v5892_v24 }
 0xe80   : > { %v5975_v34 = vmul.f32 %v10294_v50, %v5893_v63  ;;  %v5976_v38 = vmul.f32 %v10300_v54, %v5894_v16  ;;  %v5977_v3 = vmul.f32 %v10320_v47, %v5895_v40  ;;  %v5978_v18 = vmul.f32 %v10328_v52, %v5896_v27  ;;  %v8762_v16 = vld [vmem:[%s9176_s12 + $0x50] sm:$0xff]  }
 0xe81   : > { %v10439_v30 = vadd.f32 %v10303_v49, %v5971_v12  ;;  %v10442_v51 = vadd.f32 %v10309_v37, %v5972_v55  ;;  %v10445_v45 = vadd.f32 %v10332_v62, %v5973_v44  ;;  %v10448_v48 = vadd.f32 %v10340_v39, %v5974_v7  ;;  %v8763_v55 = vld [vmem:[%s9176_s12 + $0x10] sm:$0xff]   ;;  %8310 = vmatprep.subr.bf16.mxu0 %v8762_v16  ;;  %v8764_v44 = vld [vmem:[%s9176_s12 + $0x48] sm:$0xff]  }
 0xe82   : > { %v10451_v50 = vadd.f32 %v10306_v13, %v5975_v34  ;;  %v10454_v54 = vadd.f32 %v10312_v36, %v5976_v38  ;;  %v10457_v40 = vadd.f32 %v10336_v58, %v5977_v3  ;;  %v10460_v27 = vadd.f32 %v10344_v19, %v5978_v18  ;;  %8311 = vmatpush3.bf16.msra.mxu0 %v8763_v55  ;;  %v8765_v7 = vld [vmem:[%s9176_s12 + $0x8] sm:$0xff]   ;;  %v8766_v34 = vld [vmem:[%s9176_s12 + $0x40] sm:$0xff]  }
 0xe83   : > { %v6117_v12 = vcombine.low %v6095_v46, %v6102_v57  ;;  %v6118_v47 = vcombine.low %v6109_v29, %v6116_v15  ;;  %v6134_v52 = vcombine.low %v10439_v30, %v10442_v51  ;;  %v6135_v25 = vcombine.low %v10445_v45, %v10448_v48  ;;  %8312 = vmatprep.subr.bf16.mxu0 %v8764_v44  ;;  %v8767_v38 = vld [vmem:[%s9176_s12] sm:$0xff]  }
 0xe84   : > { %v6136_v13 = vcombine.low %v10451_v50, %v10454_v54  ;;  %v6137_v36 = vcombine.low %v10457_v40, %v10460_v27  ;;  %v5979_v58 = vmul.f32 %v10291_v20, %v5897_v32  ;;  %v5980_v22 = vmul.f32 %v10297_v35, %v5898_v28  ;;  %v6228_v3 = vld [vmem:[%s9171_s23] sm:$0x3] }
 0xe85   : > { %v6144_v19 = vrot.slane %v6134_v52, %v9203_v21  ;;  %v6151_v46 = vrot.slane %v6135_v25, %v9203_v21  ;;  %v5981_v15 = vmul.f32 %v10316_v26, %v5899_v2  ;;  %v5982_v31 = vmul.f32 %v10324_v42, %v5900_v4 }
 0xe86   : > { %v6158_v57 = vrot.slane %v6136_v13, %v9203_v21  ;;  %v6165_v29 = vrot.slane %v6137_v36, %v9203_v21  ;;  %v6125_v9 = vrot.slane %v6117_v12, %v9203_v21  ;;  %v10480_v10 = vadd.f32 %v10303_v49, %v5979_v58  ;;  %8313 = vmatpush3.bf16.msra.mxu0 %v8765_v7 }
 0xe87   : > { %v6166_v17 = vcombine.low %v6144_v19, %v6151_v46  ;;  %v10483_v20 = vadd.f32 %v10309_v37, %v5980_v22  ;;  %v6132_v35 = vrot.slane %v6118_v47, %v9203_v21  ;;  %v10487_v28 = vadd.f32 %v10332_v62, %v5981_v15  ;;  %8314 = vmatprep.subr.bf16.mxu0 %v8766_v34 }
 0xe88   : > { %v6167_v32 = vcombine.low %v6158_v57, %v6165_v29  ;;  %v10490_v33 = vadd.f32 %v10340_v39, %v5982_v31  ;;  %v6233_v12 = vrot.slane %v6228_v3, %v9330_v60 }
 0xe89   : > { %v6174_v26 = vrot.slane %v6166_v17, %v9203_v21  ;;  %v6183_v49 = vcombine.low %v10480_v10, %v10483_v20  ;;  %v6133_v62 = vcombine.low %v6125_v9, %v6132_v35 }
 0xe8a   : > { %v6181_v42 = vrot.slane %v6167_v32, %v9203_v21  ;;  %v6184_v37 = vcombine.low %v10487_v28, %v10490_v33  ;;  %8315 = vmatpush3.bf16.msra.mxu0 %v8767_v38 }
 0xe8b   : > { %v6191_v2 = vrot.slane %v6183_v49, %v9203_v21 }
 0xe8c   : > { %v6182_v4 = vcombine.low %v6174_v26, %v6181_v42  ;;  %v6198_v39 = vrot.slane %v6184_v37, %v9203_v21 }
 0xe8e   : > { %v6210_v11 = vpack.c.bf16 %v6182_v4, %v6133_v62  ;;  %v6199_v43 = vcombine.low %v6191_v2, %v6198_v39  ;;  %v8172_v39 = vld [vmem:[%s752_s1] ss:$0 sm:$0xff] }
 0xe90   : > { %6353 = vmatmul.mubr.bf16.vlgmr.msra.gmra.mxu1 %v6210_v11  ;;  %v6206_v24 = vrot.slane %v6199_v43, %v9203_v21 }
 0xe91   : > { %6362 = vmatprep.mubr.bf16.mxu1 %v11095_v6  ;;  %v6237_v6 = vrot.slane %v6228_v3, %v9338_v0 }
 0xe92   : > { %v6211_v63 = vpack.c.bf16 %v6206_v24, %v6206_v24 }
 0xe98   : > { %6363 = vmatmul.mubr.bf16.gmra.mxu1 %v6211_v63 }
 0xf50   : > { %v6354_v18 = vpop.f32.mrf.mxu1 }
 0xf51   : > { %v6355_v36 = vadd.f32 %v6354_v18, %v6233_v12 }
 0xf52   : > { %v6356_v47 = vpop.f32.mrf.mxu1 }
 0xf53   : > { %v6357_v25 = vadd.f32 %v6356_v47, %v6237_v6  ;;  %v6371_v15 = vmax.f32 %v6355_v36, 0.0 }
 0xf54   : > { %v6358_v52 = vpop.f32.mrf.mxu1 }
 0xf55   : > { %v6359_v13 = vadd.f32 %v6358_v52, %v6233_v12  ;;  %v6372_v57 = vmax.f32 %v6357_v25, 0.0 }
 0xf56   : > { %v6360_v58 = vpop.f32.mrf.mxu1 }
 0xf57   : > { %v6361_v22 = vadd.f32 %v6360_v58, %v6237_v6  ;;  %v6373_v19 = vmax.f32 %v6359_v13, 0.0 }
 0xf58   : > { %v6364_v46 = vpop.f32.mrf.mxu1 }
 0xf59   : > { %v6374_v29 = vmax.f32 %v6361_v22, 0.0  ;;  %v6377_v35 = vpack.c.bf16 %v6373_v19, %v6371_v15  ;;  %v6365_v32 = vadd.f32 %v6364_v46, %v6233_v12 }
 0xf5a   : > { %v6366_v31 = vpop.f32.mrf.mxu1 }
 0xf5b   : > { %v6378_v9 = vpack.c.bf16 %v6374_v29, %v6372_v57  ;;  %v6367_v17 = vadd.f32 %v6366_v31, %v6237_v6  ;;  %v6375_v2 = vmax.f32 %v6365_v32, 0.0 }
 0xf5c   : > { %v6368_v26 = vpop.f32.mrf.mxu1 }
 0xf5d   : > { %v6376_v49 = vmax.f32 %v6367_v17, 0.0  ;;  %6548 = vmatprep.mubr.bf16.mxu0 %v6378_v9  ;;  %v6379_v62 = vpack.c.bf16 %v6375_v2, %v6375_v2 }
 0xf5e   : > { %v6369_v42 = vpop.f32.mrf.mxu1  ;;  %6549 = vmatmul.mubr.bf16.vlgmr.msra.gmra.mxu0 %v6377_v35 }
 0xf5f   : > { %v6380_v37 = vpack.c.bf16 %v6376_v49, %v6376_v49 }
 0xf61   : > { %6556 = vmatprep.mubr.bf16.mxu0 %v6380_v37 }
 0xf66   : > { %6557 = vmatmul.mubr.bf16.gmra.mxu0 %v6379_v62 }
0x101e   : > { %v8316_v4 = vpop.f32.mrf.mxu0 }
0x1020   : > { %v8317_v11 = vpop.f32.mrf.mxu0 }
0x1021   : > { %v8318_v43 = vadd.f32 %v8317_v11, %v8316_v4 }
0x1022   : > { %v8319_v24 = vpop.f32.mrf.mxu0 }
0x1023   : > { %v6551_v63 = vadd.f32 %v8318_v43, %v8172_v39 }
0x1024   : > { %v8320_v16 = vpop.f32.mrf.mxu0 }
0x1025   : > { %v6567_v55 = vcombine.high %v6551_v63, %v6551_v63  ;;  %v6574_v44 = vrot.slane %v6551_v63, %v9203_v21  ;;  %v8321_v7 = vadd.f32 %v8320_v16, %v8319_v24 }
0x1026   : > { %v8322_v34 = vpop.f32.mrf.mxu0 }
0x1027   : > { %v6581_v38 = vrot.slane %v6567_v55, %v9203_v21  ;;  %v6582_v3 = vcombine.high %v6574_v44, %v6574_v44  ;;  %v6590_v18 = vrot.slane %v6574_v44, %v9203_v21  ;;  %v6554_v6 = vadd.f32 %v8321_v7, %v8172_v39  ;;  %v11104_v7 = vld [vmem:[#allocation22_spill] sm:$0xff] }
0x1028   : > { %v8323_v12 = vpop.f32.mrf.mxu0 }
0x1029   : > { %v6583_v47 = vcombine.high %v6581_v38, %v6581_v38  ;;  %v6597_v52 = vrot.slane %v6581_v38, %v9203_v21  ;;  %v6604_v25 = vrot.slane %v6582_v3, %v9203_v21  ;;  %v6612_v13 = vcombine.high %v6590_v18, %v6590_v18 }
0x102a   : > { %v6616_v36 = vcombine.high %v6554_v6, %v6554_v6  ;;  %v6623_v58 = vrot.slane %v6554_v6, %v9203_v21  ;;  %v8324_v22 = vadd.f32 %v8323_v12, %v8322_v34  ;;  %v8325_v19 = vpop.f32.mrf.mxu0  ;;  %v10524_v15 = vadd.f32 %v6590_v18, %v10371_v41 }
0x102b   : > { %v6611_v46 = vrot.slane %v6583_v47, %v9203_v21  ;;  %v6613_v57 = vcombine.high %v6597_v52, %v6597_v52  ;;  %v6614_v29 = vcombine.high %v6604_v25, %v6604_v25  ;;  %v10527_v31 = vadd.f32 %v6604_v25, %v10374_v14 }
0x102c   : > { %v10530_v9 = vadd.f32 %v6612_v13, %v10377_v23  ;;  %v6630_v17 = vrot.slane %v6616_v36, %v9203_v21  ;;  %v6631_v35 = vcombine.high %v6623_v58, %v6623_v58  ;;  %v8326_v32 = vpop.f32.mrf.mxu0  ;;  %v10534_v49 = vadd.f32 %v6597_v52, %v10383_v1 }
0x102d   : > { %v6615_v26 = vcombine.high %v6611_v46, %v6611_v46  ;;  %v6639_v42 = vrot.slane %v6623_v58, %v9203_v21  ;;  %v6559_v37 = vadd.f32 %v8324_v22, %v8172_v39  ;;  %v10540_v62 = vadd.f32 %v6614_v29, %v10380_v56 }
0x102e   : > { %v6632_v2 = vcombine.high %v6630_v17, %v6630_v17  ;;  %v6646_v41 = vrot.slane %v6630_v17, %v9203_v21  ;;  %v6653_v14 = vrot.slane %v6631_v35, %v9203_v21  ;;  %v10547_v1 = vadd.f32 %v6611_v46, %v10386_v53 }
0x102f   : > { %v6661_v23 = vcombine.high %v6639_v42, %v6639_v42  ;;  %v10543_v4 = vadd.f32 %v6639_v42, %v10439_v30  ;;  %v6671_v11 = vrot.slane %v6559_v37, %v9203_v21  ;;  %v10551_v63 = vadd.f32 %v6613_v57, %v10389_v5 }
0x1030   : > { %v6660_v43 = vrot.slane %v6632_v2, %v9203_v21  ;;  %v6662_v39 = vcombine.high %v6646_v41, %v6646_v41  ;;  %v6663_v24 = vcombine.high %v6653_v14, %v6653_v14  ;;  %v10554_v16 = vadd.f32 %v6653_v14, %v10442_v51 }
0x1031   : > { %v10557_v56 = vadd.f32 %v6661_v23, %v10445_v45  ;;  %v6672_v30 = vcombine.high %v6671_v11, %v6671_v11  ;;  %v6679_v55 = vrot.slane %v6671_v11, %v9203_v21  ;;  %v10561_v53 = vadd.f32 %v6615_v26, %v11104_v7 }
0x1032   : > { %v6664_v44 = vcombine.high %v6660_v43, %v6660_v43  ;;  %v6751_v34 = vcombine.low %v10524_v15, %v10527_v31  ;;  %v6752_v5 = vcombine.low %v10530_v9, %v10540_v62  ;;  %v10568_v38 = vadd.f32 %v6646_v41, %v10451_v50 }
0x1033   : > { %v6686_v51 = vrot.slane %v6672_v30, %v9203_v21  ;;  %v6687_v45 = vcombine.high %v6679_v55, %v6679_v55  ;;  %v6753_v3 = vcombine.low %v10534_v49, %v10547_v1  ;;  %v6754_v18 = vcombine.low %v10551_v63, %v10561_v53 }
0x1034   : > { %v6761_v6 = vrot.slane %v6751_v34, %v9203_v21  ;;  %v6768_v12 = vrot.slane %v6752_v5, %v9203_v21  ;;  %v10578_v47 = vadd.f32 %v6663_v24, %v10448_v48  ;;  %v10582_v25 = vadd.f32 %v6660_v43, %v10454_v54 }
0x1035   : > { %v6688_v52 = vcombine.high %v6686_v51, %v6686_v51  ;;  %v6775_v50 = vrot.slane %v6753_v3, %v9203_v21  ;;  %v10585_v13 = vadd.f32 %v6662_v39, %v10457_v40  ;;  %v6782_v36 = vrot.slane %v6754_v18, %v9203_v21  ;;  %v11105_v18 = vld [vmem:[#allocation19_spill] sm:$0xff] }
0x1036   : > { %v6783_v58 = vcombine.low %v6761_v6, %v6768_v12  ;;  %v10589_v22 = vadd.f32 %v6664_v44, %v10460_v27  ;;  %v6800_v19 = vcombine.low %v10543_v4, %v10554_v16  ;;  %v10594_v48 = vadd.f32 %v6679_v55, %v10480_v10  ;;  %v11106_v12 = vld [vmem:[#allocation20_spill] sm:$0xff] }
0x1037   : > { %v6801_v46 = vcombine.low %v10557_v56, %v10578_v47  ;;  %v6802_v54 = vcombine.low %v10568_v38, %v10582_v25  ;;  %v10601_v40 = vadd.f32 %v6686_v51, %v10483_v20  ;;  %v6784_v57 = vcombine.low %v6775_v50, %v6782_v36  ;;  %v11107_v50 = vld [vmem:[#allocation21_spill] sm:$0xff] }
0x1038   : > { %v6803_v27 = vcombine.low %v10585_v13, %v10589_v22  ;;  %v6727_v29 = vadd.f32 %v6687_v45, %v10487_v28  ;;  %v6810_v17 = vrot.slane %v6800_v19, %v9203_v21  ;;  %v6728_v35 = vadd.f32 %v6688_v52, %v10490_v33 }
0x1039   : > { %v6817_v10 = vrot.slane %v6801_v46, %v9203_v21  ;;  %v6849_v32 = vcombine.low %v10594_v48, %v10601_v40  ;;  %v6791_v26 = vrot.slane %v6783_v58, %v9203_v21  ;;  %v6798_v20 = vrot.slane %v6784_v57, %v9203_v21 }
0x103a   : > { %v6824_v42 = vrot.slane %v6802_v54, %v9203_v21  ;;  %v6831_v37 = vrot.slane %v6803_v27, %v9203_v21  ;;  %v6850_v41 = vcombine.low %v6727_v29, %v6728_v35 }
0x103b   : > { %v6832_v2 = vcombine.low %v6810_v17, %v6817_v10  ;;  %v6799_v28 = vcombine.low %v6791_v26, %v6798_v20  ;;  %v6857_v23 = vrot.slane %v6849_v32, %v9203_v21 }
0x103c   : > { %v6833_v14 = vcombine.low %v6824_v42, %v6831_v37  ;;  %v6864_v11 = vrot.slane %v6850_v41, %v9203_v21 }
0x103d   : > { %6876 = vadd.xlane.f32.xlu0 %v6799_v28  ;;  %v6840_v33 = vrot.slane %v6832_v2, %v9203_v21 }
0x103e   : > { %v6847_v43 = vrot.slane %v6833_v14, %v9203_v21  ;;  %v6865_v39 = vcombine.low %v6857_v23, %v6864_v11 }
0x1040   : > { %v6848_v24 = vcombine.low %v6840_v33, %v6847_v43  ;;  %v6872_v30 = vrot.slane %v6865_v39, %v9203_v21 }
0x1042   : > { %6878 = vadd.xlane.f32.xlu1 %v6848_v24  ;;  %v6880_v55 = vsel %vm5466_vm6, %v6872_v30, 0.0 }
0x1043   : > { %6881 = vadd.xlane.f32.xlu0 %v6880_v55 }
0x10c6   : > { %v6877_v44 = vpop.xlane.xlu0 %6876 }
0x10c7   : > { %v6883_v7 = vmul.f32 0.0078125, %v6877_v44 }
0x10c9   : > { %v6892_v34 = vrot.slane %v6883_v7, %v9330_v60  ;;  %v6896_v5 = vrot.slane %v6883_v7, %v9338_v0  ;;  %v6900_v51 = vrot.slane %v6883_v7, %v9443_v8  ;;  %v6904_v45 = vrot.slane %v6883_v7, %v10090_v59 }
0x10ca   : > { %v6908_v6 = vrot.slane %v6883_v7, %v11105_v18  ;;  %v6912_v52 = vrot.slane %v6883_v7, %v11106_v12  ;;  %v6916_v36 = vrot.slane %v6883_v7, %v11107_v50  ;;  %v6920_v58 = vrot.slane %v6883_v7, %v10102_v61 }
0x10cb   : > { %v6879_v3 = vpop.xlane.xlu1 %6878  ;;  %v10630_v46 = vsub.f32 %v10524_v15, %v6892_v34  ;;  %v10633_v54 = vsub.f32 %v10527_v31, %v6896_v5  ;;  %v10636_v57 = vsub.f32 %v10530_v9, %v6900_v51  ;;  %v10639_v17 = vsub.f32 %v10540_v62, %v6904_v45 }
0x10cc   : > { %v6884_v19 = vmul.f32 0.0078125, %v6879_v3  ;;  %v6882_v27 = vpop.xlane.xlu0 %6881  ;;  %v10642_v10 = vsub.f32 %v10534_v49, %v6908_v6  ;;  %v10645_v32 = vsub.f32 %v10547_v1, %v6912_v52  ;;  %v10648_v26 = vsub.f32 %v10551_v63, %v6916_v36 }
0x10cd   : > { %v6885_v15 = vmul.f32 0.0078125, %v6882_v27  ;;  %v10651_v31 = vsub.f32 %v10561_v53, %v6920_v58  ;;  %v7009_v9 = vmul.f32 %v10630_v46, %v10630_v46  ;;  %v7010_v62 = vmul.f32 %v10633_v54, %v10633_v54 }
0x10ce   : > { %v7011_v49 = vmul.f32 %v10636_v57, %v10636_v57  ;;  %v7012_v1 = vmul.f32 %v10639_v17, %v10639_v17  ;;  %v7013_v63 = vmul.f32 %v10642_v10, %v10642_v10  ;;  %v7014_v20 = vmul.f32 %v10645_v32, %v10645_v32 }
0x10cf   : > { %v6956_v53 = vrot.slane %v6885_v15, %v9330_v60  ;;  %v6960_v42 = vrot.slane %v6885_v15, %v9338_v0  ;;  %v6964_v37 = vrot.slane %v6885_v15, %v9443_v8  ;;  %v6968_v2 = vrot.slane %v6885_v15, %v10090_v59 }
0x10d0   : > { %v7015_v41 = vmul.f32 %v10648_v26, %v10648_v26  ;;  %v7016_v28 = vmul.f32 %v10651_v31, %v10651_v31  ;;  %v7049_v14 = vcombine.low %v7009_v9, %v7010_v62  ;;  %v7050_v23 = vcombine.low %v7011_v49, %v7012_v1 }
0x10d1   : > { %v10674_v11 = vsub.f32 %v10594_v48, %v6956_v53  ;;  %v10677_v33 = vsub.f32 %v10601_v40, %v6960_v42  ;;  %v10679_v43 = vsub.f32 %v6727_v29, %v6964_v37  ;;  %v10681_v39 = vsub.f32 %v6728_v35, %v6968_v2 }
0x10d2   : > { %v7051_v24 = vcombine.low %v7013_v63, %v7014_v20  ;;  %v7052_v30 = vcombine.low %v7015_v41, %v7016_v28  ;;  %v7059_v55 = vrot.slane %v7049_v14, %v9203_v21  ;;  %v7066_v44 = vrot.slane %v7050_v23, %v9203_v21 }
0x10d3   : > { %v6924_v7 = vrot.slane %v6884_v19, %v9330_v60  ;;  %v6928_v34 = vrot.slane %v6884_v19, %v9338_v0  ;;  %v6932_v48 = vrot.slane %v6884_v19, %v9443_v8  ;;  %v6936_v5 = vrot.slane %v6884_v19, %v10090_v59 }
0x10d4   : > { %v7073_v40 = vrot.slane %v7051_v24, %v9203_v21  ;;  %v7080_v29 = vrot.slane %v7052_v30, %v9203_v21  ;;  %v7081_v35 = vcombine.low %v7059_v55, %v7066_v44  ;;  %v6940_v51 = vrot.slane %v6884_v19, %v11105_v18 }
0x10d5   : > { %v6944_v45 = vrot.slane %v6884_v19, %v11106_v12  ;;  %v6948_v3 = vrot.slane %v6884_v19, %v11107_v50  ;;  %v6952_v6 = vrot.slane %v6884_v19, %v10102_v61  ;;  %v10696_v52 = vsub.f32 %v10543_v4, %v6924_v7 }
0x10d6   : > { %v7082_v36 = vcombine.low %v7073_v40, %v7080_v29  ;;  %v7089_v58 = vrot.slane %v7081_v35, %v9203_v21  ;;  %v10700_v27 = vsub.f32 %v10554_v16, %v6928_v34  ;;  %v10703_v15 = vsub.f32 %v10557_v56, %v6932_v48 }
0x10d7   : > { %v10706_v9 = vsub.f32 %v10578_v47, %v6936_v5  ;;  %v10709_v62 = vsub.f32 %v10568_v38, %v6940_v51  ;;  %v10712_v19 = vsub.f32 %v10582_v25, %v6944_v45  ;;  %v10715_v4 = vsub.f32 %v10585_v13, %v6948_v3 }
0x10d8   : > { %v7096_v49 = vrot.slane %v7082_v36, %v9203_v21  ;;  %v10719_v16 = vsub.f32 %v10589_v22, %v6952_v6  ;;  %v7017_v56 = vmul.f32 %v10696_v52, %v10696_v52  ;;  %v7018_v47 = vmul.f32 %v10700_v27, %v10700_v27 }
0x10d9   : > { %v7019_v38 = vmul.f32 %v10703_v15, %v10703_v15  ;;  %v7020_v25 = vmul.f32 %v10706_v9, %v10706_v9  ;;  %v7021_v13 = vmul.f32 %v10709_v62, %v10709_v62  ;;  %v7022_v1 = vmul.f32 %v10712_v19, %v10712_v19 }
0x10da   : > { %v7097_v22 = vcombine.low %v7089_v58, %v7096_v49  ;;  %v7023_v63 = vmul.f32 %v10715_v4, %v10715_v4  ;;  %v7024_v20 = vmul.f32 %v10719_v16, %v10719_v16  ;;  %v7098_v53 = vcombine.low %v7017_v56, %v7018_v47  ;;  %v8189_v58 = vld [vmem:[%s755_s3] ss:$0 sm:$0xff] }
0x10db   : > { %v7099_v42 = vcombine.low %v7019_v38, %v7020_v25  ;;  %v7100_v37 = vcombine.low %v7021_v13, %v7022_v1  ;;  %v7025_v2 = vmul.f32 %v10674_v11, %v10674_v11  ;;  %v7026_v41 = vmul.f32 %v10677_v33, %v10677_v33  ;;  %v8190_v25 = vld [vmem:[%s758_s6] ss:$0 sm:$0xff]  ;;  %s11109_s6 = sld [smem:[#allocation9_spill]] }
0x10dc   : > { %7174 = vadd.xlane.f32.xlu1 %v7097_v22  ;;  %v7101_v28 = vcombine.low %v7023_v63, %v7024_v20  ;;  %v7108_v14 = vrot.slane %v7098_v53, %v9203_v21  ;;  %v7027_v23 = vmul.f32 %v10679_v43, %v10679_v43  ;;  %v7028_v24 = vmul.f32 %v10681_v39, %v10681_v39 }
0x10dd   : > { %v7115_v30 = vrot.slane %v7099_v42, %v9203_v21  ;;  %v7122_v55 = vrot.slane %v7100_v37, %v9203_v21  ;;  %v7147_v44 = vcombine.low %v7025_v2, %v7026_v41  ;;  %v7318_v47 = vcombine.high %v8189_v58, %v8189_v58 }
0x10de   : > { %v7129_v7 = vrot.slane %v7101_v28, %v9203_v21  ;;  %v7148_v34 = vcombine.low %v7027_v23, %v7028_v24  ;;  %v7325_v13 = vrot.slane %v8189_v58, %v9203_v21  ;;  %v7400_v22 = vcombine.high %v8190_v25, %v8190_v25 }
0x10df   : > { %v7130_v48 = vcombine.low %v7108_v14, %v7115_v30  ;;  %v7155_v5 = vrot.slane %v7147_v44, %v9203_v21  ;;  %v7332_v1 = vrot.slane %v7318_v47, %v9203_v21  ;;  %v7407_v63 = vrot.slane %v8190_v25, %v9203_v21 }
0x10e0   : > { %v7131_v40 = vcombine.low %v7122_v55, %v7129_v7  ;;  %v7162_v29 = vrot.slane %v7148_v34, %v9203_v21  ;;  %v7333_v20 = vcombine.high %v7325_v13, %v7325_v13  ;;  %v7414_v42 = vrot.slane %v7400_v22, %v9203_v21 }
0x10e1   : > { %v7138_v35 = vrot.slane %v7130_v48, %v9203_v21  ;;  %v7334_v53 = vcombine.high %v7332_v1, %v7332_v1  ;;  %v7415_v37 = vcombine.high %v7407_v63, %v7407_v63  ;;  %v10770_v14 = vrot.slane %v7325_v13, %v9203_v21  ;;  %p8191_p1 = scmp.ne.s32.totalorder %s11109_s6, 1 }
0x10e2   : > { %v7145_v51 = vrot.slane %v7131_v40, %v9203_v21  ;;  %v7163_v45 = vcombine.low %v7155_v5, %v7162_v29  ;;  %v10773_v24 = vrot.slane %v7332_v1, %v9203_v21  ;;  %v10776_v30 = vrot.slane %v7333_v20, %v9203_v21  ;;  %s11110_s2 = sld [smem:[#allocation30_spill]] (!%p8191_p1) }
0x10e3   : > { %v10779_v55 = vrot.slane %v7334_v53, %v9203_v21  ;;  %v7416_v7 = vcombine.high %v7414_v42, %v7414_v42  ;;  %v10782_v34 = vrot.slane %v7407_v63, %v9203_v21  ;;  %v10785_v48 = vrot.slane %v7415_v37, %v9203_v21  ;;  %s11111_s1 = sld [smem:[#allocation31_spill]] (!%p8191_p1) }
0x10e4   : > { %v7146_v3 = vcombine.low %v7138_v35, %v7145_v51  ;;  %v7170_v6 = vrot.slane %v7163_v45, %v9203_v21  ;;  %v10789_v40 = vcombine.high %v10770_v14, %v10770_v14  ;;  %v10793_v29 = vcombine.high %v10773_v24, %v10773_v24  ;;  %s11112_s6 = sld [smem:[#allocation32_spill]] (!%p8191_p1) }
0x10e5   : > { %v10797_v35 = vcombine.high %v10776_v30, %v10776_v30  ;;  %v10800_v51 = vrot.slane %v7414_v42, %v9203_v21  ;;  %v10815_v58 = vcombine.high %v10785_v48, %v10785_v48  ;;  %s11113_s7 = sld [smem:[#allocation33_spill]] (!%p8191_p1) }
0x10e6   : > { %7176 = vadd.xlane.f32.xlu0 %v7146_v3  ;;  %v7178_v36 = vsel %vm5466_vm6, %v7170_v6, 0.0  ;;  %v10804_v3 = vcombine.high %v10779_v55, %v10779_v55  ;;  %v10807_v6 = vrot.slane %v7416_v7, %v9203_v21 }
0x10e7   : > { %7179 = vadd.xlane.f32.xlu1 %v7178_v36  ;;  %v10811_v36 = vcombine.high %v10782_v34, %v10782_v34 }
0x1165   : > { %v7175_v49 = vpop.xlane.xlu1 %7174 }
0x1166   : > { %v7181_v56 = vmul.f32 0.0078125, %v7175_v49 }
0x1168   : > { %v7184_v38 = vadd.f32 1e-05, %v7181_v56 }
0x116a   : > { %8838 = vrsqrt.f32 %v7184_v38 }
0x116f   : > { %v7177_v2 = vpop.xlane.xlu0 %7176 }
0x1170   : > { %v7180_v41 = vpop.xlane.xlu1 %7179  ;;  %v7182_v28 = vmul.f32 0.0078125, %v7177_v2 }
0x1171   : > { %v7183_v23 = vmul.f32 0.0078125, %v7180_v41 }
0x1172   : > { %v7185_v44 = vadd.f32 1e-05, %v7182_v28  ;;  %v10834_v28 = vcombine.high %v10800_v51, %v10800_v51 }
0x1173   : > { %v7186_v5 = vadd.f32 1e-05, %v7183_v23 }
0x1174   : > { %8840 = vrsqrt.f32 %v7185_v44 }
0x1175   : > { %8842 = vrsqrt.f32 %v7186_v5 }
0x1177   : > { %v8839_v45 = vpop.eup %8838 }
0x1178   : > { %v7196_v49 = vrot.slane %v8839_v45, %v9330_v60  ;;  %v7200_v56 = vrot.slane %v8839_v45, %v9338_v0  ;;  %v7204_v47 = vrot.slane %v8839_v45, %v9443_v8  ;;  %v7208_v38 = vrot.slane %v8839_v45, %v10090_v59 }
0x1179   : > { %v7212_v25 = vrot.slane %v8839_v45, %v11105_v18  ;;  %v7216_v13 = vrot.slane %v8839_v45, %v11106_v12  ;;  %v7220_v1 = vrot.slane %v8839_v45, %v11107_v50  ;;  %v7224_v22 = vrot.slane %v8839_v45, %v10102_v61 }
0x117a   : > { %v7293_v63 = vmul.f32 %v7196_v49, %v10630_v46  ;;  %v7294_v20 = vmul.f32 %v7200_v56, %v10633_v54  ;;  %v7295_v53 = vmul.f32 %v7204_v47, %v10636_v57  ;;  %v7296_v42 = vmul.f32 %v7208_v38, %v10639_v17 }
0x117b   : > { %v7297_v37 = vmul.f32 %v7212_v25, %v10642_v10  ;;  %v7298_v2 = vmul.f32 %v7216_v13, %v10645_v32  ;;  %v7299_v41 = vmul.f32 %v7220_v1, %v10648_v26  ;;  %v7300_v17 = vmul.f32 %v7224_v22, %v10651_v31 }
0x117c   : > { %v7375_v23 = vmul.f32 %v10770_v14, %v7293_v63  ;;  %v7376_v46 = vmul.f32 %v10776_v30, %v7294_v20  ;;  %v7377_v54 = vmul.f32 %v10789_v40, %v7295_v53  ;;  %v7378_v57 = vmul.f32 %v10797_v35, %v7296_v42 }
0x117d   : > { %v7379_v10 = vmul.f32 %v10773_v24, %v7297_v37  ;;  %v7380_v32 = vmul.f32 %v10779_v55, %v7298_v2  ;;  %v7381_v26 = vmul.f32 %v10793_v29, %v7299_v41  ;;  %v7382_v38 = vmul.f32 %v10804_v3, %v7300_v17 }
0x117e   : > { %v10845_v44 = vadd.f32 %v10782_v34, %v7375_v23  ;;  %v7458_v7 = vadd.f32 %v10785_v48, %v7376_v46  ;;  %v7459_v5 = vadd.f32 %v10811_v36, %v7377_v54  ;;  %v7460_v45 = vadd.f32 %v10815_v58, %v7378_v57 }
0x117f   : > { %v7461_v49 = vadd.f32 %v10800_v51, %v7379_v10  ;;  %v7448_v25 = vcombine.high %v10807_v6, %v10807_v6  ;;  %v10857_v22 = vadd.f32 %v10807_v6, %v7380_v32  ;;  %v7463_v63 = vadd.f32 %v10834_v28, %v7381_v26 }
0x1180   : > { %v7497_v56 = vcombine.low %v10845_v44, %v7458_v7  ;;  %v7498_v31 = vcombine.low %v7459_v5, %v7460_v45 }
0x1181   : > { %v8841_v47 = vpop.eup %8840  ;;  %v7519_v13 = vrot.slane %v7461_v49, %v9203_v21 }
0x1182   : > { %v8843_v1 = vpop.eup %8842  ;;  %v7505_v20 = vrot.slane %v7497_v56, %v9203_v21  ;;  %v7512_v53 = vrot.slane %v7498_v31, %v9203_v21  ;;  %v7228_v2 = vrot.slane %v8841_v47, %v9330_v60  ;;  %v7232_v41 = vrot.slane %v8841_v47, %v9338_v0 }
0x1183   : > { %v7260_v42 = vrot.slane %v8843_v1, %v9330_v60  ;;  %v7264_v37 = vrot.slane %v8843_v1, %v9338_v0  ;;  %v7534_v46 = vrot.slane %v7519_v13, %v9203_v21  ;;  %v7268_v54 = vrot.slane %v8843_v1, %v9443_v8 }
0x1184   : > { %v7520_v23 = vcombine.low %v7505_v20, %v7512_v53  ;;  %v7272_v57 = vrot.slane %v8843_v1, %v10090_v59  ;;  %v7236_v32 = vrot.slane %v8841_v47, %v9443_v8  ;;  %v7240_v26 = vrot.slane %v8841_v47, %v10090_v59 }
0x1185   : > { %v7309_v17 = vmul.f32 %v7260_v42, %v10674_v11  ;;  %v7310_v10 = vmul.f32 %v7264_v37, %v10677_v33  ;;  %v7311_v60 = vmul.f32 %v7268_v54, %v10679_v43  ;;  %v7244_v5 = vrot.slane %v8841_v47, %v11105_v18 }
0x1186   : > { %v7527_v7 = vrot.slane %v7520_v23, %v9203_v21  ;;  %v7312_v0 = vmul.f32 %v7272_v57, %v10681_v39  ;;  %v7248_v49 = vrot.slane %v8841_v47, %v11106_v12  ;;  %v7252_v11 = vrot.slane %v8841_v47, %v11107_v50 }
0x1187   : > { %v7392_v45 = vmul.f32 %v10776_v30, %v7310_v10  ;;  %v7256_v33 = vrot.slane %v8841_v47, %v10102_v61  ;;  %v7464_v56 = vadd.f32 %v7448_v25, %v7382_v38  ;;  %v7393_v59 = vmul.f32 %v10789_v40, %v7311_v60 }
0x1188   : > { %v7535_v8 = vcombine.low %v7527_v7, %v7534_v46  ;;  %v7301_v31 = vmul.f32 %v7228_v2, %v10696_v52  ;;  %v7391_v43 = vmul.f32 %v10770_v14, %v7309_v17  ;;  %v7302_v18 = vmul.f32 %v7232_v41, %v10700_v27 }
0x1189   : > { %v7474_v39 = vadd.f32 %v10785_v48, %v7392_v45  ;;  %v7303_v13 = vmul.f32 %v7236_v32, %v10703_v15  ;;  %v7394_v12 = vmul.f32 %v10797_v35, %v7312_v0  ;;  %v7475_v50 = vadd.f32 %v10811_v36, %v7393_v59 }
0x118a   : > { %7657 = vst [vmem:[#allocation2 + $0x10] sm:$0x1f] %v7535_v8  ;;  %v7304_v61 = vmul.f32 %v7240_v26, %v10706_v9  ;;  %v7305_v47 = vmul.f32 %v7244_v5, %v10709_v62  ;;  %v7306_v38 = vmul.f32 %v7248_v49, %v10712_v19  ;;  %v7307_v52 = vmul.f32 %v7252_v11, %v10715_v4 }
0x118b   : > { %v7308_v1 = vmul.f32 %v7256_v33, %v10719_v16  ;;  %v7383_v20 = vmul.f32 %v10770_v14, %v7301_v31  ;;  %v7536_v27 = vcombine.low %v10857_v22, %v7463_v63  ;;  %v7615_v15 = vcombine.low %v7474_v39, %v7475_v50 }
0x118c   : > { %v7384_v53 = vmul.f32 %v10776_v30, %v7302_v18  ;;  %v7385_v42 = vmul.f32 %v10789_v40, %v7303_v13  ;;  %v7386_v37 = vmul.f32 %v10797_v35, %v7304_v61  ;;  %v7387_v9 = vmul.f32 %v10773_v24, %v7305_v47 }
0x118d   : > { %v7388_v62 = vmul.f32 %v10779_v55, %v7306_v38  ;;  %v7389_v19 = vmul.f32 %v10793_v29, %v7307_v52  ;;  %v7473_v4 = vadd.f32 %v10782_v34, %v7391_v43  ;;  %v7476_v16 = vadd.f32 %v10815_v58, %v7394_v12 }
0x118e   : > { %v7390_v14 = vmul.f32 %v10804_v3, %v7308_v1  ;;  %v7465_v63 = vadd.f32 %v10782_v34, %v7383_v20  ;;  %v7466_v30 = vadd.f32 %v10785_v48, %v7384_v53  ;;  %v7467_v40 = vadd.f32 %v10811_v36, %v7385_v42 }
0x118f   : > { %v7468_v35 = vadd.f32 %v10815_v58, %v7386_v37  ;;  %v7469_v24 = vadd.f32 %v10800_v51, %v7387_v9  ;;  %v7470_v55 = vadd.f32 %v10807_v6, %v7388_v62  ;;  %v7471_v29 = vadd.f32 %v10834_v28, %v7389_v19 }
0x1190   : > { %v7472_v2 = vadd.f32 %v7448_v25, %v7390_v14  ;;  %v7537_v41 = vcombine.low %v7464_v56, %v7465_v63  ;;  %v7544_v23 = vrot.slane %v7536_v27, %v9203_v21  ;;  %v7629_v3 = vrot.slane %v7615_v15, %v9203_v21 }
0x1191   : > { %v7575_v46 = vcombine.low %v7467_v40, %v7468_v35  ;;  %v7558_v48 = vrot.slane %v7466_v30, %v9203_v21  ;;  %v7576_v36 = vcombine.low %v7469_v24, %v7470_v55  ;;  %v7636_v58 = vrot.slane %v7476_v16, %v9203_v21 }
0x1192   : > { %v7551_v34 = vrot.slane %v7537_v41, %v9203_v21  ;;  %v7614_v54 = vcombine.low %v7472_v2, %v7473_v4  ;;  %v7597_v25 = vrot.slane %v7471_v29, %v9203_v21 }
0x1193   : > { %v7583_v51 = vrot.slane %v7575_v46, %v9203_v21  ;;  %v7590_v28 = vrot.slane %v7576_v36, %v9203_v21  ;;  %v7573_v10 = vrot.slane %v7558_v48, %v9203_v21  ;;  %v7651_v7 = vrot.slane %v7636_v58, %v9203_v21 }
0x1194   : > { %v7559_v6 = vcombine.low %v7544_v23, %v7551_v34  ;;  %v7622_v57 = vrot.slane %v7614_v54, %v9203_v21  ;;  %v7612_v5 = vrot.slane %v7597_v25, %v9203_v21 }
0x1195   : > { %v7598_v32 = vcombine.low %v7583_v51, %v7590_v28 }
0x1196   : > { %v7566_v17 = vrot.slane %v7559_v6, %v9203_v21  ;;  %v7637_v26 = vcombine.low %v7622_v57, %v7629_v3 }
0x1197   : > { %v7605_v0 = vrot.slane %v7598_v32, %v9203_v21 }
0x1198   : > { %v7574_v60 = vcombine.low %v7566_v17, %v7573_v10  ;;  %v7644_v45 = vrot.slane %v7637_v26, %v9203_v21  ;;  %7664 = sbr.rel (%p8191_p1) target bundleno = 5046 (0x13b6), region = 96 }
0x1199   : > { %v7613_v49 = vcombine.low %v7605_v0, %v7612_v5 }
0x119a   : > { %v7652_v11 = vcombine.low %v7644_v45, %v7651_v7  ;;  %7658 = vst [vmem:[#allocation2] sm:$0x1f] %v7574_v60 }
0x119b   : > { %7659 = vst [vmem:[#allocation2 + $0x18] sm:$0x1f] %v7613_v49 }
0x119c   : > { %7660 = vst [vmem:[#allocation2 + $0x8] sm:$0x1f] %v7652_v11 }
0x119d   : > { %v8844_v33 = vld [vmem:[%s11110_s2 + $0x38] sm:$0xff]   ;;  %v8956_v56 = vmov 0.0   ;;  %v8845_v8 = vld [vmem:[%s11110_s2 + $0x30] sm:$0xff]   ;;  %vm8957_vm7 = vmmov 0   ;;  %v8846_v21 = vld [vmem:[%s11110_s2 + $0x28] sm:$0xff]   ;;  %v7666_v59 = vpack.c.bf16 %v10857_v22, %v10857_v22  ;;  %v7667_v43 = vpack.c.bf16 %v7467_v40, %v7467_v40 }
0x119e   : > { %8581 = vmatprep.subr.bf16.mxu0 %v8956_v56  ;;  %8597 = vmatprep.mubr.msk.bf16.mxu0 %vm8957_vm7, %v8956_v56  ;;  %v8847_v31 = vld [vmem:[%s11110_s2 + $0x20] sm:$0xff]   ;;  %v7665_v39 = vpack.c.bf16 %v10845_v44, %v10845_v44  ;;  %v8848_v13 = vld [vmem:[%s11110_s2 + $0x18] sm:$0xff]   ;;  %v7668_v12 = vpack.c.bf16 %v7472_v2, %v7472_v2  ;;  %vm7701_vm8 = vcmask 1041409   ;;  %v8849_v47 = vld [vmem:[%s11110_s2 + $0x10] sm:$0xff]   ;;  %vm7704_vm9 = vcmask 1042434  }
0x119f   : > { %8582 = vmatpush3.bf16.msra.mxu0 %v8844_v33  ;;  %v7697_v18 = vunpack.c.l.b16 %v7666_v59  ;;  %v7698_v50 = vunpack.c.l.b16 %v7667_v43  ;;  %v8850_v1 = vld [vmem:[%s11110_s2 + $0x8] sm:$0xff]   ;;  %vm7707_vm10 = vcmask 1043459   ;;  %v8851_v15 = vld [vmem:[%s11110_s2] sm:$0xff]  }
0x11a0   : > { %8583 = vmatprep.subr.bf16.mxu0 %v8956_v56  ;;  %v7696_v22 = vunpack.c.l.b16 %v7665_v39  ;;  %v7699_v38 = vunpack.c.l.b16 %v7668_v12  ;;  %v8192_v37 = vld [vmem:[%s11111_s1] ss:$0 sm:$0xff] }
0x11a1   : > { %v7700_v61 = vrot.slane %v7697_v18, 7  ;;  %v7703_v44 = vrot.slane %v7698_v50, 6  ;;  %v8201_v23 = vld [vmem:[%s11112_s6] ss:$0 sm:$0xff] }
0x11a2   : > { %v7706_v20 = vrot.slane %v7699_v38, 5  ;;  %v8202_v46 = vld [vmem:[%s11113_s7] ss:$0 sm:$0xff] }
0x11a3   : > { %8584 = vmatpush3.bf16.msra.mxu0 %v8845_v8  ;;  %v7702_v52 = vsel %vm7701_vm8, %v7700_v61, %v7696_v22 }
0x11a4   : > { %8585 = vmatprep.subr.bf16.mxu0 %v8956_v56  ;;  %v7705_v27 = vsel %vm7704_vm9, %v7703_v44, %v7702_v52 }
0x11a5   : > { %v7708_v53 = vsel %vm7707_vm10, %v7706_v20, %v7705_v27 }
0x11a6   : > { %v7709_v42 = vpack.c.b16 %v7708_v53, %v7708_v53 }
0x11a7   : > { %8586 = vmatpush3.bf16.msra.mxu0 %v8846_v21 }
0x11a8   : > { %8587 = vmatprep.subr.bf16.mxu0 %v8956_v56 }
0x11ab   : > { %8588 = vmatpush3.bf16.msra.mxu0 %v8847_v31 }
0x11ac   : > { %8589 = vmatprep.subr.bf16.mxu0 %v8956_v56 }
0x11af   : > { %8590 = vmatpush3.bf16.msra.mxu0 %v8848_v13 }
0x11b0   : > { %8591 = vmatprep.subr.bf16.mxu0 %v8956_v56 }
0x11b3   : > { %8592 = vmatpush3.bf16.msra.mxu0 %v8849_v47 }
0x11b4   : > { %8593 = vmatprep.subr.bf16.mxu0 %v8956_v56 }
0x11b7   : > { %8594 = vmatpush3.bf16.msra.mxu0 %v8850_v1 }
0x11b8   : > { %8595 = vmatprep.subr.bf16.mxu0 %v8956_v56 }
0x11bb   : > { %8596 = vmatpush3.bf16.msra.mxu0 %v8851_v15 }
0x11be   : > { %8598 = vmatmul.mubr.bf16.vlgmr.msra.gmra.mxu0 %v7709_v42 }
0x127e   : > { %v7793_v9 = vpop.f32.mrf.mxu0 }
0x127f   : > { %v7794_v62 = vadd.f32 %v8192_v37, %v7793_v9 }
0x1280   : > { %v8599_v19 = vpop.f32.mrf.mxu0 }
0x1281   : > { %v7801_v4 = vsel %vm5466_vm6, %v7794_v62, 0.0 }
0x1282   : > { %7802 = vadd.xlane.f32.xlu0 %v7801_v4  ;;  %v7796_v16 = vpop.f32.mrf.mxu0 }
0x1284   : > { %v8600_v14 = vpop.f32.mrf.mxu0 }
0x130b   : > { %v7803_v63 = vpop.xlane.xlu0 %7802 }
0x130c   : > { %v7804_v30 = vmul.f32 0.0078125, %v7803_v63 }
0x130e   : > { %v7805_v40 = vsub.f32 %v7794_v62, %v7804_v30 }
0x1310   : > { %v7806_v35 = vmul.f32 %v7805_v40, %v7805_v40 }
0x1312   : > { %v7807_v24 = vsel %vm5466_vm6, %v7806_v35, 0.0 }
0x1313   : > { %7808 = vadd.xlane.f32.xlu0 %v7807_v24 }
0x139c   : > { %v7809_v55 = vpop.xlane.xlu0 %7808 }
0x139d   : > { %v7810_v29 = vmul.f32 0.0078125, %v7809_v55 }
0x139f   : > { %v7811_v2 = vadd.f32 1e-05, %v7810_v29 }
0x13a1   : > { %8852 = vrsqrt.f32 %v7811_v2 }
0x13ae   : > { %v8853_v41 = vpop.eup %8852 }
0x13af   : > { %v7813_v3 = vmul.f32 %v8853_v41, %v7805_v40 }
0x13b1   : > { %v7820_v34 = vmul.f32 %v8201_v23, %v7813_v3 }
0x13b3   : > { %v7827_v48 = vadd.f32 %v8202_v46, %v7820_v34 }
0x13b5   : > { %7828 = vst [vmem:[%s706_s26] sm:$0xf] %v7827_v48 }
0x13b6 PF: > { %s11114_s13 = sld [smem:[#allocation10_spill]]  ;;  %s7843_s14 = sshll.u32 %s706_s26, 4  ;;  %s7844_s14 = int_to_ptr.vmem [resolvable:$true] %s7843_s14 }
0x13b7   : > { %s11115_s28 = sld [smem:[#allocation7_spill]]  ;;  %s8854_s23 = scalar_lea.vmem %s7844_s14, 64 }
0x13b8   : > { %s11117_s21 = sld [smem:[#allocation34_spill]]  ;;  %p8855_p2 = scmp.ne.s32.totalorder %s7844_s14, %s8854_s23 }
0x13b9   : > { %s8958_s12 = smov [#allocation3]  }
0x13ba   : > { %p8856_p4 = pnand %p8855_p2, %p9098_p3  ;;  %s8858_s27 = sshll.u32 %s8958_s12, 4  ;;  %s8859_s27 = int_to_ptr.vmem [resolvable:$false] %s8858_s27 }
0x13bb   : > { %s8860_s25 = scalar_lea.vmem %s8859_s27, 128  ;;  %p8861_p6 = scmp.lt.s32.totalorder %s7844_s14, %s8859_s27 }
0x13bc   : > { %s8204_s29 = sshll.u32 %s11114_s13, 6  ;;  %p8857_p5 = pneg %p8856_p4 }
0x13bd   : > { %s11118_s20 = sand.u32 1, %s11115_s28   ;;  %p8862_p7 = scmp.lt.s32.totalorder %s8860_s25, %s8854_s23 }
0x13be   : > { %s7841_s15 = scalar_lea.hbm %s11117_s21, %s8204_s29  ;;  %s7830_s18 = scalar_lea.sflag [#allocation4], %s11118_s20 }
0x13bf   : > { %p8863_p8 = por %p8862_p7, %p8861_p6 }
0x13c1   : > { %p8864_p10 = pnand %p8863_p8, %p8857_p5 }
0x13c3   : > { %8867 = shalt.err (!%p8864_p10)
}
0x13c4   : > { %s8868_s1 = scalar_lea.hbm %s7841_s15, 64  ;;  %s8872_s30 = scalar_lea.hbm %s11117_s21, 128 }
0x13c5   : > { %p8869_p11 = scmp.ne.s32.totalorder %s7841_s15, %s8868_s1  ;;  %p8873_p0 = scmp.lt.s32.totalorder %s7841_s15, %s11117_s21 }
0x13c6   : > { %p8874_p1 = scmp.lt.s32.totalorder %s8872_s30, %s8868_s1 }
0x13c7   : > { %p8870_p12 = pnand %p8869_p11, %p9098_p3 }
0x13c8   : > { %p8875_p2 = por %p8874_p1, %p8873_p0 }
0x13c9   : > { %p8871_p13 = pneg %p8870_p12 }
0x13cb   : > { %p8876_p4 = pnand %p8875_p2, %p8871_p13 }
0x13cd   : > { %8879 = shalt.err (!%p8876_p4)
}
0x13ce   : > { %8603 = dma.vmem_to_hbm [thread:$0]  (%p9098_p3), %s7844_s14, 64, %s7841_s15, %s7830_s18  }
0x13cf PF: > { %s11119_s22 = sld [smem:[#allocation13_spill]] }
0x13d0   : > { %s11120_s3 = sld [smem:[#allocation6_spill]] }
0x13d5   : > { %p8609_p5 = scmp.ge.s32.totalorder %s11119_s22, 2 }
0x13d6   : > { %s7855_s13 = sand.u32 1, %s11120_s3  }
0x13d7   : > { %p8606_p6 = pnand %p8609_p5, %p9108_p9  ;;  %s7856_s28 = scalar_lea.sflag [#allocation4], %s7855_s13 }
0x13d9   : > { %p8607_p7 = pneg %p8606_p6 }
0x13db   : > { %8913 = dma.done.wait (%p8607_p7), %s7856_s28, 64  }
0x13dc   : > { %8915 = vsyncadd (%p8607_p7), %s7856_s28, 4294967232  ;;  %s30_s30 = sadd.s32 1, %s11119_s22   ;;  %s11122_s24 = sld [smem:[#allocation7_spill]] }
0x13dd   : > { %p27_p8 = scmp.ge.s32.totalorder %s30_s30, 6   ;;  %s11123_s25 = sld [smem:[#allocation8_spill]] }
0x13de   : > { %s11124_s26 = sld [smem:[#allocation18_spill]] }
0x13df   : > { %s11125_s27 = sld [smem:[#allocation11_spill]]  ;;  %29 = sbr.rel (!%p27_p8) target bundleno = 18 (0x12), region = 167 }
0x13e0   : > { %s11126_s28 = sld [smem:[#allocation12_spill]] }
0x13e1   : > { %s11127_s29 = sld [smem:[#allocation14_spill]] }
0x13e2   : > { %s11128_s0 = sld [smem:[#allocation16_spill]] }
0x13e4   :  { %7861 = vsyncpa [#allocation4], 1 }
0x13e5   :  { %7863 = vsyncpa [#allocation4 + $0x1], 1 }

</bundles_post_ra>
